<compile_context>
chip_gen: v7x
topology: tpu7x:2x2x1
jax: 0.10.0
libtpu: 0.0.40
codegen_flags: <defaults>
</compile_context>

<pallas_src>
import functools
import math

import jax
import jax.numpy as jnp
from jax.experimental import pallas as pl
from jax.experimental.pallas import tpu as pltpu

CDT = jnp.bfloat16  # MXU operand dtype; accumulation stays f32


# ------------------------------ in-kernel helpers -----------------------------

def _ln_f32(x, g, b, eps):
    mean = jnp.mean(x, axis=-1, keepdims=True)
    var = jnp.mean((x - mean) ** 2, axis=-1, keepdims=True)
    return (x - mean) * jax.lax.rsqrt(var + eps) * g + b


def _gelu_tanh(y):
    # TODO(synk): torch nn.GELU() is exact erf; tanh approximation used here.
    c = math.sqrt(2.0 / math.pi)
    return 0.5 * y * (1.0 + jnp.tanh(c * (y + 0.044715 * y * y * y)))


# ------------------------------ Pallas kernels --------------------------------

def _swin_stage_kernel(*refs, num_heads, eps, embed):
    """One full Swin stage (depth blocks) for one batch element.

    grid = (B, depth).  The output block index is constant over the depth axis, so
    the token tile stays resident in VMEM across all blocks of the stage and is
    written back to HBM exactly once.  Weights arrive as whole depth-stacked blocks
    (constant index_map => DMAed once per call); the current depth slice is picked
    with a dynamic leading-axis index.
    """
    if embed:
        (xin_ref, pew_ref, peb_ref,
         n1g_ref, n1b_ref, wqkv_ref, wproj_ref, pb_ref,
         n2g_ref, n2b_ref, f1w_ref, f1b_ref, f2w_ref, f2b_ref, o_ref) = refs
    else:
        (xin_ref,
         n1g_ref, n1b_ref, wqkv_ref, wproj_ref, pb_ref,
         n2g_ref, n2b_ref, f1w_ref, f1b_ref, f2w_ref, f2b_ref, o_ref) = refs

    d = pl.program_id(1)
    nh = num_heads

    # ---- materialize the resident token tile at the first depth step ----
    @pl.when(d == 0)
    def _():
        if embed:
            # Patch-embedding prologue: im2col columns @ conv weight (+ bias).
            cols = xin_ref[0].astype(CDT)                                  # (N, Cin*p*p)
            t = jnp.dot(cols, pew_ref[...], preferred_element_type=jnp.float32)
            o_ref[0] = (t + peb_ref[...]).astype(o_ref.dtype)
        else:
            o_ref[...] = xin_ref[...]

    x = o_ref[0].astype(jnp.float32)                                       # (N, C)
    N, C = x.shape
    hd = C // nh

    # per-depth weight slices (bf16; no per-step weight DMA)
    wqkv = wqkv_ref[d]                        # (3*nh, C, hd), Q columns pre-scaled
    wproj = wproj_ref[d]                      # (nh, hd, C)
    f1w = f1w_ref[d]                          # (C, 4C)
    f2w = f2w_ref[d]                          # (4C, C)

    # ---- attention branch: norm1 -> batched per-head qkv -> softmax -> proj ----
    h = _ln_f32(x, n1g_ref[d], n1b_ref[d], eps)
    hb = jnp.broadcast_to(h.astype(CDT)[None, :, :], (3 * nh, N, C))
    qkv = jnp.einsum('gnc,gcd->gnd', hb, wqkv,
                     preferred_element_type=jnp.float32)                   # (3nh, N, hd)
    q = qkv[:nh].astype(CDT)
    k = qkv[nh:2 * nh].astype(CDT)
    v = qkv[2 * nh:].astype(CDT)

    # TODO(synk): flash-style KV tiling needed before scaling img_size; at this size
    # the full (nh, N, N) scores fit VMEM with huge margin.
    s = jnp.einsum('hqd,hkd->hqk', q, k, preferred_element_type=jnp.float32)
    # TODO(synk): zero-initialized relative_position_bias omitted (contributes 0).
    s = s - jnp.max(s, axis=-1, keepdims=True)
    p = jnp.exp(s)
    p = p * pl.reciprocal(jnp.sum(p, axis=-1, keepdims=True), approx=True)
    o = jnp.einsum('hqk,hkd->hqd', p.astype(CDT), v,
                   preferred_element_type=jnp.float32)                     # (nh, N, hd)
    ctx = jnp.einsum('hqd,hdc->hqc', o.astype(CDT), wproj,
                     preferred_element_type=jnp.float32)                   # (nh, N, C)
    x1 = x + pb_ref[d] + jnp.sum(ctx, axis=0)                              # residual + proj bias

    # ---- MLP branch: norm2 -> fc1 + GELU -> fc2 -> residual ----
    h2 = _ln_f32(x1, n2g_ref[d], n2b_ref[d], eps)
    y = jnp.dot(h2.astype(CDT), f1w, preferred_element_type=jnp.float32) + f1b_ref[d]
    y = _gelu_tanh(y)
    y = jnp.dot(y.astype(CDT), f2w, preferred_element_type=jnp.float32) + f2b_ref[d]
    o_ref[0] = (x1 + y).astype(o_ref.dtype)


def _ln_linear_kernel(x_ref, g_ref, b_ref, w_ref, bias_ref, o_ref, *, eps):
    x = x_ref[...].astype(jnp.float32)
    h = _ln_f32(x, g_ref[...], b_ref[...], eps)
    y = jnp.dot(h.astype(CDT), w_ref[...], preferred_element_type=jnp.float32)
    o_ref[...] = (y + bias_ref[...]).astype(o_ref.dtype)


# ------------------------------ kernel wrappers --------------------------------

def swin_stage(x, sp, num_heads, embed=None):
    """Fused Swin stage: one pallas_call, grid=(B, depth)."""
    B, N, Ct = x.shape
    depth = sp["n1g"].shape[0]
    C = sp["n1g"].shape[-1]

    def full_spec(a):
        nd = a.ndim
        return pl.BlockSpec(a.shape, lambda b, d, _n=nd: (0,) * _n)   # constant => DMA once

    wnames = ("n1g", "n1b", "wqkv", "wproj", "proj_b",
              "n2g", "n2b", "fc1_w", "fc1_b", "fc2_w", "fc2_b")
    weights = [sp[k] for k in wnames]

    args = [x]
    specs = [pl.BlockSpec((1, N, Ct), lambda b, d: (b, 0, 0))]        # tokens / im2col cols
    if embed is not None:
        args += list(embed)
        specs += [full_spec(a) for a in embed]
    args += weights
    specs += [full_spec(a) for a in weights]

    return pl.pallas_call(
        functools.partial(_swin_stage_kernel, num_heads=num_heads, eps=1e-5,
                          embed=embed is not None),
        out_shape=jax.ShapeDtypeStruct((B, N, C), jnp.float32),
        grid=(B, depth),
        in_specs=specs,
        out_specs=pl.BlockSpec((1, N, C), lambda b, d: (b, 0, 0)),    # resident across depth
        compiler_params=pltpu.CompilerParams(
            dimension_semantics=("parallel", "arbitrary")),
    )(*args)


def ln_linear(x2d, g, b, w, bias, eps=1e-5):
    """Fused LayerNorm(last dim) + Linear, single block (shapes are tiny)."""
    M, K = x2d.shape
    N = w.shape[1]
    return pl.pallas_call(
        functools.partial(_ln_linear_kernel, eps=eps),
        out_shape=jax.ShapeDtypeStruct((M, N), jnp.float32),
        grid=(1,),
        in_specs=[
            pl.BlockSpec((M, K), lambda i: (0, 0)),
            pl.BlockSpec((1, K), lambda i: (0, 0)),
            pl.BlockSpec((1, K), lambda i: (0, 0)),
            pl.BlockSpec((K, N), lambda i: (0, 0)),
            pl.BlockSpec((1, N), lambda i: (0, 0)),
        ],
        out_specs=pl.BlockSpec((M, N), lambda i: (0, 0)),
    )(x2d, g, b, w, bias)


# ------------------------------ model (JAX glue) -------------------------------

def patch_merging(x, H, W, mp):
    B, N, C = x.shape
    xg = x.reshape(B, H, W, C)
    # einops 'b (h p1) (w p2) c -> b h w (p1 p2 c)', p1=p2=2  (pure layout)
    xg = xg.reshape(B, H // 2, 2, W // 2, 2, C).transpose(0, 1, 3, 2, 4, 5)
    xg = xg.reshape(B * (H // 2) * (W // 2), 4 * C)
    h = ln_linear(xg, mp["norm_g"], mp["norm_b"], mp["red_w"], mp["red_b"])
    return h.reshape(B, N // 4, -1), H // 2, W // 2


def swin_forward(prep, x, *, patch=4, num_heads=(2, 4)):
    # x is NCHW, like the PyTorch module.
    B, Cin, H, W = x.shape
    Hp, Wp = H // patch, W // patch
    # Conv2d(k=stride=patch) == im2col + matmul; patch vector order (c, dh, dw).
    # The reshape/transpose is pure layout; the matmul runs in the stage-0 prologue.
    cols = x.reshape(B, Cin, Hp, patch, Wp, patch).transpose(0, 2, 4, 1, 3, 5)
    cols = cols.reshape(B, Hp * Wp, Cin * patch * patch)

    h, w = Hp, Wp
    xt = cols
    nstages = len(prep["stages"])
    for i in range(nstages):
        emb = (prep["pe_w"], prep["pe_b"]) if i == 0 else None
        xt = swin_stage(xt, prep["stages"][i], num_heads[i], embed=emb)
        if i < nstages - 1:
            xt, h, w = patch_merging(xt, h, w, prep["merge"][i])

    B_, N_, C_ = xt.shape
    y = ln_linear(xt.reshape(B_ * N_, C_), prep["norm_g"], prep["norm_b"],
                  prep["head_w"], prep["head_b"])
    return y.reshape(B, 1, Hp * 4, Wp * 4)


# ------------------------------ parameter init / prep ---------------------------

def init_params(key, *, in_channels=1, embed_dim=64, depths=(2, 2), num_heads=(2, 4),
                window_size=7, patch=4, img_size=32):
    """Torch-layout parameters (f32), mirroring the PyTorch module."""
    keys = iter(jax.random.split(key, 256))

    def w(shape, scale=0.02):
        return scale * jax.random.normal(next(keys), shape, jnp.float32)

    params = {
        "patch_embed": {
            "w": w((embed_dim, in_channels, patch, patch)),
            "b": jnp.zeros((embed_dim,), jnp.float32),
        }
    }
    stages, merges = [], []
    dim = embed_dim
    for i, depth in enumerate(depths):
        blocks = []
        for _ in range(depth):
            blocks.append({
                "norm1_g": jnp.ones((dim,), jnp.float32),
                "norm1_b": jnp.zeros((dim,), jnp.float32),
                "qkv_w": w((dim, 3 * dim)),
                "proj_w": w((dim, dim)),
                "proj_b": jnp.zeros((dim,), jnp.float32),
                "rel_bias": jnp.zeros(((2 * window_size - 1) ** 2, num_heads[i]), jnp.float32),
                "norm2_g": jnp.ones((dim,), jnp.float32),
                "norm2_b": jnp.zeros((dim,), jnp.float32),
                "fc1_w": w((dim, 4 * dim)),
                "fc1_b": jnp.zeros((4 * dim,), jnp.float32),
                "fc2_w": w((4 * dim, dim)),
                "fc2_b": jnp.zeros((dim,), jnp.float32),
            })
        stages.append(blocks)
        if i < len(depths) - 1:
            merges.append({
                "norm_g": jnp.ones((4 * dim,), jnp.float32),
                "norm_b": jnp.zeros((4 * dim,), jnp.float32),
                "red_w": w((4 * dim, 2 * dim)),
                "red_b": jnp.zeros((2 * dim,), jnp.float32),
            })
            dim *= 2
    params["stages"] = stages
    params["merge"] = merges
    params["norm_g"] = jnp.ones((dim,), jnp.float32)
    params["norm_b"] = jnp.zeros((dim,), jnp.float32)
    out_feat = in_channels * img_size * img_size // 16
    params["head_w"] = w((dim, out_feat))
    params["head_b"] = jnp.zeros((out_feat,), jnp.float32)
    return params


def prepare_params(params, num_heads):
    """One-time host transform to the kernel layout:
    group qkv/proj weights per head, fold the softmax scale into the Q columns,
    stack per-depth params along a leading depth axis, cast matmul weights to bf16."""
    prep = {}
    cw = params["patch_embed"]["w"]
    embed_dim = cw.shape[0]
    prep["pe_w"] = cw.reshape(embed_dim, -1).T.astype(CDT)          # (Cin*p*p, E)
    prep["pe_b"] = params["patch_embed"]["b"].reshape(1, -1)

    stages = []
    for i, blocks in enumerate(params["stages"]):
        nh = num_heads[i]
        C = blocks[0]["norm1_g"].shape[0]
        hd = C // nh
        scale = hd ** -0.5

        def stack(fn):
            return jnp.stack([fn(b) for b in blocks], axis=0)

        def grp_qkv(b):
            wq = b["qkv_w"].reshape(C, 3, nh, hd).transpose(1, 2, 0, 3)   # (3, nh, C, hd)
            wq = wq.at[0].multiply(scale)                                 # fold softmax scale
            return wq.reshape(3 * nh, C, hd)

        stages.append({
            "n1g": stack(lambda b: b["norm1_g"].reshape(1, C)),
            "n1b": stack(lambda b: b["norm1_b"].reshape(1, C)),
            "wqkv": stack(grp_qkv).astype(CDT),
            "wproj": stack(lambda b: b["proj_w"].reshape(nh, hd, C)).astype(CDT),
            "proj_b": stack(lambda b: b["proj_b"].reshape(1, C)),
            "n2g": stack(lambda b: b["norm2_g"].reshape(1, C)),
            "n2b": stack(lambda b: b["norm2_b"].reshape(1, C)),
            "fc1_w": stack(lambda b: b["fc1_w"]).astype(CDT),
            "fc1_b": stack(lambda b: b["fc1_b"].reshape(1, 4 * C)),
            "fc2_w": stack(lambda b: b["fc2_w"]).astype(CDT),
            "fc2_b": stack(lambda b: b["fc2_b"].reshape(1, C)),
        })
    prep["stages"] = stages

    prep["merge"] = [{
        "norm_g": m["norm_g"].reshape(1, -1),
        "norm_b": m["norm_b"].reshape(1, -1),
        "red_w": m["red_w"].astype(CDT),
        "red_b": m["red_b"].reshape(1, -1),
    } for m in params["merge"]]

    prep["norm_g"] = params["norm_g"].reshape(1, -1)
    prep["norm_b"] = params["norm_b"].reshape(1, -1)
    prep["head_w"] = params["head_w"].astype(CDT)
    prep["head_b"] = params["head_b"].reshape(1, -1)
    return prep


# ---------------------------------- main ----------------------------------------

if __name__ == "__main__":
    key = jax.random.PRNGKey(0)
    pkey, xkey = jax.random.split(key)

    IMG, PATCH = 32, 4
    DEPTHS, HEADS, EMBED = (2, 2), (2, 4), 64

    params = init_params(pkey, in_channels=1, embed_dim=EMBED, depths=DEPTHS,
                         num_heads=HEADS, window_size=7, patch=PATCH, img_size=IMG)
    prep = prepare_params(params, HEADS)   # one-time host-side weight transform

    x = jax.random.normal(xkey, (2, 1, IMG, IMG), jnp.float32)  # NCHW

    fwd = jax.jit(functools.partial(swin_forward, patch=PATCH, num_heads=HEADS))
    out = fwd(prep, x)
    jax.block_until_ready(out)
    assert out.shape == (2, 1, IMG, IMG), out.shape
    assert bool(jnp.all(jnp.isfinite(out)))
    print("KERNEL_OK")
</pallas_src>

<mosaic_0001>
module attributes {stable_mosaic.version = 11 : i64} {
  func.func @_swin_stage_kernel(%arg0: i32, %arg1: i32, %arg2: memref<1x64x16xf32, #tpu.memory_space<vmem>>, %arg3: memref<16x64xbf16, #tpu.memory_space<vmem>>, %arg4: memref<1x64xf32, #tpu.memory_space<vmem>>, %arg5: memref<2x1x64xf32, #tpu.memory_space<vmem>>, %arg6: memref<2x1x64xf32, #tpu.memory_space<vmem>>, %arg7: memref<2x6x64x32xbf16, #tpu.memory_space<vmem>>, %arg8: memref<2x2x32x64xbf16, #tpu.memory_space<vmem>>, %arg9: memref<2x1x64xf32, #tpu.memory_space<vmem>>, %arg10: memref<2x1x64xf32, #tpu.memory_space<vmem>>, %arg11: memref<2x1x64xf32, #tpu.memory_space<vmem>>, %arg12: memref<2x64x256xbf16, #tpu.memory_space<vmem>>, %arg13: memref<2x1x256xf32, #tpu.memory_space<vmem>>, %arg14: memref<2x256x64xbf16, #tpu.memory_space<vmem>>, %arg15: memref<2x1x64xf32, #tpu.memory_space<vmem>>, %arg16: memref<1x64x64xf32, #tpu.memory_space<vmem>>) attributes {dimension_semantics = [#tpu.dimension_semantics<parallel>, #tpu.dimension_semantics<arbitrary>], iteration_bounds = array<i64: 2, 2>, scalar_prefetch = 0 : i64, scratch_operands = 0 : i64, tpu.core_type = #tpu.core_type<tc>, window_params = [{transform_indices = @transform_0, window_bounds = array<i64: 1, 64, 16>}, {pipeline_mode = #tpu.pipeline_mode<synchronous>, transform_indices = @transform_1, window_bounds = array<i64: 16, 64>}, {pipeline_mode = #tpu.pipeline_mode<synchronous>, transform_indices = @transform_2, window_bounds = array<i64: 1, 64>}, {pipeline_mode = #tpu.pipeline_mode<synchronous>, transform_indices = @transform_3, window_bounds = array<i64: 2, 1, 64>}, {pipeline_mode = #tpu.pipeline_mode<synchronous>, transform_indices = @transform_4, window_bounds = array<i64: 2, 1, 64>}, {pipeline_mode = #tpu.pipeline_mode<synchronous>, transform_indices = @transform_5, window_bounds = array<i64: 2, 6, 64, 32>}, {pipeline_mode = #tpu.pipeline_mode<synchronous>, transform_indices = @transform_6, window_bounds = array<i64: 2, 2, 32, 64>}, {pipeline_mode = #tpu.pipeline_mode<synchronous>, transform_indices = @transform_7, window_bounds = array<i64: 2, 1, 64>}, {pipeline_mode = #tpu.pipeline_mode<synchronous>, transform_indices = @transform_8, window_bounds = array<i64: 2, 1, 64>}, {pipeline_mode = #tpu.pipeline_mode<synchronous>, transform_indices = @transform_9, window_bounds = array<i64: 2, 1, 64>}, {pipeline_mode = #tpu.pipeline_mode<synchronous>, transform_indices = @transform_10, window_bounds = array<i64: 2, 64, 256>}, {pipeline_mode = #tpu.pipeline_mode<synchronous>, transform_indices = @transform_11, window_bounds = array<i64: 2, 1, 256>}, {pipeline_mode = #tpu.pipeline_mode<synchronous>, transform_indices = @transform_12, window_bounds = array<i64: 2, 256, 64>}, {pipeline_mode = #tpu.pipeline_mode<synchronous>, transform_indices = @transform_13, window_bounds = array<i64: 2, 1, 64>}, {transform_indices = @transform_14, window_bounds = array<i64: 1, 64, 64>}]} {
    %c0_i32 = arith.constant 0 : i32
    %0 = arith.cmpi eq, %arg1, %c0_i32 : i32
    %1 = arith.extui %0 : i1 to i32
    %c0_i32_0 = arith.constant 0 : i32
    %2 = arith.cmpi ne, %1, %c0_i32_0 : i32
    scf.if %2 {
      %c0_52 = arith.constant 0 : index
      %c0_53 = arith.constant 0 : index
      %c0_54 = arith.constant 0 : index
      %137 = vector.load %arg2[%c0_52, %c0_53, %c0_54] : memref<1x64x16xf32, #tpu.memory_space<vmem>>, vector<1x64x16xf32>
      %138 = vector.shape_cast %137 : vector<1x64x16xf32> to vector<64x16xf32>
      %139 = arith.truncf %138 : vector<64x16xf32> to vector<64x16xbf16>
      %c0_55 = arith.constant 0 : index
      %c0_56 = arith.constant 0 : index
      %140 = vector.load %arg3[%c0_55, %c0_56] : memref<16x64xbf16, #tpu.memory_space<vmem>>, vector<16x64xbf16>
      %cst_57 = arith.constant dense<0.000000e+00> : vector<64x64xf32>
      %141 = tpu.matmul %139, %140, %cst_57 {dimension_numbers = #tpu.dot_dimension_numbers<[1], [0], [0], [1], [0, 0, 1, 1], [], []>} : vector<64x16xbf16>, vector<16x64xbf16>, vector<64x64xf32> -> vector<64x64xf32>
      %c0_58 = arith.constant 0 : index
      %c0_59 = arith.constant 0 : index
      %142 = vector.load %arg4[%c0_58, %c0_59] : memref<1x64xf32, #tpu.memory_space<vmem>>, vector<1x64xf32>
      %143 = vector.broadcast %142 : vector<1x64xf32> to vector<64x64xf32>
      %144 = arith.addf %141, %143 : vector<64x64xf32>
      %c0_60 = arith.constant 0 : index
      %c0_61 = arith.constant 0 : index
      %c0_62 = arith.constant 0 : index
      %145 = vector.load %arg16[%c0_60, %c0_61, %c0_62] : memref<1x64x64xf32, #tpu.memory_space<vmem>>, vector<1x64x64xf32>
      %146 = vector.shape_cast %145 : vector<1x64x64xf32> to vector<64x64xf32>
      %147 = vector.shape_cast %144 : vector<64x64xf32> to vector<1x64x64xf32>
      tpu.vector_store %arg16[%c0_60, %c0_61, %c0_62], %147 {strides = array<i32>} : memref<1x64x64xf32, #tpu.memory_space<vmem>>, vector<1x64x64xf32>,
    } else {
    }
    %c0 = arith.constant 0 : index
    %c0_1 = arith.constant 0 : index
    %c0_2 = arith.constant 0 : index
    %3 = vector.load %arg16[%c0, %c0_1, %c0_2] : memref<1x64x64xf32, #tpu.memory_space<vmem>>, vector<1x64x64xf32>
    %4 = vector.shape_cast %3 : vector<1x64x64xf32> to vector<64x64xf32>
    %5 = arith.index_cast %arg1 : i32 to index
    %c0_3 = arith.constant 0 : index
    %c0_4 = arith.constant 0 : index
    %c0_5 = arith.constant 0 : index
    %6 = vector.load %arg7[%5, %c0_3, %c0_4, %c0_5] : memref<2x6x64x32xbf16, #tpu.memory_space<vmem>>, vector<1x6x64x32xbf16>
    %7 = vector.shape_cast %6 : vector<1x6x64x32xbf16> to vector<6x64x32xbf16>
    %8 = arith.index_cast %arg1 : i32 to index
    %c0_6 = arith.constant 0 : index
    %c0_7 = arith.constant 0 : index
    %c0_8 = arith.constant 0 : index
    %9 = vector.load %arg8[%8, %c0_6, %c0_7, %c0_8] : memref<2x2x32x64xbf16, #tpu.memory_space<vmem>>, vector<1x2x32x64xbf16>
    %10 = vector.shape_cast %9 : vector<1x2x32x64xbf16> to vector<2x32x64xbf16>
    %11 = arith.index_cast %arg1 : i32 to index
    %c0_9 = arith.constant 0 : index
    %c0_10 = arith.constant 0 : index
    %12 = vector.load %arg12[%11, %c0_9, %c0_10] : memref<2x64x256xbf16, #tpu.memory_space<vmem>>, vector<1x64x256xbf16>
    %13 = vector.shape_cast %12 : vector<1x64x256xbf16> to vector<64x256xbf16>
    %14 = arith.index_cast %arg1 : i32 to index
    %c0_11 = arith.constant 0 : index
    %c0_12 = arith.constant 0 : index
    %15 = vector.load %arg14[%14, %c0_11, %c0_12] : memref<2x256x64xbf16, #tpu.memory_space<vmem>>, vector<1x256x64xbf16>
    %16 = vector.shape_cast %15 : vector<1x256x64xbf16> to vector<256x64xbf16>
    %17 = arith.index_cast %arg1 : i32 to index
    %c0_13 = arith.constant 0 : index
    %c0_14 = arith.constant 0 : index
    %18 = vector.load %arg5[%17, %c0_13, %c0_14] : memref<2x1x64xf32, #tpu.memory_space<vmem>>, vector<1x1x64xf32>
    %19 = vector.shape_cast %18 : vector<1x1x64xf32> to vector<1x64xf32>
    %20 = arith.index_cast %arg1 : i32 to index
    %c0_15 = arith.constant 0 : index
    %c0_16 = arith.constant 0 : index
    %21 = vector.load %arg6[%20, %c0_15, %c0_16] : memref<2x1x64xf32, #tpu.memory_space<vmem>>, vector<1x1x64xf32>
    %22 = vector.shape_cast %21 : vector<1x1x64xf32> to vector<1x64xf32>
    %cst = arith.constant dense<0.000000e+00> : vector<64xf32>
    %23 = vector.multi_reduction <add>, %4, %cst [1] : vector<64x64xf32> to vector<64xf32>
    %24 = vector.shape_cast %23 : vector<64xf32> to vector<64x1xf32>
    %cst_17 = arith.constant 6.400000e+01 : f32
    %25 = vector.broadcast %cst_17 : f32 to vector<64x1xf32>
    %26 = arith.divf %24, %25 : vector<64x1xf32>
    %27 = vector.broadcast %26 : vector<64x1xf32> to vector<64x64xf32>
    %28 = arith.subf %4, %27 : vector<64x64xf32>
    %29 = arith.mulf %28, %28 : vector<64x64xf32>
    %cst_18 = arith.constant dense<0.000000e+00> : vector<64xf32>
    %30 = vector.multi_reduction <add>, %29, %cst_18 [1] : vector<64x64xf32> to vector<64xf32>
    %31 = vector.shape_cast %30 : vector<64xf32> to vector<64x1xf32>
    %cst_19 = arith.constant 6.400000e+01 : f32
    %32 = vector.broadcast %cst_19 : f32 to vector<64x1xf32>
    %33 = arith.divf %31, %32 : vector<64x1xf32>
    %34 = vector.broadcast %26 : vector<64x1xf32> to vector<64x64xf32>
    %35 = arith.subf %4, %34 : vector<64x64xf32>
    %cst_20 = arith.constant 9.99999974E-6 : f32
    %36 = vector.broadcast %cst_20 : f32 to vector<64x1xf32>
    %37 = arith.addf %33, %36 : vector<64x1xf32>
    %38 = math.rsqrt %37 : vector<64x1xf32>
    %39 = vector.broadcast %38 : vector<64x1xf32> to vector<64x64xf32>
    %40 = arith.mulf %35, %39 : vector<64x64xf32>
    %41 = vector.broadcast %19 : vector<1x64xf32> to vector<64x64xf32>
    %42 = arith.mulf %40, %41 : vector<64x64xf32>
    %43 = vector.broadcast %22 : vector<1x64xf32> to vector<64x64xf32>
    %44 = arith.addf %42, %43 : vector<64x64xf32>
    %45 = arith.truncf %44 : vector<64x64xf32> to vector<64x64xbf16>
    %46 = vector.shape_cast %45 : vector<64x64xbf16> to vector<1x64x64xbf16>
    %47 = vector.shape_cast %46 : vector<1x64x64xbf16> to vector<1x64x64xbf16>
    %48 = vector.broadcast %47 : vector<1x64x64xbf16> to vector<6x64x64xbf16>
    "tpu.trace_start"() <{level = 10 : i32, message = "gnc,gcd->gnd"}> : () -> ()
    %cst_21 = arith.constant dense<0.000000e+00> : vector<6x64x32xf32>
    %49 = tpu.matmul %48, %7, %cst_21 {dimension_numbers = #tpu.dot_dimension_numbers<[2], [1], [1], [2], [0, 0, 0, 1, 1, 2], [0], [0]>} : vector<6x64x64xbf16>, vector<6x64x32xbf16>, vector<6x64x32xf32> -> vector<6x64x32xf32>
    "tpu.trace_stop"() : () -> ()
    %50 = vector.extract_strided_slice %49 {offsets = [0, 0, 0], sizes = [2, 64, 32], strides = [1, 1, 1]} : vector<6x64x32xf32> to vector<2x64x32xf32>
    %51 = arith.truncf %50 : vector<2x64x32xf32> to vector<2x64x32xbf16>
    %52 = vector.extract_strided_slice %49 {offsets = [2, 0, 0], sizes = [2, 64, 32], strides = [1, 1, 1]} : vector<6x64x32xf32> to vector<2x64x32xf32>
    %53 = arith.truncf %52 : vector<2x64x32xf32> to vector<2x64x32xbf16>
    %54 = vector.extract_strided_slice %49 {offsets = [4, 0, 0], sizes = [2, 64, 32], strides = [1, 1, 1]} : vector<6x64x32xf32> to vector<2x64x32xf32>
    %55 = arith.truncf %54 : vector<2x64x32xf32> to vector<2x64x32xbf16>
    "tpu.trace_start"() <{level = 10 : i32, message = "hqd,hkd->hqk"}> : () -> ()
    %cst_22 = arith.constant dense<0.000000e+00> : vector<2x64x64xf32>
    %56 = tpu.matmul %51, %53, %cst_22 {dimension_numbers = #tpu.dot_dimension_numbers<[2], [2], [1], [1], [0, 0, 0, 1, 1, 1], [0], [0]>} : vector<2x64x32xbf16>, vector<2x64x32xbf16>, vector<2x64x64xf32> -> vector<2x64x64xf32>
    "tpu.trace_stop"() : () -> ()
    %cst_23 = arith.constant dense<0xFF800000> : vector<2x64xf32>
    %57 = vector.multi_reduction <maximumf>, %56, %cst_23 [2] : vector<2x64x64xf32> to vector<2x64xf32>
    %58 = vector.shape_cast %57 : vector<2x64xf32> to vector<2x64x1xf32>
    %59 = vector.broadcast %58 : vector<2x64x1xf32> to vector<2x64x64xf32>
    %60 = arith.subf %56, %59 : vector<2x64x64xf32>
    %61 = math.exp %60 : vector<2x64x64xf32>
    %cst_24 = arith.constant dense<0.000000e+00> : vector<2x64xf32>
    %62 = vector.multi_reduction <add>, %61, %cst_24 [2] : vector<2x64x64xf32> to vector<2x64xf32>
    %63 = vector.shape_cast %62 : vector<2x64xf32> to vector<2x64x1xf32>
    %64 = tpu.reciprocal %63 {approx = true} : vector<2x64x1xf32> -> vector<2x64x1xf32>
    %65 = vector.broadcast %64 : vector<2x64x1xf32> to vector<2x64x64xf32>
    %66 = arith.mulf %61, %65 : vector<2x64x64xf32>
    %67 = arith.truncf %66 : vector<2x64x64xf32> to vector<2x64x64xbf16>
    "tpu.trace_start"() <{level = 10 : i32, message = "hqk,hkd->hqd"}> : () -> ()
    %cst_25 = arith.constant dense<0.000000e+00> : vector<2x64x32xf32>
    %68 = tpu.matmul %67, %55, %cst_25 {dimension_numbers = #tpu.dot_dimension_numbers<[2], [1], [1], [2], [0, 0, 0, 1, 1, 2], [0], [0]>} : vector<2x64x64xbf16>, vector<2x64x32xbf16>, vector<2x64x32xf32> -> vector<2x64x32xf32>
    "tpu.trace_stop"() : () -> ()
    %69 = arith.truncf %68 : vector<2x64x32xf32> to vector<2x64x32xbf16>
    "tpu.trace_start"() <{level = 10 : i32, message = "hqd,hdc->hqc"}> : () -> ()
    %cst_26 = arith.constant dense<0.000000e+00> : vector<2x64x64xf32>
    %70 = tpu.matmul %69, %10, %cst_26 {dimension_numbers = #tpu.dot_dimension_numbers<[2], [1], [1], [2], [0, 0, 0, 1, 1, 2], [0], [0]>} : vector<2x64x32xbf16>, vector<2x32x64xbf16>, vector<2x64x64xf32> -> vector<2x64x64xf32>
    "tpu.trace_stop"() : () -> ()
    %71 = arith.index_cast %arg1 : i32 to index
    %c0_27 = arith.constant 0 : index
    %c0_28 = arith.constant 0 : index
    %72 = vector.load %arg9[%71, %c0_27, %c0_28] : memref<2x1x64xf32, #tpu.memory_space<vmem>>, vector<1x1x64xf32>
    %73 = vector.shape_cast %72 : vector<1x1x64xf32> to vector<1x64xf32>
    %74 = vector.broadcast %73 : vector<1x64xf32> to vector<64x64xf32>
    %75 = arith.addf %4, %74 : vector<64x64xf32>
    %cst_29 = arith.constant dense<0.000000e+00> : vector<64x64xf32>
    %76 = vector.multi_reduction <add>, %70, %cst_29 [0] : vector<2x64x64xf32> to vector<64x64xf32>
    %77 = arith.addf %75, %76 : vector<64x64xf32>
    %78 = arith.index_cast %arg1 : i32 to index
    %c0_30 = arith.constant 0 : index
    %c0_31 = arith.constant 0 : index
    %79 = vector.load %arg10[%78, %c0_30, %c0_31] : memref<2x1x64xf32, #tpu.memory_space<vmem>>, vector<1x1x64xf32>
    %80 = vector.shape_cast %79 : vector<1x1x64xf32> to vector<1x64xf32>
    %81 = arith.index_cast %arg1 : i32 to index
    %c0_32 = arith.constant 0 : index
    %c0_33 = arith.constant 0 : index
    %82 = vector.load %arg11[%81, %c0_32, %c0_33] : memref<2x1x64xf32, #tpu.memory_space<vmem>>, vector<1x1x64xf32>
    %83 = vector.shape_cast %82 : vector<1x1x64xf32> to vector<1x64xf32>
    %cst_34 = arith.constant dense<0.000000e+00> : vector<64xf32>
    %84 = vector.multi_reduction <add>, %77, %cst_34 [1] : vector<64x64xf32> to vector<64xf32>
    %85 = vector.shape_cast %84 : vector<64xf32> to vector<64x1xf32>
    %cst_35 = arith.constant 6.400000e+01 : f32
    %86 = vector.broadcast %cst_35 : f32 to vector<64x1xf32>
    %87 = arith.divf %85, %86 : vector<64x1xf32>
    %88 = vector.broadcast %87 : vector<64x1xf32> to vector<64x64xf32>
    %89 = arith.subf %77, %88 : vector<64x64xf32>
    %90 = arith.mulf %89, %89 : vector<64x64xf32>
    %cst_36 = arith.constant dense<0.000000e+00> : vector<64xf32>
    %91 = vector.multi_reduction <add>, %90, %cst_36 [1] : vector<64x64xf32> to vector<64xf32>
    %92 = vector.shape_cast %91 : vector<64xf32> to vector<64x1xf32>
    %cst_37 = arith.constant 6.400000e+01 : f32
    %93 = vector.broadcast %cst_37 : f32 to vector<64x1xf32>
    %94 = arith.divf %92, %93 : vector<64x1xf32>
    %95 = vector.broadcast %87 : vector<64x1xf32> to vector<64x64xf32>
    %96 = arith.subf %77, %95 : vector<64x64xf32>
    %cst_38 = arith.constant 9.99999974E-6 : f32
    %97 = vector.broadcast %cst_38 : f32 to vector<64x1xf32>
    %98 = arith.addf %94, %97 : vector<64x1xf32>
    %99 = math.rsqrt %98 : vector<64x1xf32>
    %100 = vector.broadcast %99 : vector<64x1xf32> to vector<64x64xf32>
    %101 = arith.mulf %96, %100 : vector<64x64xf32>
    %102 = vector.broadcast %80 : vector<1x64xf32> to vector<64x64xf32>
    %103 = arith.mulf %101, %102 : vector<64x64xf32>
    %104 = vector.broadcast %83 : vector<1x64xf32> to vector<64x64xf32>
    %105 = arith.addf %103, %104 : vector<64x64xf32>
    %106 = arith.truncf %105 : vector<64x64xf32> to vector<64x64xbf16>
    %cst_39 = arith.constant dense<0.000000e+00> : vector<64x256xf32>
    %107 = tpu.matmul %106, %13, %cst_39 {dimension_numbers = #tpu.dot_dimension_numbers<[1], [0], [0], [1], [0, 0, 1, 1], [], []>} : vector<64x64xbf16>, vector<64x256xbf16>, vector<64x256xf32> -> vector<64x256xf32>
    %108 = arith.index_cast %arg1 : i32 to index
    %c0_40 = arith.constant 0 : index
    %c0_41 = arith.constant 0 : index
    %109 = vector.load %arg13[%108, %c0_40, %c0_41] : memref<2x1x256xf32, #tpu.memory_space<vmem>>, vector<1x1x256xf32>
    %110 = vector.shape_cast %109 : vector<1x1x256xf32> to vector<1x256xf32>
    %111 = vector.broadcast %110 : vector<1x256xf32> to vector<64x256xf32>
    %112 = arith.addf %107, %111 : vector<64x256xf32>
    %cst_42 = arith.constant 5.000000e-01 : f32
    %113 = vector.broadcast %cst_42 : f32 to vector<64x256xf32>
    %114 = arith.mulf %113, %112 : vector<64x256xf32>
    %cst_43 = arith.constant 4.471500e-02 : f32
    %115 = vector.broadcast %cst_43 : f32 to vector<64x256xf32>
    %116 = arith.mulf %115, %112 : vector<64x256xf32>
    %117 = arith.mulf %116, %112 : vector<64x256xf32>
    %118 = arith.mulf %117, %112 : vector<64x256xf32>
    %119 = arith.addf %112, %118 : vector<64x256xf32>
    %cst_44 = arith.constant 0.797884583 : f32
    %120 = vector.broadcast %cst_44 : f32 to vector<64x256xf32>
    %121 = arith.mulf %120, %119 : vector<64x256xf32>
    %122 = math.tanh %121 : vector<64x256xf32>
    %cst_45 = arith.constant 1.000000e+00 : f32
    %123 = vector.broadcast %cst_45 : f32 to vector<64x256xf32>
    %124 = arith.addf %123, %122 : vector<64x256xf32>
    %125 = arith.mulf %114, %124 : vector<64x256xf32>
    %126 = arith.truncf %125 : vector<64x256xf32> to vector<64x256xbf16>
    %cst_46 = arith.constant dense<0.000000e+00> : vector<64x64xf32>
    %127 = tpu.matmul %126, %16, %cst_46 {dimension_numbers = #tpu.dot_dimension_numbers<[1], [0], [0], [1], [0, 0, 1, 1], [], []>} : vector<64x256xbf16>, vector<256x64xbf16>, vector<64x64xf32> -> vector<64x64xf32>
    %128 = arith.index_cast %arg1 : i32 to index
    %c0_47 = arith.constant 0 : index
    %c0_48 = arith.constant 0 : index
    %129 = vector.load %arg15[%128, %c0_47, %c0_48] : memref<2x1x64xf32, #tpu.memory_space<vmem>>, vector<1x1x64xf32>
    %130 = vector.shape_cast %129 : vector<1x1x64xf32> to vector<1x64xf32>
    %131 = vector.broadcast %130 : vector<1x64xf32> to vector<64x64xf32>
    %132 = arith.addf %127, %131 : vector<64x64xf32>
    %133 = arith.addf %77, %132 : vector<64x64xf32>
    %c0_49 = arith.constant 0 : index
    %c0_50 = arith.constant 0 : index
    %c0_51 = arith.constant 0 : index
    %134 = vector.load %arg16[%c0_49, %c0_50, %c0_51] : memref<1x64x64xf32, #tpu.memory_space<vmem>>, vector<1x64x64xf32>
    %135 = vector.shape_cast %134 : vector<1x64x64xf32> to vector<64x64xf32>
    %136 = vector.shape_cast %133 : vector<64x64xf32> to vector<1x64x64xf32>
    tpu.vector_store %arg16[%c0_49, %c0_50, %c0_51], %136 {strides = array<i32>} : memref<1x64x64xf32, #tpu.memory_space<vmem>>, vector<1x64x64xf32>,
    return
  }
  func.func @transform_0(%arg0: i32, %arg1: i32) -> (i32, i32, i32) {
    %c0_i32 = arith.constant 0 : i32
    %c0_i32_0 = arith.constant 0 : i32
    %c0_i32_1 = arith.constant 0 : i32
    return %arg0, %c0_i32, %c0_i32_0 : i32, i32, i32
  }
  func.func @transform_1(%arg0: i32, %arg1: i32) -> (i32, i32) {
    %c0_i32 = arith.constant 0 : i32
    %c0_i32_0 = arith.constant 0 : i32
    %c0_i32_1 = arith.constant 0 : i32
    return %c0_i32, %c0_i32_0 : i32, i32
  }
  func.func @transform_2(%arg0: i32, %arg1: i32) -> (i32, i32) {
    %c0_i32 = arith.constant 0 : i32
    %c0_i32_0 = arith.constant 0 : i32
    %c0_i32_1 = arith.constant 0 : i32
    return %c0_i32, %c0_i32_0 : i32, i32
  }
  func.func @transform_3(%arg0: i32, %arg1: i32) -> (i32, i32, i32) {
    %c0_i32 = arith.constant 0 : i32
    %c0_i32_0 = arith.constant 0 : i32
    %c0_i32_1 = arith.constant 0 : i32
    %c0_i32_2 = arith.constant 0 : i32
    return %c0_i32, %c0_i32_0, %c0_i32_1 : i32, i32, i32
  }
  func.func @transform_4(%arg0: i32, %arg1: i32) -> (i32, i32, i32) {
    %c0_i32 = arith.constant 0 : i32
    %c0_i32_0 = arith.constant 0 : i32
    %c0_i32_1 = arith.constant 0 : i32
    %c0_i32_2 = arith.constant 0 : i32
    return %c0_i32, %c0_i32_0, %c0_i32_1 : i32, i32, i32
  }
  func.func @transform_5(%arg0: i32, %arg1: i32) -> (i32, i32, i32, i32) {
    %c0_i32 = arith.constant 0 : i32
    %c0_i32_0 = arith.constant 0 : i32
    %c0_i32_1 = arith.constant 0 : i32
    %c0_i32_2 = arith.constant 0 : i32
    %c0_i32_3 = arith.constant 0 : i32
    return %c0_i32, %c0_i32_0, %c0_i32_1, %c0_i32_2 : i32, i32, i32, i32
  }
  func.func @transform_6(%arg0: i32, %arg1: i32) -> (i32, i32, i32, i32) {
    %c0_i32 = arith.constant 0 : i32
    %c0_i32_0 = arith.constant 0 : i32
    %c0_i32_1 = arith.constant 0 : i32
    %c0_i32_2 = arith.constant 0 : i32
    %c0_i32_3 = arith.constant 0 : i32
    return %c0_i32, %c0_i32_0, %c0_i32_1, %c0_i32_2 : i32, i32, i32, i32
  }
  func.func @transform_7(%arg0: i32, %arg1: i32) -> (i32, i32, i32) {
    %c0_i32 = arith.constant 0 : i32
    %c0_i32_0 = arith.constant 0 : i32
    %c0_i32_1 = arith.constant 0 : i32
    %c0_i32_2 = arith.constant 0 : i32
    return %c0_i32, %c0_i32_0, %c0_i32_1 : i32, i32, i32
  }
  func.func @transform_8(%arg0: i32, %arg1: i32) -> (i32, i32, i32) {
    %c0_i32 = arith.constant 0 : i32
    %c0_i32_0 = arith.constant 0 : i32
    %c0_i32_1 = arith.constant 0 : i32
    %c0_i32_2 = arith.constant 0 : i32
    return %c0_i32, %c0_i32_0, %c0_i32_1 : i32, i32, i32
  }
  func.func @transform_9(%arg0: i32, %arg1: i32) -> (i32, i32, i32) {
    %c0_i32 = arith.constant 0 : i32
    %c0_i32_0 = arith.constant 0 : i32
    %c0_i32_1 = arith.constant 0 : i32
    %c0_i32_2 = arith.constant 0 : i32
    return %c0_i32, %c0_i32_0, %c0_i32_1 : i32, i32, i32
  }
  func.func @transform_10(%arg0: i32, %arg1: i32) -> (i32, i32, i32) {
    %c0_i32 = arith.constant 0 : i32
    %c0_i32_0 = arith.constant 0 : i32
    %c0_i32_1 = arith.constant 0 : i32
    %c0_i32_2 = arith.constant 0 : i32
    return %c0_i32, %c0_i32_0, %c0_i32_1 : i32, i32, i32
  }
  func.func @transform_11(%arg0: i32, %arg1: i32) -> (i32, i32, i32) {
    %c0_i32 = arith.constant 0 : i32
    %c0_i32_0 = arith.constant 0 : i32
    %c0_i32_1 = arith.constant 0 : i32
    %c0_i32_2 = arith.constant 0 : i32
    return %c0_i32, %c0_i32_0, %c0_i32_1 : i32, i32, i32
  }
  func.func @transform_12(%arg0: i32, %arg1: i32) -> (i32, i32, i32) {
    %c0_i32 = arith.constant 0 : i32
    %c0_i32_0 = arith.constant 0 : i32
    %c0_i32_1 = arith.constant 0 : i32
    %c0_i32_2 = arith.constant 0 : i32
    return %c0_i32, %c0_i32_0, %c0_i32_1 : i32, i32, i32
  }
  func.func @transform_13(%arg0: i32, %arg1: i32) -> (i32, i32, i32) {
    %c0_i32 = arith.constant 0 : i32
    %c0_i32_0 = arith.constant 0 : i32
    %c0_i32_1 = arith.constant 0 : i32
    %c0_i32_2 = arith.constant 0 : i32
    return %c0_i32, %c0_i32_0, %c0_i32_1 : i32, i32, i32
  }
  func.func @transform_14(%arg0: i32, %arg1: i32) -> (i32, i32, i32) {
    %c0_i32 = arith.constant 0 : i32
    %c0_i32_0 = arith.constant 0 : i32
    %c0_i32_1 = arith.constant 0 : i32
    return %arg0, %c0_i32, %c0_i32_0 : i32, i32, i32
  }
}

module attributes {stable_mosaic.version = 11 : i64} {
  func.func @_ln_linear_kernel(%arg0: i32, %arg1: memref<32x256xf32, #tpu.memory_space<vmem>>, %arg2: memref<1x256xf32, #tpu.memory_space<vmem>>, %arg3: memref<1x256xf32, #tpu.memory_space<vmem>>, %arg4: memref<256x128xbf16, #tpu.memory_space<vmem>>, %arg5: memref<1x128xf32, #tpu.memory_space<vmem>>, %arg6: memref<32x128xf32, #tpu.memory_space<vmem>>) attributes {dimension_semantics = [#tpu.dimension_semantics<arbitrary>], iteration_bounds = array<i64: 1>, scalar_prefetch = 0 : i64, scratch_operands = 0 : i64, tpu.core_type = #tpu.core_type<tc>, window_params = [{pipeline_mode = #tpu.pipeline_mode<synchronous>, transform_indices = @transform_0, window_bounds = array<i64: 32, 256>}, {pipeline_mode = #tpu.pipeline_mode<synchronous>, transform_indices = @transform_1, window_bounds = array<i64: 1, 256>}, {pipeline_mode = #tpu.pipeline_mode<synchronous>, transform_indices = @transform_2, window_bounds = array<i64: 1, 256>}, {pipeline_mode = #tpu.pipeline_mode<synchronous>, transform_indices = @transform_3, window_bounds = array<i64: 256, 128>}, {pipeline_mode = #tpu.pipeline_mode<synchronous>, transform_indices = @transform_4, window_bounds = array<i64: 1, 128>}, {pipeline_mode = #tpu.pipeline_mode<synchronous>, transform_indices = @transform_5, window_bounds = array<i64: 32, 128>}]} {
    %c0 = arith.constant 0 : index
    %c0_0 = arith.constant 0 : index
    %0 = vector.load %arg1[%c0, %c0_0] : memref<32x256xf32, #tpu.memory_space<vmem>>, vector<32x256xf32>
    %c0_1 = arith.constant 0 : index
    %c0_2 = arith.constant 0 : index
    %1 = vector.load %arg2[%c0_1, %c0_2] : memref<1x256xf32, #tpu.memory_space<vmem>>, vector<1x256xf32>
    %c0_3 = arith.constant 0 : index
    %c0_4 = arith.constant 0 : index
    %2 = vector.load %arg3[%c0_3, %c0_4] : memref<1x256xf32, #tpu.memory_space<vmem>>, vector<1x256xf32>
    %cst = arith.constant dense<0.000000e+00> : vector<32xf32>
    %3 = vector.multi_reduction <add>, %0, %cst [1] : vector<32x256xf32> to vector<32xf32>
    %4 = vector.shape_cast %3 : vector<32xf32> to vector<32x1xf32>
    %cst_5 = arith.constant 2.560000e+02 : f32
    %5 = vector.broadcast %cst_5 : f32 to vector<32x1xf32>
    %6 = arith.divf %4, %5 : vector<32x1xf32>
    %7 = vector.broadcast %6 : vector<32x1xf32> to vector<32x256xf32>
    %8 = arith.subf %0, %7 : vector<32x256xf32>
    %9 = arith.mulf %8, %8 : vector<32x256xf32>
    %cst_6 = arith.constant dense<0.000000e+00> : vector<32xf32>
    %10 = vector.multi_reduction <add>, %9, %cst_6 [1] : vector<32x256xf32> to vector<32xf32>
    %11 = vector.shape_cast %10 : vector<32xf32> to vector<32x1xf32>
    %cst_7 = arith.constant 2.560000e+02 : f32
    %12 = vector.broadcast %cst_7 : f32 to vector<32x1xf32>
    %13 = arith.divf %11, %12 : vector<32x1xf32>
    %14 = vector.broadcast %6 : vector<32x1xf32> to vector<32x256xf32>
    %15 = arith.subf %0, %14 : vector<32x256xf32>
    %cst_8 = arith.constant 9.99999974E-6 : f32
    %16 = vector.broadcast %cst_8 : f32 to vector<32x1xf32>
    %17 = arith.addf %13, %16 : vector<32x1xf32>
    %18 = math.rsqrt %17 : vector<32x1xf32>
    %19 = vector.broadcast %18 : vector<32x1xf32> to vector<32x256xf32>
    %20 = arith.mulf %15, %19 : vector<32x256xf32>
    %21 = vector.broadcast %1 : vector<1x256xf32> to vector<32x256xf32>
    %22 = arith.mulf %20, %21 : vector<32x256xf32>
    %23 = vector.broadcast %2 : vector<1x256xf32> to vector<32x256xf32>
    %24 = arith.addf %22, %23 : vector<32x256xf32>
    %25 = arith.truncf %24 : vector<32x256xf32> to vector<32x256xbf16>
    %c0_9 = arith.constant 0 : index
    %c0_10 = arith.constant 0 : index
    %26 = vector.load %arg4[%c0_9, %c0_10] : memref<256x128xbf16, #tpu.memory_space<vmem>>, vector<256x128xbf16>
    %cst_11 = arith.constant dense<0.000000e+00> : vector<32x128xf32>
    %27 = tpu.matmul %25, %26, %cst_11 {dimension_numbers = #tpu.dot_dimension_numbers<[1], [0], [0], [1], [0, 0, 1, 1], [], []>} : vector<32x256xbf16>, vector<256x128xbf16>, vector<32x128xf32> -> vector<32x128xf32>
    %c0_12 = arith.constant 0 : index
    %c0_13 = arith.constant 0 : index
    %28 = vector.load %arg5[%c0_12, %c0_13] : memref<1x128xf32, #tpu.memory_space<vmem>>, vector<1x128xf32>
    %29 = vector.broadcast %28 : vector<1x128xf32> to vector<32x128xf32>
    %30 = arith.addf %27, %29 : vector<32x128xf32>
    %c0_14 = arith.constant 0 : index
    %c0_15 = arith.constant 0 : index
    %31 = vector.load %arg6[%c0_14, %c0_15] : memref<32x128xf32, #tpu.memory_space<vmem>>, vector<32x128xf32>
    tpu.vector_store %arg6[%c0_14, %c0_15], %30 {strides = array<i32>} : memref<32x128xf32, #tpu.memory_space<vmem>>, vector<32x128xf32>,
    return
  }
  func.func @transform_0(%arg0: i32) -> (i32, i32) {
    %c0_i32 = arith.constant 0 : i32
    %c0_i32_0 = arith.constant 0 : i32
    %c0_i32_1 = arith.constant 0 : i32
    return %c0_i32, %c0_i32_0 : i32, i32
  }
  func.func @transform_1(%arg0: i32) -> (i32, i32) {
    %c0_i32 = arith.constant 0 : i32
    %c0_i32_0 = arith.constant 0 : i32
    %c0_i32_1 = arith.constant 0 : i32
    return %c0_i32, %c0_i32_0 : i32, i32
  }
  func.func @transform_2(%arg0: i32) -> (i32, i32) {
    %c0_i32 = arith.constant 0 : i32
    %c0_i32_0 = arith.constant 0 : i32
    %c0_i32_1 = arith.constant 0 : i32
    return %c0_i32, %c0_i32_0 : i32, i32
  }
  func.func @transform_3(%arg0: i32) -> (i32, i32) {
    %c0_i32 = arith.constant 0 : i32
    %c0_i32_0 = arith.constant 0 : i32
    %c0_i32_1 = arith.constant 0 : i32
    return %c0_i32, %c0_i32_0 : i32, i32
  }
  func.func @transform_4(%arg0: i32) -> (i32, i32) {
    %c0_i32 = arith.constant 0 : i32
    %c0_i32_0 = arith.constant 0 : i32
    %c0_i32_1 = arith.constant 0 : i32
    return %c0_i32, %c0_i32_0 : i32, i32
  }
  func.func @transform_5(%arg0: i32) -> (i32, i32) {
    %c0_i32 = arith.constant 0 : i32
    %c0_i32_0 = arith.constant 0 : i32
    %c0_i32_1 = arith.constant 0 : i32
    return %c0_i32, %c0_i32_0 : i32, i32
  }
}

module attributes {stable_mosaic.version = 11 : i64} {
  func.func @_swin_stage_kernel(%arg0: i32, %arg1: i32, %arg2: memref<1x16x128xf32, #tpu.memory_space<vmem>>, %arg3: memref<2x1x128xf32, #tpu.memory_space<vmem>>, %arg4: memref<2x1x128xf32, #tpu.memory_space<vmem>>, %arg5: memref<2x12x128x32xbf16, #tpu.memory_space<vmem>>, %arg6: memref<2x4x32x128xbf16, #tpu.memory_space<vmem>>, %arg7: memref<2x1x128xf32, #tpu.memory_space<vmem>>, %arg8: memref<2x1x128xf32, #tpu.memory_space<vmem>>, %arg9: memref<2x1x128xf32, #tpu.memory_space<vmem>>, %arg10: memref<2x128x512xbf16, #tpu.memory_space<vmem>>, %arg11: memref<2x1x512xf32, #tpu.memory_space<vmem>>, %arg12: memref<2x512x128xbf16, #tpu.memory_space<vmem>>, %arg13: memref<2x1x128xf32, #tpu.memory_space<vmem>>, %arg14: memref<1x16x128xf32, #tpu.memory_space<vmem>>) attributes {dimension_semantics = [#tpu.dimension_semantics<parallel>, #tpu.dimension_semantics<arbitrary>], iteration_bounds = array<i64: 2, 2>, scalar_prefetch = 0 : i64, scratch_operands = 0 : i64, tpu.core_type = #tpu.core_type<tc>, window_params = [{transform_indices = @transform_0, window_bounds = array<i64: 1, 16, 128>}, {pipeline_mode = #tpu.pipeline_mode<synchronous>, transform_indices = @transform_1, window_bounds = array<i64: 2, 1, 128>}, {pipeline_mode = #tpu.pipeline_mode<synchronous>, transform_indices = @transform_2, window_bounds = array<i64: 2, 1, 128>}, {pipeline_mode = #tpu.pipeline_mode<synchronous>, transform_indices = @transform_3, window_bounds = array<i64: 2, 12, 128, 32>}, {pipeline_mode = #tpu.pipeline_mode<synchronous>, transform_indices = @transform_4, window_bounds = array<i64: 2, 4, 32, 128>}, {pipeline_mode = #tpu.pipeline_mode<synchronous>, transform_indices = @transform_5, window_bounds = array<i64: 2, 1, 128>}, {pipeline_mode = #tpu.pipeline_mode<synchronous>, transform_indices = @transform_6, window_bounds = array<i64: 2, 1, 128>}, {pipeline_mode = #tpu.pipeline_mode<synchronous>, transform_indices = @transform_7, window_bounds = array<i64: 2, 1, 128>}, {pipeline_mode = #tpu.pipeline_mode<synchronous>, transform_indices = @transform_8, window_bounds = array<i64: 2, 128, 512>}, {pipeline_mode = #tpu.pipeline_mode<synchronous>, transform_indices = @transform_9, window_bounds = array<i64: 2, 1, 512>}, {pipeline_mode = #tpu.pipeline_mode<synchronous>, transform_indices = @transform_10, window_bounds = array<i64: 2, 512, 128>}, {pipeline_mode = #tpu.pipeline_mode<synchronous>, transform_indices = @transform_11, window_bounds = array<i64: 2, 1, 128>}, {transform_indices = @transform_12, window_bounds = array<i64: 1, 16, 128>}]} {
    %c0_i32 = arith.constant 0 : i32
    %0 = arith.cmpi eq, %arg1, %c0_i32 : i32
    %1 = arith.extui %0 : i1 to i32
    %c0_i32_0 = arith.constant 0 : i32
    %2 = arith.cmpi ne, %1, %c0_i32_0 : i32
    scf.if %2 {
      %c0_52 = arith.constant 0 : index
      %c0_53 = arith.constant 0 : index
      %c0_54 = arith.constant 0 : index
      %137 = vector.load %arg2[%c0_52, %c0_53, %c0_54] : memref<1x16x128xf32, #tpu.memory_space<vmem>>, vector<1x16x128xf32>
      %c0_55 = arith.constant 0 : index
      %c0_56 = arith.constant 0 : index
      %c0_57 = arith.constant 0 : index
      %138 = vector.load %arg14[%c0_55, %c0_56, %c0_57] : memref<1x16x128xf32, #tpu.memory_space<vmem>>, vector<1x16x128xf32>
      tpu.vector_store %arg14[%c0_55, %c0_56, %c0_57], %137 {strides = array<i32>} : memref<1x16x128xf32, #tpu.memory_space<vmem>>, vector<1x16x128xf32>,
    } else {
    }
    %c0 = arith.constant 0 : index
    %c0_1 = arith.constant 0 : index
    %c0_2 = arith.constant 0 : index
    %3 = vector.load %arg14[%c0, %c0_1, %c0_2] : memref<1x16x128xf32, #tpu.memory_space<vmem>>, vector<1x16x128xf32>
    %4 = vector.shape_cast %3 : vector<1x16x128xf32> to vector<16x128xf32>
    %5 = arith.index_cast %arg1 : i32 to index
    %c0_3 = arith.constant 0 : index
    %c0_4 = arith.constant 0 : index
    %c0_5 = arith.constant 0 : index
    %6 = vector.load %arg5[%5, %c0_3, %c0_4, %c0_5] : memref<2x12x128x32xbf16, #tpu.memory_space<vmem>>, vector<1x12x128x32xbf16>
    %7 = vector.shape_cast %6 : vector<1x12x128x32xbf16> to vector<12x128x32xbf16>
    %8 = arith.index_cast %arg1 : i32 to index
    %c0_6 = arith.constant 0 : index
    %c0_7 = arith.constant 0 : index
    %c0_8 = arith.constant 0 : index
    %9 = vector.load %arg6[%8, %c0_6, %c0_7, %c0_8] : memref<2x4x32x128xbf16, #tpu.memory_space<vmem>>, vector<1x4x32x128xbf16>
    %10 = vector.shape_cast %9 : vector<1x4x32x128xbf16> to vector<4x32x128xbf16>
    %11 = arith.index_cast %arg1 : i32 to index
    %c0_9 = arith.constant 0 : index
    %c0_10 = arith.constant 0 : index
    %12 = vector.load %arg10[%11, %c0_9, %c0_10] : memref<2x128x512xbf16, #tpu.memory_space<vmem>>, vector<1x128x512xbf16>
    %13 = vector.shape_cast %12 : vector<1x128x512xbf16> to vector<128x512xbf16>
    %14 = arith.index_cast %arg1 : i32 to index
    %c0_11 = arith.constant 0 : index
    %c0_12 = arith.constant 0 : index
    %15 = vector.load %arg12[%14, %c0_11, %c0_12] : memref<2x512x128xbf16, #tpu.memory_space<vmem>>, vector<1x512x128xbf16>
    %16 = vector.shape_cast %15 : vector<1x512x128xbf16> to vector<512x128xbf16>
    %17 = arith.index_cast %arg1 : i32 to index
    %c0_13 = arith.constant 0 : index
    %c0_14 = arith.constant 0 : index
    %18 = vector.load %arg3[%17, %c0_13, %c0_14] : memref<2x1x128xf32, #tpu.memory_space<vmem>>, vector<1x1x128xf32>
    %19 = vector.shape_cast %18 : vector<1x1x128xf32> to vector<1x128xf32>
    %20 = arith.index_cast %arg1 : i32 to index
    %c0_15 = arith.constant 0 : index
    %c0_16 = arith.constant 0 : index
    %21 = vector.load %arg4[%20, %c0_15, %c0_16] : memref<2x1x128xf32, #tpu.memory_space<vmem>>, vector<1x1x128xf32>
    %22 = vector.shape_cast %21 : vector<1x1x128xf32> to vector<1x128xf32>
    %cst = arith.constant dense<0.000000e+00> : vector<16xf32>
    %23 = vector.multi_reduction <add>, %4, %cst [1] : vector<16x128xf32> to vector<16xf32>
    %24 = vector.shape_cast %23 : vector<16xf32> to vector<16x1xf32>
    %cst_17 = arith.constant 1.280000e+02 : f32
    %25 = vector.broadcast %cst_17 : f32 to vector<16x1xf32>
    %26 = arith.divf %24, %25 : vector<16x1xf32>
    %27 = vector.broadcast %26 : vector<16x1xf32> to vector<16x128xf32>
    %28 = arith.subf %4, %27 : vector<16x128xf32>
    %29 = arith.mulf %28, %28 : vector<16x128xf32>
    %cst_18 = arith.constant dense<0.000000e+00> : vector<16xf32>
    %30 = vector.multi_reduction <add>, %29, %cst_18 [1] : vector<16x128xf32> to vector<16xf32>
    %31 = vector.shape_cast %30 : vector<16xf32> to vector<16x1xf32>
    %cst_19 = arith.constant 1.280000e+02 : f32
    %32 = vector.broadcast %cst_19 : f32 to vector<16x1xf32>
    %33 = arith.divf %31, %32 : vector<16x1xf32>
    %34 = vector.broadcast %26 : vector<16x1xf32> to vector<16x128xf32>
    %35 = arith.subf %4, %34 : vector<16x128xf32>
    %cst_20 = arith.constant 9.99999974E-6 : f32
    %36 = vector.broadcast %cst_20 : f32 to vector<16x1xf32>
    %37 = arith.addf %33, %36 : vector<16x1xf32>
    %38 = math.rsqrt %37 : vector<16x1xf32>
    %39 = vector.broadcast %38 : vector<16x1xf32> to vector<16x128xf32>
    %40 = arith.mulf %35, %39 : vector<16x128xf32>
    %41 = vector.broadcast %19 : vector<1x128xf32> to vector<16x128xf32>
    %42 = arith.mulf %40, %41 : vector<16x128xf32>
    %43 = vector.broadcast %22 : vector<1x128xf32> to vector<16x128xf32>
    %44 = arith.addf %42, %43 : vector<16x128xf32>
    %45 = arith.truncf %44 : vector<16x128xf32> to vector<16x128xbf16>
    %46 = vector.shape_cast %45 : vector<16x128xbf16> to vector<1x16x128xbf16>
    %47 = vector.shape_cast %46 : vector<1x16x128xbf16> to vector<1x16x128xbf16>
    %48 = vector.broadcast %47 : vector<1x16x128xbf16> to vector<12x16x128xbf16>
    "tpu.trace_start"() <{level = 10 : i32, message = "gnc,gcd->gnd"}> : () -> ()
    %cst_21 = arith.constant dense<0.000000e+00> : vector<12x16x32xf32>
    %49 = tpu.matmul %48, %7, %cst_21 {dimension_numbers = #tpu.dot_dimension_numbers<[2], [1], [1], [2], [0, 0, 0, 1, 1, 2], [0], [0]>} : vector<12x16x128xbf16>, vector<12x128x32xbf16>, vector<12x16x32xf32> -> vector<12x16x32xf32>
    "tpu.trace_stop"() : () -> ()
    %50 = vector.extract_strided_slice %49 {offsets = [0, 0, 0], sizes = [4, 16, 32], strides = [1, 1, 1]} : vector<12x16x32xf32> to vector<4x16x32xf32>
    %51 = arith.truncf %50 : vector<4x16x32xf32> to vector<4x16x32xbf16>
    %52 = vector.extract_strided_slice %49 {offsets = [4, 0, 0], sizes = [4, 16, 32], strides = [1, 1, 1]} : vector<12x16x32xf32> to vector<4x16x32xf32>
    %53 = arith.truncf %52 : vector<4x16x32xf32> to vector<4x16x32xbf16>
    %54 = vector.extract_strided_slice %49 {offsets = [8, 0, 0], sizes = [4, 16, 32], strides = [1, 1, 1]} : vector<12x16x32xf32> to vector<4x16x32xf32>
    %55 = arith.truncf %54 : vector<4x16x32xf32> to vector<4x16x32xbf16>
    "tpu.trace_start"() <{level = 10 : i32, message = "hqd,hkd->hqk"}> : () -> ()
    %cst_22 = arith.constant dense<0.000000e+00> : vector<4x16x16xf32>
    %56 = tpu.matmul %51, %53, %cst_22 {dimension_numbers = #tpu.dot_dimension_numbers<[2], [2], [1], [1], [0, 0, 0, 1, 1, 1], [0], [0]>} : vector<4x16x32xbf16>, vector<4x16x32xbf16>, vector<4x16x16xf32> -> vector<4x16x16xf32>
    "tpu.trace_stop"() : () -> ()
    %cst_23 = arith.constant dense<0xFF800000> : vector<4x16xf32>
    %57 = vector.multi_reduction <maximumf>, %56, %cst_23 [2] : vector<4x16x16xf32> to vector<4x16xf32>
    %58 = vector.shape_cast %57 : vector<4x16xf32> to vector<4x16x1xf32>
    %59 = vector.broadcast %58 : vector<4x16x1xf32> to vector<4x16x16xf32>
    %60 = arith.subf %56, %59 : vector<4x16x16xf32>
    %61 = math.exp %60 : vector<4x16x16xf32>
    %cst_24 = arith.constant dense<0.000000e+00> : vector<4x16xf32>
    %62 = vector.multi_reduction <add>, %61, %cst_24 [2] : vector<4x16x16xf32> to vector<4x16xf32>
    %63 = vector.shape_cast %62 : vector<4x16xf32> to vector<4x16x1xf32>
    %64 = tpu.reciprocal %63 {approx = true} : vector<4x16x1xf32> -> vector<4x16x1xf32>
    %65 = vector.broadcast %64 : vector<4x16x1xf32> to vector<4x16x16xf32>
    %66 = arith.mulf %61, %65 : vector<4x16x16xf32>
    %67 = arith.truncf %66 : vector<4x16x16xf32> to vector<4x16x16xbf16>
    "tpu.trace_start"() <{level = 10 : i32, message = "hqk,hkd->hqd"}> : () -> ()
    %cst_25 = arith.constant dense<0.000000e+00> : vector<4x16x32xf32>
    %68 = tpu.matmul %67, %55, %cst_25 {dimension_numbers = #tpu.dot_dimension_numbers<[2], [1], [1], [2], [0, 0, 0, 1, 1, 2], [0], [0]>} : vector<4x16x16xbf16>, vector<4x16x32xbf16>, vector<4x16x32xf32> -> vector<4x16x32xf32>
    "tpu.trace_stop"() : () -> ()
    %69 = arith.truncf %68 : vector<4x16x32xf32> to vector<4x16x32xbf16>
    "tpu.trace_start"() <{level = 10 : i32, message = "hqd,hdc->hqc"}> : () -> ()
    %cst_26 = arith.constant dense<0.000000e+00> : vector<4x16x128xf32>
    %70 = tpu.matmul %69, %10, %cst_26 {dimension_numbers = #tpu.dot_dimension_numbers<[2], [1], [1], [2], [0, 0, 0, 1, 1, 2], [0], [0]>} : vector<4x16x32xbf16>, vector<4x32x128xbf16>, vector<4x16x128xf32> -> vector<4x16x128xf32>
    "tpu.trace_stop"() : () -> ()
    %71 = arith.index_cast %arg1 : i32 to index
    %c0_27 = arith.constant 0 : index
    %c0_28 = arith.constant 0 : index
    %72 = vector.load %arg7[%71, %c0_27, %c0_28] : memref<2x1x128xf32, #tpu.memory_space<vmem>>, vector<1x1x128xf32>
    %73 = vector.shape_cast %72 : vector<1x1x128xf32> to vector<1x128xf32>
    %74 = vector.broadcast %73 : vector<1x128xf32> to vector<16x128xf32>
    %75 = arith.addf %4, %74 : vector<16x128xf32>
    %cst_29 = arith.constant dense<0.000000e+00> : vector<16x128xf32>
    %76 = vector.multi_reduction <add>, %70, %cst_29 [0] : vector<4x16x128xf32> to vector<16x128xf32>
    %77 = arith.addf %75, %76 : vector<16x128xf32>
    %78 = arith.index_cast %arg1 : i32 to index
    %c0_30 = arith.constant 0 : index
    %c0_31 = arith.constant 0 : index
    %79 = vector.load %arg8[%78, %c0_30, %c0_31] : memref<2x1x128xf32, #tpu.memory_space<vmem>>, vector<1x1x128xf32>
    %80 = vector.shape_cast %79 : vector<1x1x128xf32> to vector<1x128xf32>
    %81 = arith.index_cast %arg1 : i32 to index
    %c0_32 = arith.constant 0 : index
    %c0_33 = arith.constant 0 : index
    %82 = vector.load %arg9[%81, %c0_32, %c0_33] : memref<2x1x128xf32, #tpu.memory_space<vmem>>, vector<1x1x128xf32>
    %83 = vector.shape_cast %82 : vector<1x1x128xf32> to vector<1x128xf32>
    %cst_34 = arith.constant dense<0.000000e+00> : vector<16xf32>
    %84 = vector.multi_reduction <add>, %77, %cst_34 [1] : vector<16x128xf32> to vector<16xf32>
    %85 = vector.shape_cast %84 : vector<16xf32> to vector<16x1xf32>
    %cst_35 = arith.constant 1.280000e+02 : f32
    %86 = vector.broadcast %cst_35 : f32 to vector<16x1xf32>
    %87 = arith.divf %85, %86 : vector<16x1xf32>
    %88 = vector.broadcast %87 : vector<16x1xf32> to vector<16x128xf32>
    %89 = arith.subf %77, %88 : vector<16x128xf32>
    %90 = arith.mulf %89, %89 : vector<16x128xf32>
    %cst_36 = arith.constant dense<0.000000e+00> : vector<16xf32>
    %91 = vector.multi_reduction <add>, %90, %cst_36 [1] : vector<16x128xf32> to vector<16xf32>
    %92 = vector.shape_cast %91 : vector<16xf32> to vector<16x1xf32>
    %cst_37 = arith.constant 1.280000e+02 : f32
    %93 = vector.broadcast %cst_37 : f32 to vector<16x1xf32>
    %94 = arith.divf %92, %93 : vector<16x1xf32>
    %95 = vector.broadcast %87 : vector<16x1xf32> to vector<16x128xf32>
    %96 = arith.subf %77, %95 : vector<16x128xf32>
    %cst_38 = arith.constant 9.99999974E-6 : f32
    %97 = vector.broadcast %cst_38 : f32 to vector<16x1xf32>
    %98 = arith.addf %94, %97 : vector<16x1xf32>
    %99 = math.rsqrt %98 : vector<16x1xf32>
    %100 = vector.broadcast %99 : vector<16x1xf32> to vector<16x128xf32>
    %101 = arith.mulf %96, %100 : vector<16x128xf32>
    %102 = vector.broadcast %80 : vector<1x128xf32> to vector<16x128xf32>
    %103 = arith.mulf %101, %102 : vector<16x128xf32>
    %104 = vector.broadcast %83 : vector<1x128xf32> to vector<16x128xf32>
    %105 = arith.addf %103, %104 : vector<16x128xf32>
    %106 = arith.truncf %105 : vector<16x128xf32> to vector<16x128xbf16>
    %cst_39 = arith.constant dense<0.000000e+00> : vector<16x512xf32>
    %107 = tpu.matmul %106, %13, %cst_39 {dimension_numbers = #tpu.dot_dimension_numbers<[1], [0], [0], [1], [0, 0, 1, 1], [], []>} : vector<16x128xbf16>, vector<128x512xbf16>, vector<16x512xf32> -> vector<16x512xf32>
    %108 = arith.index_cast %arg1 : i32 to index
    %c0_40 = arith.constant 0 : index
    %c0_41 = arith.constant 0 : index
    %109 = vector.load %arg11[%108, %c0_40, %c0_41] : memref<2x1x512xf32, #tpu.memory_space<vmem>>, vector<1x1x512xf32>
    %110 = vector.shape_cast %109 : vector<1x1x512xf32> to vector<1x512xf32>
    %111 = vector.broadcast %110 : vector<1x512xf32> to vector<16x512xf32>
    %112 = arith.addf %107, %111 : vector<16x512xf32>
    %cst_42 = arith.constant 5.000000e-01 : f32
    %113 = vector.broadcast %cst_42 : f32 to vector<16x512xf32>
    %114 = arith.mulf %113, %112 : vector<16x512xf32>
    %cst_43 = arith.constant 4.471500e-02 : f32
    %115 = vector.broadcast %cst_43 : f32 to vector<16x512xf32>
    %116 = arith.mulf %115, %112 : vector<16x512xf32>
    %117 = arith.mulf %116, %112 : vector<16x512xf32>
    %118 = arith.mulf %117, %112 : vector<16x512xf32>
    %119 = arith.addf %112, %118 : vector<16x512xf32>
    %cst_44 = arith.constant 0.797884583 : f32
    %120 = vector.broadcast %cst_44 : f32 to vector<16x512xf32>
    %121 = arith.mulf %120, %119 : vector<16x512xf32>
    %122 = math.tanh %121 : vector<16x512xf32>
    %cst_45 = arith.constant 1.000000e+00 : f32
    %123 = vector.broadcast %cst_45 : f32 to vector<16x512xf32>
    %124 = arith.addf %123, %122 : vector<16x512xf32>
    %125 = arith.mulf %114, %124 : vector<16x512xf32>
    %126 = arith.truncf %125 : vector<16x512xf32> to vector<16x512xbf16>
    %cst_46 = arith.constant dense<0.000000e+00> : vector<16x128xf32>
    %127 = tpu.matmul %126, %16, %cst_46 {dimension_numbers = #tpu.dot_dimension_numbers<[1], [0], [0], [1], [0, 0, 1, 1], [], []>} : vector<16x512xbf16>, vector<512x128xbf16>, vector<16x128xf32> -> vector<16x128xf32>
    %128 = arith.index_cast %arg1 : i32 to index
    %c0_47 = arith.constant 0 : index
    %c0_48 = arith.constant 0 : index
    %129 = vector.load %arg13[%128, %c0_47, %c0_48] : memref<2x1x128xf32, #tpu.memory_space<vmem>>, vector<1x1x128xf32>
    %130 = vector.shape_cast %129 : vector<1x1x128xf32> to vector<1x128xf32>
    %131 = vector.broadcast %130 : vector<1x128xf32> to vector<16x128xf32>
    %132 = arith.addf %127, %131 : vector<16x128xf32>
    %133 = arith.addf %77, %132 : vector<16x128xf32>
    %c0_49 = arith.constant 0 : index
    %c0_50 = arith.constant 0 : index
    %c0_51 = arith.constant 0 : index
    %134 = vector.load %arg14[%c0_49, %c0_50, %c0_51] : memref<1x16x128xf32, #tpu.memory_space<vmem>>, vector<1x16x128xf32>
    %135 = vector.shape_cast %134 : vector<1x16x128xf32> to vector<16x128xf32>
    %136 = vector.shape_cast %133 : vector<16x128xf32> to vector<1x16x128xf32>
    tpu.vector_store %arg14[%c0_49, %c0_50, %c0_51], %136 {strides = array<i32>} : memref<1x16x128xf32, #tpu.memory_space<vmem>>, vector<1x16x128xf32>,
    return
  }
  func.func @transform_0(%arg0: i32, %arg1: i32) -> (i32, i32, i32) {
    %c0_i32 = arith.constant 0 : i32
    %c0_i32_0 = arith.constant 0 : i32
    %c0_i32_1 = arith.constant 0 : i32
    return %arg0, %c0_i32, %c0_i32_0 : i32, i32, i32
  }
  func.func @transform_1(%arg0: i32, %arg1: i32) -> (i32, i32, i32) {
    %c0_i32 = arith.constant 0 : i32
    %c0_i32_0 = arith.constant 0 : i32
    %c0_i32_1 = arith.constant 0 : i32
    %c0_i32_2 = arith.constant 0 : i32
    return %c0_i32, %c0_i32_0, %c0_i32_1 : i32, i32, i32
  }
  func.func @transform_2(%arg0: i32, %arg1: i32) -> (i32, i32, i32) {
    %c0_i32 = arith.constant 0 : i32
    %c0_i32_0 = arith.constant 0 : i32
    %c0_i32_1 = arith.constant 0 : i32
    %c0_i32_2 = arith.constant 0 : i32
    return %c0_i32, %c0_i32_0, %c0_i32_1 : i32, i32, i32
  }
  func.func @transform_3(%arg0: i32, %arg1: i32) -> (i32, i32, i32, i32) {
    %c0_i32 = arith.constant 0 : i32
    %c0_i32_0 = arith.constant 0 : i32
    %c0_i32_1 = arith.constant 0 : i32
    %c0_i32_2 = arith.constant 0 : i32
    %c0_i32_3 = arith.constant 0 : i32
    return %c0_i32, %c0_i32_0, %c0_i32_1, %c0_i32_2 : i32, i32, i32, i32
  }
  func.func @transform_4(%arg0: i32, %arg1: i32) -> (i32, i32, i32, i32) {
    %c0_i32 = arith.constant 0 : i32
    %c0_i32_0 = arith.constant 0 : i32
    %c0_i32_1 = arith.constant 0 : i32
    %c0_i32_2 = arith.constant 0 : i32
    %c0_i32_3 = arith.constant 0 : i32
    return %c0_i32, %c0_i32_0, %c0_i32_1, %c0_i32_2 : i32, i32, i32, i32
  }
  func.func @transform_5(%arg0: i32, %arg1: i32) -> (i32, i32, i32) {
    %c0_i32 = arith.constant 0 : i32
    %c0_i32_0 = arith.constant 0 : i32
    %c0_i32_1 = arith.constant 0 : i32
    %c0_i32_2 = arith.constant 0 : i32
    return %c0_i32, %c0_i32_0, %c0_i32_1 : i32, i32, i32
  }
  func.func @transform_6(%arg0: i32, %arg1: i32) -> (i32, i32, i32) {
    %c0_i32 = arith.constant 0 : i32
    %c0_i32_0 = arith.constant 0 : i32
    %c0_i32_1 = arith.constant 0 : i32
    %c0_i32_2 = arith.constant 0 : i32
    return %c0_i32, %c0_i32_0, %c0_i32_1 : i32, i32, i32
  }
  func.func @transform_7(%arg0: i32, %arg1: i32) -> (i32, i32, i32) {
    %c0_i32 = arith.constant 0 : i32
    %c0_i32_0 = arith.constant 0 : i32
    %c0_i32_1 = arith.constant 0 : i32
    %c0_i32_2 = arith.constant 0 : i32
    return %c0_i32, %c0_i32_0, %c0_i32_1 : i32, i32, i32
  }
  func.func @transform_8(%arg0: i32, %arg1: i32) -> (i32, i32, i32) {
    %c0_i32 = arith.constant 0 : i32
    %c0_i32_0 = arith.constant 0 : i32
    %c0_i32_1 = arith.constant 0 : i32
    %c0_i32_2 = arith.constant 0 : i32
    return %c0_i32, %c0_i32_0, %c0_i32_1 : i32, i32, i32
  }
  func.func @transform_9(%arg0: i32, %arg1: i32) -> (i32, i32, i32) {
    %c0_i32 = arith.constant 0 : i32
    %c0_i32_0 = arith.constant 0 : i32
    %c0_i32_1 = arith.constant 0 : i32
    %c0_i32_2 = arith.constant 0 : i32
    return %c0_i32, %c0_i32_0, %c0_i32_1 : i32, i32, i32
  }
  func.func @transform_10(%arg0: i32, %arg1: i32) -> (i32, i32, i32) {
    %c0_i32 = arith.constant 0 : i32
    %c0_i32_0 = arith.constant 0 : i32
    %c0_i32_1 = arith.constant 0 : i32
    %c0_i32_2 = arith.constant 0 : i32
    return %c0_i32, %c0_i32_0, %c0_i32_1 : i32, i32, i32
  }
  func.func @transform_11(%arg0: i32, %arg1: i32) -> (i32, i32, i32) {
    %c0_i32 = arith.constant 0 : i32
    %c0_i32_0 = arith.constant 0 : i32
    %c0_i32_1 = arith.constant 0 : i32
    %c0_i32_2 = arith.constant 0 : i32
    return %c0_i32, %c0_i32_0, %c0_i32_1 : i32, i32, i32
  }
  func.func @transform_12(%arg0: i32, %arg1: i32) -> (i32, i32, i32) {
    %c0_i32 = arith.constant 0 : i32
    %c0_i32_0 = arith.constant 0 : i32
    %c0_i32_1 = arith.constant 0 : i32
    return %arg0, %c0_i32, %c0_i32_0 : i32, i32, i32
  }
}

module attributes {stable_mosaic.version = 11 : i64} {
  func.func @_ln_linear_kernel(%arg0: i32, %arg1: memref<32x128xf32, #tpu.memory_space<vmem>>, %arg2: memref<1x128xf32, #tpu.memory_space<vmem>>, %arg3: memref<1x128xf32, #tpu.memory_space<vmem>>, %arg4: memref<128x64xbf16, #tpu.memory_space<vmem>>, %arg5: memref<1x64xf32, #tpu.memory_space<vmem>>, %arg6: memref<32x64xf32, #tpu.memory_space<vmem>>) attributes {dimension_semantics = [#tpu.dimension_semantics<arbitrary>], iteration_bounds = array<i64: 1>, scalar_prefetch = 0 : i64, scratch_operands = 0 : i64, tpu.core_type = #tpu.core_type<tc>, window_params = [{pipeline_mode = #tpu.pipeline_mode<synchronous>, transform_indices = @transform_0, window_bounds = array<i64: 32, 128>}, {pipeline_mode = #tpu.pipeline_mode<synchronous>, transform_indices = @transform_1, window_bounds = array<i64: 1, 128>}, {pipeline_mode = #tpu.pipeline_mode<synchronous>, transform_indices = @transform_2, window_bounds = array<i64: 1, 128>}, {pipeline_mode = #tpu.pipeline_mode<synchronous>, transform_indices = @transform_3, window_bounds = array<i64: 128, 64>}, {pipeline_mode = #tpu.pipeline_mode<synchronous>, transform_indices = @transform_4, window_bounds = array<i64: 1, 64>}, {pipeline_mode = #tpu.pipeline_mode<synchronous>, transform_indices = @transform_5, window_bounds = array<i64: 32, 64>}]} {
    %c0 = arith.constant 0 : index
    %c0_0 = arith.constant 0 : index
    %0 = vector.load %arg1[%c0, %c0_0] : memref<32x128xf32, #tpu.memory_space<vmem>>, vector<32x128xf32>
    %c0_1 = arith.constant 0 : index
    %c0_2 = arith.constant 0 : index
    %1 = vector.load %arg2[%c0_1, %c0_2] : memref<1x128xf32, #tpu.memory_space<vmem>>, vector<1x128xf32>
    %c0_3 = arith.constant 0 : index
    %c0_4 = arith.constant 0 : index
    %2 = vector.load %arg3[%c0_3, %c0_4] : memref<1x128xf32, #tpu.memory_space<vmem>>, vector<1x128xf32>
    %cst = arith.constant dense<0.000000e+00> : vector<32xf32>
    %3 = vector.multi_reduction <add>, %0, %cst [1] : vector<32x128xf32> to vector<32xf32>
    %4 = vector.shape_cast %3 : vector<32xf32> to vector<32x1xf32>
    %cst_5 = arith.constant 1.280000e+02 : f32
    %5 = vector.broadcast %cst_5 : f32 to vector<32x1xf32>
    %6 = arith.divf %4, %5 : vector<32x1xf32>
    %7 = vector.broadcast %6 : vector<32x1xf32> to vector<32x128xf32>
    %8 = arith.subf %0, %7 : vector<32x128xf32>
    %9 = arith.mulf %8, %8 : vector<32x128xf32>
    %cst_6 = arith.constant dense<0.000000e+00> : vector<32xf32>
    %10 = vector.multi_reduction <add>, %9, %cst_6 [1] : vector<32x128xf32> to vector<32xf32>
    %11 = vector.shape_cast %10 : vector<32xf32> to vector<32x1xf32>
    %cst_7 = arith.constant 1.280000e+02 : f32
    %12 = vector.broadcast %cst_7 : f32 to vector<32x1xf32>
    %13 = arith.divf %11, %12 : vector<32x1xf32>
    %14 = vector.broadcast %6 : vector<32x1xf32> to vector<32x128xf32>
    %15 = arith.subf %0, %14 : vector<32x128xf32>
    %cst_8 = arith.constant 9.99999974E-6 : f32
    %16 = vector.broadcast %cst_8 : f32 to vector<32x1xf32>
    %17 = arith.addf %13, %16 : vector<32x1xf32>
    %18 = math.rsqrt %17 : vector<32x1xf32>
    %19 = vector.broadcast %18 : vector<32x1xf32> to vector<32x128xf32>
    %20 = arith.mulf %15, %19 : vector<32x128xf32>
    %21 = vector.broadcast %1 : vector<1x128xf32> to vector<32x128xf32>
    %22 = arith.mulf %20, %21 : vector<32x128xf32>
    %23 = vector.broadcast %2 : vector<1x128xf32> to vector<32x128xf32>
    %24 = arith.addf %22, %23 : vector<32x128xf32>
    %25 = arith.truncf %24 : vector<32x128xf32> to vector<32x128xbf16>
    %c0_9 = arith.constant 0 : index
    %c0_10 = arith.constant 0 : index
    %26 = vector.load %arg4[%c0_9, %c0_10] : memref<128x64xbf16, #tpu.memory_space<vmem>>, vector<128x64xbf16>
    %cst_11 = arith.constant dense<0.000000e+00> : vector<32x64xf32>
    %27 = tpu.matmul %25, %26, %cst_11 {dimension_numbers = #tpu.dot_dimension_numbers<[1], [0], [0], [1], [0, 0, 1, 1], [], []>} : vector<32x128xbf16>, vector<128x64xbf16>, vector<32x64xf32> -> vector<32x64xf32>
    %c0_12 = arith.constant 0 : index
    %c0_13 = arith.constant 0 : index
    %28 = vector.load %arg5[%c0_12, %c0_13] : memref<1x64xf32, #tpu.memory_space<vmem>>, vector<1x64xf32>
    %29 = vector.broadcast %28 : vector<1x64xf32> to vector<32x64xf32>
    %30 = arith.addf %27, %29 : vector<32x64xf32>
    %c0_14 = arith.constant 0 : index
    %c0_15 = arith.constant 0 : index
    %31 = vector.load %arg6[%c0_14, %c0_15] : memref<32x64xf32, #tpu.memory_space<vmem>>, vector<32x64xf32>
    tpu.vector_store %arg6[%c0_14, %c0_15], %30 {strides = array<i32>} : memref<32x64xf32, #tpu.memory_space<vmem>>, vector<32x64xf32>,
    return
  }
  func.func @transform_0(%arg0: i32) -> (i32, i32) {
    %c0_i32 = arith.constant 0 : i32
    %c0_i32_0 = arith.constant 0 : i32
    %c0_i32_1 = arith.constant 0 : i32
    return %c0_i32, %c0_i32_0 : i32, i32
  }
  func.func @transform_1(%arg0: i32) -> (i32, i32) {
    %c0_i32 = arith.constant 0 : i32
    %c0_i32_0 = arith.constant 0 : i32
    %c0_i32_1 = arith.constant 0 : i32
    return %c0_i32, %c0_i32_0 : i32, i32
  }
  func.func @transform_2(%arg0: i32) -> (i32, i32) {
    %c0_i32 = arith.constant 0 : i32
    %c0_i32_0 = arith.constant 0 : i32
    %c0_i32_1 = arith.constant 0 : i32
    return %c0_i32, %c0_i32_0 : i32, i32
  }
  func.func @transform_3(%arg0: i32) -> (i32, i32) {
    %c0_i32 = arith.constant 0 : i32
    %c0_i32_0 = arith.constant 0 : i32
    %c0_i32_1 = arith.constant 0 : i32
    return %c0_i32, %c0_i32_0 : i32, i32
  }
  func.func @transform_4(%arg0: i32) -> (i32, i32) {
    %c0_i32 = arith.constant 0 : i32
    %c0_i32_0 = arith.constant 0 : i32
    %c0_i32_1 = arith.constant 0 : i32
    return %c0_i32, %c0_i32_0 : i32, i32
  }
  func.func @transform_5(%arg0: i32) -> (i32, i32) {
    %c0_i32 = arith.constant 0 : i32
    %c0_i32_0 = arith.constant 0 : i32
    %c0_i32_1 = arith.constant 0 : i32
    return %c0_i32, %c0_i32_0 : i32, i32
  }
}

</mosaic_0001>

<bundles_post_ra>
// kernel: swin_forward.5
= control target key start
LH: loop header
LB: loop body
LE: loop exit
PB: predicated region body
PF: predicated region fallthrough
CT: control target
= control target key end

     0   :  { %v97_v59 = vlaneseq  ;;  %s578_s0 = inlined_call_operand.vmem [shape: f32[32,256], index: 0, kind: input, shape index: {}]   ;;  %s579_s3 = inlined_call_operand.vmem [shape: bf16[256,128], index: 3, kind: input, shape index: {}]   ;;  %s580_s1 = inlined_call_operand.vmem [shape: f32[1,256], index: 1, kind: input, shape index: {}]   ;;  %s581_s2 = inlined_call_operand.vmem [shape: f32[1,256], index: 2, kind: input, shape index: {}]   ;;  %s582_s4 = inlined_call_operand.vmem [shape: f32[1,128], index: 4, kind: input, shape index: {}]   ;;  %s583_s5 = inlined_call_operand.vmem [shape: f32[32,128], index: 5, kind: output, shape index: {}]  }
   0x1   :  { %v21_v0 = vld [vmem:[%s578_s0] sm:$0xff]  ;;  %v22_v1 = vld [vmem:[%s578_s0 + $0x8] sm:$0xff]  ;;  %v23_v5 = vld [vmem:[%s578_s0 + $0x10] sm:$0xff] }
   0x2   :  { %v25_v2 = vld [vmem:[%s578_s0 + $0x20] sm:$0xff]  ;;  %v31_v3 = vadd.f32 %v22_v1, %v21_v0  ;;  %v26_v4 = vld [vmem:[%s578_s0 + $0x28] sm:$0xff]  ;;  %v24_v6 = vld [vmem:[%s578_s0 + $0x18] sm:$0xff] }
   0x3   :  { %v37_v7 = vadd.f32 %v26_v4, %v25_v2  ;;  %v27_v8 = vld [vmem:[%s578_s0 + $0x30] sm:$0xff]  ;;  %v28_v9 = vld [vmem:[%s578_s0 + $0x38] sm:$0xff]  ;;  %v34_v10 = vadd.f32 %v24_v6, %v23_v5  ;;  %v391_v12 = vld [vmem:[%s579_s3 + $0x40] sm:$0xff]  }
   0x4   :  { %32 = vadd.xlane.f32.xlu0 %v31_v3  ;;  %v40_v11 = vadd.f32 %v28_v9, %v27_v8  ;;  %v392_v13 = vld [vmem:[%s579_s3] sm:$0xff]   ;;  %347 = vmatprep.subr.bf16.mxu0 %v391_v12  ;;  %v393_v42 = vld [vmem:[%s579_s3 + $0x48] sm:$0xff]   ;;  %v395_v44 = vld [vmem:[%s579_s3 + $0x50] sm:$0xff]  }
   0x5   :  { %38 = vadd.xlane.f32.xlu1 %v37_v7  ;;  %375 = vmatprep.subr.bf16.mxu1 %v391_v12  ;;  %v394_v43 = vld [vmem:[%s579_s3 + $0x8] sm:$0xff]   ;;  %v396_v45 = vld [vmem:[%s579_s3 + $0x10] sm:$0xff]   ;;  %v397_v46 = vld [vmem:[%s579_s3 + $0x58] sm:$0xff]  }
   0x6   :  { %348 = vmatpush3.bf16.msra.mxu0 %v392_v13  ;;  %383 = vmatpush3.bf16.msra.mxu1 %v392_v13  ;;  %v398_v47 = vld [vmem:[%s579_s3 + $0x18] sm:$0xff]   ;;  %v399_v48 = vld [vmem:[%s579_s3 + $0x60] sm:$0xff]   ;;  %v401_v50 = vld [vmem:[%s579_s3 + $0x68] sm:$0xff]  }
   0x7   :  { %349 = vmatprep.subr.bf16.mxu0 %v393_v42  ;;  %376 = vmatprep.subr.bf16.mxu1 %v393_v42  ;;  %v400_v49 = vld [vmem:[%s579_s3 + $0x20] sm:$0xff]   ;;  %v402_v51 = vld [vmem:[%s579_s3 + $0x28] sm:$0xff]   ;;  %v403_v52 = vld [vmem:[%s579_s3 + $0x70] sm:$0xff]  }
   0x8   :  { %35 = vadd.xlane.f32.xlu0 %v34_v10  ;;  %v404_v53 = vld [vmem:[%s579_s3 + $0x30] sm:$0xff]   ;;  %v405_v54 = vld [vmem:[%s579_s3 + $0x78] sm:$0xff]   ;;  %v30_v12 = vld [vmem:[%s581_s2] sm:$0x3] }
   0x9   :  { %41 = vadd.xlane.f32.xlu1 %v40_v11  ;;  %v406_v55 = vld [vmem:[%s579_s3 + $0x38] sm:$0xff]  }
   0xa   :  { %350 = vmatpush3.bf16.msra.mxu0 %v394_v43  ;;  %384 = vmatpush3.bf16.msra.mxu1 %v394_v43 }
   0xb   :  { %351 = vmatprep.subr.bf16.mxu0 %v395_v44  ;;  %377 = vmatprep.subr.bf16.mxu1 %v395_v44 }
   0xe   :  { %352 = vmatpush3.bf16.msra.mxu0 %v396_v45  ;;  %385 = vmatpush3.bf16.msra.mxu1 %v396_v45 }
   0xf   :  { %353 = vmatprep.subr.bf16.mxu0 %v397_v46  ;;  %378 = vmatprep.subr.bf16.mxu1 %v397_v46 }
  0x12   :  { %354 = vmatpush3.bf16.msra.mxu0 %v398_v47  ;;  %386 = vmatpush3.bf16.msra.mxu1 %v398_v47 }
  0x13   :  { %355 = vmatprep.subr.bf16.mxu0 %v399_v48  ;;  %379 = vmatprep.subr.bf16.mxu1 %v399_v48 }
  0x16   :  { %356 = vmatpush3.bf16.msra.mxu0 %v400_v49  ;;  %387 = vmatpush3.bf16.msra.mxu1 %v400_v49 }
  0x17   :  { %357 = vmatprep.subr.bf16.mxu0 %v401_v50  ;;  %380 = vmatprep.subr.bf16.mxu1 %v401_v50 }
  0x1a   :  { %358 = vmatpush3.bf16.msra.mxu0 %v402_v51  ;;  %388 = vmatpush3.bf16.msra.mxu1 %v402_v51 }
  0x1b   :  { %359 = vmatprep.subr.bf16.mxu0 %v403_v52  ;;  %381 = vmatprep.subr.bf16.mxu1 %v403_v52 }
  0x1e   :  { %360 = vmatpush3.bf16.msra.mxu0 %v404_v53  ;;  %389 = vmatpush3.bf16.msra.mxu1 %v404_v53 }
  0x1f   :  { %361 = vmatprep.subr.bf16.mxu0 %v405_v54  ;;  %382 = vmatprep.subr.bf16.mxu1 %v405_v54 }
  0x22   :  { %362 = vmatpush3.bf16.msra.mxu0 %v406_v55  ;;  %390 = vmatpush3.bf16.msra.mxu1 %v406_v55 }
  0x91   :  { %v33_v14 = vpop.xlane.xlu0 %32 }
  0x92   :  { %v44_v15 = vmul.f32 0.00390625, %v33_v14  ;;  %v39_v16 = vpop.xlane.xlu1 %38 }
  0x93   :  { %v46_v17 = vmul.f32 0.00390625, %v39_v16 }
  0x94   :  { %v475_v18 = vsub.f32 %v21_v0, %v44_v15  ;;  %v477_v19 = vsub.f32 %v22_v1, %v44_v15 }
  0x95   :  { %v479_v20 = vsub.f32 %v25_v2, %v46_v17  ;;  %v481_v21 = vsub.f32 %v26_v4, %v46_v17  ;;  %v36_v22 = vpop.xlane.xlu0 %35  ;;  %v98_v2 = vshrl.u32 %v97_v59, 7 }
  0x96   :  { %v45_v23 = vmul.f32 0.00390625, %v36_v22  ;;  %v42_v24 = vpop.xlane.xlu1 %41  ;;  %v56_v25 = vmul.f32 %v475_v18, %v475_v18  ;;  %v57_v26 = vmul.f32 %v477_v19, %v477_v19 }
  0x97   :  { %v47_v27 = vmul.f32 0.00390625, %v42_v24  ;;  %v60_v28 = vmul.f32 %v479_v20, %v479_v20  ;;  %v61_v29 = vmul.f32 %v481_v21, %v481_v21  ;;  %v103_v7 = vsub.s32 1, %v98_v2 }
  0x98   :  { %v491_v30 = vsub.f32 %v23_v5, %v45_v23  ;;  %v493_v31 = vsub.f32 %v24_v6, %v45_v23  ;;  %v64_v32 = vadd.f32 %v57_v26, %v56_v25  ;;  %v99_v6 = vsub.s32 0, %v98_v2 }
  0x99   :  { %v495_v33 = vsub.f32 %v27_v8, %v47_v27  ;;  %v497_v34 = vsub.f32 %v28_v9, %v47_v27  ;;  %v70_v35 = vadd.f32 %v61_v29, %v60_v28  ;;  %v29_v8 = vld [vmem:[%s580_s1] sm:$0x3]  ;;  %v123_v22 = vrot.slane %v30_v12, %v103_v7 }
  0x9a   :  { %65 = vadd.xlane.f32.xlu0 %v64_v32  ;;  %v58_v36 = vmul.f32 %v491_v30, %v491_v30  ;;  %v59_v37 = vmul.f32 %v493_v31, %v493_v31  ;;  %v100_v10 = vrot.slane %v29_v8, %v99_v6  ;;  %v104_v11 = vrot.slane %v29_v8, %v103_v7 }
  0x9b   :  { %v62_v38 = vmul.f32 %v495_v33, %v495_v33  ;;  %v63_v39 = vmul.f32 %v497_v34, %v497_v34  ;;  %v119_v17 = vrot.slane %v30_v12, %v99_v6 }
  0x9c   :  { %v67_v40 = vadd.f32 %v59_v37, %v58_v36 }
  0x9d   :  { %v73_v41 = vadd.f32 %v63_v39, %v62_v38 }
  0x9e   :  { %71 = vadd.xlane.f32.xlu0 %v70_v35  ;;  %68 = vadd.xlane.f32.xlu1 %v67_v40 }
  0xa2   :  { %74 = vadd.xlane.f32.xlu1 %v73_v41 }
 0x127   :  { %v66_v56 = vpop.xlane.xlu0 %65 }
 0x128   :  { %v76_v57 = vmul.f32 0.00390625, %v66_v56 }
 0x12a   :  { %v80_v58 = vadd.f32 1e-05, %v76_v57 }
 0x12b   :  { %v69_v60 = vpop.xlane.xlu1 %68  ;;  %v72_v61 = vpop.xlane.xlu0 %71 }
 0x12c   :  { %407 = vrsqrt.f32 %v80_v58  ;;  %v77_v62 = vmul.f32 0.00390625, %v69_v60  ;;  %v78_v63 = vmul.f32 0.00390625, %v72_v61 }
 0x12e   :  { %v81_v0 = vadd.f32 1e-05, %v77_v62  ;;  %v82_v1 = vadd.f32 1e-05, %v78_v63 }
 0x12f   :  { %v75_v3 = vpop.xlane.xlu1 %74 }
 0x130   :  { %409 = vrsqrt.f32 %v81_v0  ;;  %v79_v4 = vmul.f32 0.00390625, %v75_v3 }
 0x131   :  { %411 = vrsqrt.f32 %v82_v1 }
 0x132   :  { %v83_v5 = vadd.f32 1e-05, %v79_v4 }
 0x134   :  { %413 = vrsqrt.f32 %v83_v5 }
 0x136   :  { %v408_v9 = vpop.eup %407 }
 0x137   :  { %v89_v13 = vmul.f32 %v408_v9, %v477_v19  ;;  %v88_v14 = vmul.f32 %v408_v9, %v475_v18 }
 0x139   :  { %v108_v16 = vmul.f32 %v104_v11, %v89_v13  ;;  %v107_v23 = vmul.f32 %v100_v10, %v88_v14 }
 0x13a   :  { %v410_v15 = vpop.eup %409 }
 0x13b   :  { %v412_v24 = vpop.eup %411  ;;  %v91_v25 = vmul.f32 %v410_v15, %v493_v31  ;;  %v90_v26 = vmul.f32 %v410_v15, %v491_v30  ;;  %v127_v19 = vadd.f32 %v123_v22, %v108_v16  ;;  %v126_v36 = vadd.f32 %v119_v17, %v107_v23 }
 0x13c   :  { %v93_v27 = vmul.f32 %v412_v24, %v481_v21  ;;  %v92_v28 = vmul.f32 %v412_v24, %v479_v20 }
 0x13d   :  { %v110_v29 = vmul.f32 %v104_v11, %v91_v25  ;;  %v109_v32 = vmul.f32 %v100_v10, %v90_v26 }
 0x13e   :  { %v414_v35 = vpop.eup %413  ;;  %v112_v18 = vmul.f32 %v104_v11, %v93_v27  ;;  %v111_v37 = vmul.f32 %v100_v10, %v92_v28 }
 0x13f   :  { %v129_v38 = vadd.f32 %v123_v22, %v110_v29  ;;  %v128_v39 = vadd.f32 %v119_v17, %v109_v32  ;;  %v95_v40 = vmul.f32 %v414_v35, %v497_v34  ;;  %v94_v41 = vmul.f32 %v414_v35, %v495_v33  ;;  %v330_v34 = vld [vmem:[%s582_s4] ss:$0 sm:$0xff] }
 0x140   :  { %v131_v21 = vadd.f32 %v123_v22, %v112_v18  ;;  %v130_v44 = vadd.f32 %v119_v17, %v111_v37 }
 0x141   :  { %v135_v31 = vpack.c.bf16 %v129_v38, %v127_v19  ;;  %v134_v42 = vpack.c.bf16 %v128_v39, %v126_v36  ;;  %v114_v30 = vmul.f32 %v104_v11, %v95_v40  ;;  %v113_v43 = vmul.f32 %v100_v10, %v94_v41 }
 0x143   :  { %305 = vmatprep.mubr.bf16.mxu0 %v135_v31  ;;  %v133_v20 = vadd.f32 %v123_v22, %v114_v30  ;;  %v132_v45 = vadd.f32 %v119_v17, %v113_v43 }
 0x144   :  { %306 = vmatmul.mubr.bf16.vlgmr.msra.gmra.mrb[0].mxu0 %v134_v42 }
 0x145   :  { %v137_v46 = vpack.c.bf16 %v133_v20, %v131_v21  ;;  %v136_v47 = vpack.c.bf16 %v132_v45, %v130_v44 }
 0x147   :  { %313 = vmatprep.mubr.bf16.mxu1 %v137_v46 }
 0x148   :  { %314 = vmatmul.mubr.bf16.vlgmr.msra.gmra.mrb[0].mxu1 %v136_v47 }
 0x217   :  { %v363_v48 = vpop.f32.mrb[0].mxu0 }
 0x218   :  { %v364_v33 = vpop.f32.mrb[1].mxu0 }
 0x219   :  { %v365_v49 = vadd.f32 %v364_v33, %v363_v48  ;;  %v366_v50 = vpop.f32.mrb[2].mxu0 }
 0x21a   :  { %v367_v51 = vpop.f32.mrb[3].mxu0 }
 0x21b   :  { %v308_v52 = vadd.f32 %v365_v49, %v330_v34  ;;  %v368_v53 = vadd.f32 %v367_v51, %v366_v50  ;;  %v369_v54 = vpop.f32.mrb[0].mxu1 }
 0x21c   :  { %v370_v55 = vpop.f32.mrb[1].mxu1 }
 0x21d   :  { %322 = vst [vmem:[%s583_s5] sm:$0xff] %v308_v52  ;;  %v311_v56 = vadd.f32 %v368_v53, %v330_v34  ;;  %v371_v57 = vadd.f32 %v370_v55, %v369_v54  ;;  %v372_v58 = vpop.f32.mrb[2].mxu1 }
 0x21e   :  { %v373_v59 = vpop.f32.mrb[3].mxu1 }
 0x21f   :  { %323 = vst [vmem:[%s583_s5 + $0x8] sm:$0xff] %v311_v56  ;;  %v316_v60 = vadd.f32 %v371_v57, %v330_v34  ;;  %v374_v61 = vadd.f32 %v373_v59, %v372_v58 }
 0x221   :  { %324 = vst [vmem:[%s583_s5 + $0x10] sm:$0xff] %v316_v60  ;;  %v319_v62 = vadd.f32 %v374_v61, %v330_v34 }
 0x223   :  { %325 = vst [vmem:[%s583_s5 + $0x18] sm:$0xff] %v319_v62 }

// kernel: swin_forward.7
= control target key start
LH: loop header
LB: loop body
LE: loop exit
PB: predicated region body
PF: predicated region fallthrough
CT: control target
= control target key end

     0   :  { %vm214_vm0 = vcmask 523264   ;;  %s367_s0 = inlined_call_operand.vmem [shape: f32[32,128], index: 0, kind: input, shape index: {}]   ;;  %s368_s3 = inlined_call_operand.vmem [shape: bf16[128,64], index: 3, kind: input, shape index: {}]   ;;  %s369_s1 = inlined_call_operand.vmem [shape: f32[1,128], index: 1, kind: input, shape index: {}]   ;;  %s370_s2 = inlined_call_operand.vmem [shape: f32[1,128], index: 2, kind: input, shape index: {}]   ;;  %s371_s4 = inlined_call_operand.vmem [shape: f32[1,64], index: 4, kind: input, shape index: {}]   ;;  %s372_s5 = inlined_call_operand.vmem [shape: f32[32,64], index: 5, kind: output, shape index: {}]  }
   0x1   :  { %v21_v0 = vld [vmem:[%s367_s0] sm:$0xff]  ;;  %v23_v1 = vld [vmem:[%s367_s0 + $0x10] sm:$0xff]  ;;  %v22_v2 = vld [vmem:[%s367_s0 + $0x8] sm:$0xff] }
   0x2   :  { %27 = vadd.xlane.f32.xlu0 %v21_v0  ;;  %31 = vadd.xlane.f32.xlu1 %v23_v1  ;;  %v24_v3 = vld [vmem:[%s367_s0 + $0x18] sm:$0xff]  ;;  %v264_v4 = vld [vmem:[%s368_s3] sm:$0xff]   ;;  %v265_v21 = vld [vmem:[%s368_s3 + $0x8] sm:$0xff]  }
   0x3   :  { %244 = vmatprep.subr.bf16.mxu0 %v264_v4  ;;  %v266_v22 = vld [vmem:[%s368_s3 + $0x10] sm:$0xff]   ;;  %v267_v23 = vld [vmem:[%s368_s3 + $0x18] sm:$0xff]   ;;  %v268_v24 = vld [vmem:[%s368_s3 + $0x20] sm:$0xff]  }
   0x4   :  { %245 = vmatpush3.bf16.msra.mxu0 %v264_v4  ;;  %v269_v25 = vld [vmem:[%s368_s3 + $0x28] sm:$0xff]   ;;  %v270_v26 = vld [vmem:[%s368_s3 + $0x30] sm:$0xff]   ;;  %v271_v27 = vld [vmem:[%s368_s3 + $0x38] sm:$0xff]  }
   0x5   :  { %246 = vmatprep.subr.bf16.mxu0 %v265_v21  ;;  %v223_v42 = vld [vmem:[%s369_s1] ss:$0 sm:$0xff] }
   0x6   :  { %29 = vadd.xlane.f32.xlu0 %v22_v2  ;;  %33 = vadd.xlane.f32.xlu1 %v24_v3  ;;  %v224_v47 = vld [vmem:[%s370_s2] ss:$0 sm:$0xff] }
   0x7   :  { %v225_v60 = vld [vmem:[%s371_s4] ss:$0 sm:$0xff] }
   0x8   :  { %247 = vmatpush3.bf16.msra.mxu0 %v265_v21 }
   0x9   :  { %248 = vmatprep.subr.bf16.mxu0 %v266_v22 }
   0xc   :  { %249 = vmatpush3.bf16.msra.mxu0 %v266_v22 }
   0xd   :  { %250 = vmatprep.subr.bf16.mxu0 %v267_v23 }
  0x10   :  { %251 = vmatpush3.bf16.msra.mxu0 %v267_v23 }
  0x11   :  { %252 = vmatprep.subr.bf16.mxu0 %v268_v24 }
  0x14   :  { %253 = vmatpush3.bf16.msra.mxu0 %v268_v24 }
  0x15   :  { %254 = vmatprep.subr.bf16.mxu0 %v269_v25 }
  0x18   :  { %255 = vmatpush3.bf16.msra.mxu0 %v269_v25 }
  0x19   :  { %256 = vmatprep.subr.bf16.mxu0 %v270_v26 }
  0x1c   :  { %257 = vmatpush3.bf16.msra.mxu0 %v270_v26 }
  0x1d   :  { %258 = vmatprep.subr.bf16.mxu0 %v271_v27 }
  0x20   :  { %259 = vmatpush3.bf16.msra.mxu0 %v271_v27 }
  0x8f   :  { %v28_v5 = vpop.xlane.xlu0 %27  ;;  %v32_v6 = vpop.xlane.xlu1 %31 }
  0x90   :  { %v36_v7 = vmul.f32 0.0078125, %v28_v5  ;;  %v38_v8 = vmul.f32 0.0078125, %v32_v6 }
  0x92   :  { %v40_v9 = vsub.f32 %v21_v0, %v36_v7  ;;  %v42_v10 = vsub.f32 %v23_v1, %v38_v8 }
  0x93   :  { %v30_v11 = vpop.xlane.xlu0 %29  ;;  %v34_v12 = vpop.xlane.xlu1 %33 }
  0x94   :  { %v37_v13 = vmul.f32 0.0078125, %v30_v11  ;;  %v44_v14 = vmul.f32 %v40_v9, %v40_v9  ;;  %v39_v15 = vmul.f32 0.0078125, %v34_v12  ;;  %v46_v18 = vmul.f32 %v42_v10, %v42_v10 }
  0x96   :  { %v41_v16 = vsub.f32 %v22_v2, %v37_v13  ;;  %48 = vadd.xlane.f32.xlu0 %v44_v14  ;;  %v43_v17 = vsub.f32 %v24_v3, %v39_v15 }
  0x98   :  { %v45_v19 = vmul.f32 %v41_v16, %v41_v16  ;;  %v47_v20 = vmul.f32 %v43_v17, %v43_v17 }
  0x9a   :  { %52 = vadd.xlane.f32.xlu0 %v46_v18  ;;  %50 = vadd.xlane.f32.xlu1 %v45_v19 }
  0x9e   :  { %54 = vadd.xlane.f32.xlu1 %v47_v20 }
 0x123   :  { %v49_v28 = vpop.xlane.xlu0 %48 }
 0x124   :  { %v56_v29 = vmul.f32 0.0078125, %v49_v28 }
 0x126   :  { %v60_v30 = vadd.f32 1e-05, %v56_v29 }
 0x127   :  { %v51_v31 = vpop.xlane.xlu1 %50  ;;  %v53_v32 = vpop.xlane.xlu0 %52 }
 0x128   :  { %272 = vrsqrt.f32 %v60_v30  ;;  %v57_v33 = vmul.f32 0.0078125, %v51_v31  ;;  %v58_v34 = vmul.f32 0.0078125, %v53_v32 }
 0x12a   :  { %v61_v35 = vadd.f32 1e-05, %v57_v33  ;;  %v62_v36 = vadd.f32 1e-05, %v58_v34 }
 0x12b   :  { %v55_v37 = vpop.xlane.xlu1 %54 }
 0x12c   :  { %274 = vrsqrt.f32 %v61_v35  ;;  %v59_v38 = vmul.f32 0.0078125, %v55_v37 }
 0x12d   :  { %276 = vrsqrt.f32 %v62_v36 }
 0x12e   :  { %v63_v39 = vadd.f32 1e-05, %v59_v38 }
 0x130   :  { %278 = vrsqrt.f32 %v63_v39 }
 0x132   :  { %v273_v40 = vpop.eup %272 }
 0x133   :  { %v68_v41 = vmul.f32 %v273_v40, %v40_v9 }
 0x135   :  { %v78_v46 = vmul.f32 %v223_v42, %v68_v41 }
 0x136   :  { %v275_v43 = vpop.eup %274 }
 0x137   :  { %v277_v44 = vpop.eup %276  ;;  %v69_v45 = vmul.f32 %v275_v43, %v41_v16  ;;  %v88_v51 = vadd.f32 %v224_v47, %v78_v46 }
 0x138   :  { %v70_v48 = vmul.f32 %v277_v44, %v42_v10 }
 0x139   :  { %v79_v49 = vmul.f32 %v223_v42, %v69_v45 }
 0x13a   :  { %v279_v50 = vpop.eup %278  ;;  %v80_v54 = vmul.f32 %v223_v42, %v70_v48 }
 0x13b   :  { %v89_v52 = vadd.f32 %v224_v47, %v79_v49  ;;  %v71_v53 = vmul.f32 %v279_v50, %v43_v17 }
 0x13c   :  { %v90_v57 = vadd.f32 %v224_v47, %v80_v54 }
 0x13d   :  { %v92_v55 = vpack.c.bf16 %v89_v52, %v88_v51  ;;  %v81_v56 = vmul.f32 %v223_v42, %v71_v53 }
 0x13f   :  { %260 = vmatprep.mubr.bf16.mxu0 %v92_v55  ;;  %v91_v58 = vadd.f32 %v224_v47, %v81_v56 }
 0x141   :  { %v93_v59 = vpack.c.bf16 %v91_v58, %v90_v57 }
 0x143   :  { %261 = vmatmul.mubr.bf16.vlgmr.msra.gmra.mrb[0].mxu0 %v93_v59 }
 0x216   :  { %v262_v61 = vpop.f32.mrb[0].mxu0 }
 0x217   :  { %v208_v62 = vadd.f32 %v262_v61, %v225_v60  ;;  %v199_v63 = vpop.f32.mrb[1].mxu0 }
 0x218   :  { %v200_v0 = vadd.f32 %v225_v60, %v199_v63  ;;  %v263_v1 = vpop.f32.mrb[2].mxu0 }
 0x219   :  { %217 = vst.msk [vmem:[%s372_s5 + $0x10] sm:$0xff] %vm214_vm0, %v208_v62  ;;  %v211_v2 = vadd.f32 %v263_v1, %v225_v60  ;;  %v202_v3 = vpop.f32.mrb[3].mxu0 }
 0x21a   :  { %215 = vst.msk [vmem:[%s372_s5] sm:$0xff] %vm214_vm0, %v200_v0  ;;  %v203_v4 = vadd.f32 %v225_v60, %v202_v3 }
 0x21b   :  { %218 = vst.msk [vmem:[%s372_s5 + $0x18] sm:$0xff] %vm214_vm0, %v211_v2 }
 0x21c   :  { %216 = vst.msk [vmem:[%s372_s5 + $0x8] sm:$0xff] %vm214_vm0, %v203_v4 }

// kernel: swin_forward.4
= control target key start
LH: loop header
LB: loop body
LE: loop exit
PB: predicated region body
PF: predicated region fallthrough
CT: control target
= control target key end

     0   :  { %s3717_s29 = smov 0   ;;  %s3719_s30 = smov 0   ;;  %s4488_s0 = inlined_call_operand.vmem [shape: f32[2,64,16], index: 0, kind: input, shape index: {}]   ;;  %s4489_s1 = inlined_call_operand.vmem [shape: bf16[16,64], index: 1, kind: input, shape index: {}]   ;;  %s4490_s2 = inlined_call_operand.vmem [shape: f32[1,64], index: 2, kind: input, shape index: {}]   ;;  %s4491_s3 = inlined_call_operand.vmem [shape: f32[2,1,64], index: 3, kind: input, shape index: {}]   ;;  %s4492_s4 = inlined_call_operand.vmem [shape: f32[2,1,64], index: 4, kind: input, shape index: {}]   ;;  %s4493_s5 = inlined_call_operand.vmem [shape: bf16[2,6,64,32], index: 5, kind: input, shape index: {}]   ;;  %s4494_s6 = inlined_call_operand.vmem [shape: bf16[2,2,32,64], index: 6, kind: input, shape index: {}]   ;;  %s4495_s7 = inlined_call_operand.vmem [shape: f32[2,1,64], index: 7, kind: input, shape index: {}]   ;;  %s4496_s8 = inlined_call_operand.vmem [shape: f32[2,1,64], index: 8, kind: input, shape index: {}]   ;;  %s4497_s9 = inlined_call_operand.vmem [shape: f32[2,1,64], index: 9, kind: input, shape index: {}]   ;;  %s4498_s10 = inlined_call_operand.vmem [shape: bf16[2,64,256], index: 10, kind: input, shape index: {}]   ;;  %s4499_s11 = inlined_call_operand.vmem [shape: f32[2,1,256], index: 11, kind: input, shape index: {}]   ;;  %s4500_s12 = inlined_call_operand.vmem [shape: bf16[2,256,64], index: 12, kind: input, shape index: {}]   ;;  %s4501_s13 = inlined_call_operand.vmem [shape: f32[2,1,64], index: 13, kind: input, shape index: {}]   ;;  %s4502_s14 = inlined_call_operand.vmem [shape: f32[2,64,64], index: 14, kind: output, shape index: {}]  }
   0x1   :  { %s3721_s15 = smov 0   ;;  %s3723_s16 = smov 0  }
   0x2   :  { %s3725_s17 = smov 0  }
   0x3 LB: > { %s33_s18 = sadd.s32 1, %s3631_s15  ;;  %s36_s19 = sadd.s32 1, %s3635_s16  ;;  %s3639_s17 = sphi %s3725_s17, %s24_s17   ;;  %s3635_s16 = sphi %s3723_s16, %s4506_s16   ;;  %s3631_s15 = sphi %s3721_s15, %s4505_s15   ;;  %s3627_s30 = sphi %s3719_s30, %s4504_s30   ;;  %s3623_s29 = sphi %s3717_s29, %s4503_s29  }
   0x4   : > { %p34_p0 = scmp.ge.s32.totalorder %s33_s18, 2  ;;  %p2880_p1 = scmp.ge.s32.totalorder %s3639_s17, 1 }
   0x5   : > { %p424_p2 = scmp.lt.s32.totalorder %s3639_s17, 5 }
   0x6   : > { %s4508_s18 = smov (%p34_p0, %s33_s18), 0  ;;  %s4510_s19 = smov (!%p34_p0, %s36_s19), %s3635_s16 }
   0x7   : > { %p425_p3 = pnand %p2880_p1, %p424_p2  ;;  %p38_p4 = scmp.ge.s32.totalorder %s4510_s19, 2 }
   0x8   : > { %p470_p5 = scmp.lt.s32.totalorder (!%p425_p3), %s3627_s30, 1  ;;  %p2885_p6 = scmp.ne.s32.totalorder (!%p425_p3), %s3623_s29, 0 }
   0x9   : > { %s4512_s19 = smov (%p38_p4, %s4510_s19), 0  ;;  %428 = sbr.rel (%p425_p3) target bundleno = 2633 (0xa49), region = 76 }
  0x10   : > { %s4514_s30 = smov (!%p470_p5, %s3627_s30), 1  ;;  %484 = sbr.rel (%p2885_p6) target bundleno = 242 (0xf2), region = 80 }
  0x11   : > { %s3012_s20 = sshll.u32 %s4514_s30, 6  ;;  %v3408_v0 = vld [vmem:[%s4489_s1] sm:$0xff] (!%p2885_p6)   ;;  %vm512_vm0 = vcmask (!%p2885_p6), 130048   ;;  %vm590_vm1 = vcmask (!%p2885_p6), 523264  }
  0x12   : > { %s474_s23 = scalar_lea.vmem %s4488_s0, %s3012_s20  ;;  %s3755_s26 = scalar_lea.vmem %s4502_s14, %s3012_s20  ;;  %3155 = vmatprep.subr.bf16.mxu0 (!%p2885_p6), %v3408_v0  ;;  %3349 = vmatprep.subr.bf16.mxu1 (!%p2885_p6), %v3408_v0  ;;  %v2886_v13 = vld [vmem:[%s4490_s2] ss:$0 sm:$0xff] (!%p2885_p6) }
  0x13   : > { %v485_v1 = vld [vmem:[%s474_s23] sm:$0xff] (!%p2885_p6)  ;;  %v486_v2 = vld [vmem:[%s474_s23 + $0x8] sm:$0xff] (!%p2885_p6)  ;;  %v487_v6 = vld [vmem:[%s474_s23 + $0x10] sm:$0xff] (!%p2885_p6)  ;;  %3156 = vmatpush3.bf16.msra.mxu0 (!%p2885_p6), %v3408_v0  ;;  %3350 = vmatpush3.bf16.msra.mxu1 (!%p2885_p6), %v3408_v0 }
  0x14   : > { %v489_v3 = vld [vmem:[%s474_s23 + $0x20] sm:$0xff] (!%p2885_p6)  ;;  %v493_v4 = vpack.c.bf16 (!%p2885_p6), %v486_v2, %v485_v1  ;;  %v490_v5 = vld [vmem:[%s474_s23 + $0x28] sm:$0xff] (!%p2885_p6)  ;;  %v488_v7 = vld [vmem:[%s474_s23 + $0x18] sm:$0xff] (!%p2885_p6) }
  0x15   : > { %v495_v8 = vpack.c.bf16 (!%p2885_p6), %v490_v5, %v489_v3  ;;  %v494_v9 = vpack.c.bf16 (!%p2885_p6), %v488_v7, %v487_v6  ;;  %v491_v10 = vld [vmem:[%s474_s23 + $0x30] sm:$0xff] (!%p2885_p6)  ;;  %v492_v11 = vld [vmem:[%s474_s23 + $0x38] sm:$0xff] (!%p2885_p6) }
  0x16   : > { %3157 = vmatprep.mubr.msk.bf16.mxu0 (!%p2885_p6), %vm512_vm0, %v493_v4  ;;  %v496_v12 = vpack.c.bf16 (!%p2885_p6), %v492_v11, %v491_v10 }
  0x17   : > { %3161 = vmatprep.mubr.msk.bf16.mxu1 %vm512_vm0, %v495_v8  ;;  %3158 = vmatmul.mubr.msk.bf16.vlgmr.msra.gmra.mrb[0].mxu0 %vm512_vm0, %v494_v9 }
  0x18   : > { %3162 = vmatmul.mubr.msk.bf16.vlgmr.msra.gmra.mrb[0].mxu1 %vm512_vm0, %v496_v12 }
  0xea   : > { %v3159_v14 = vpop.f32.mrb[0].mxu0 }
  0xeb   : > { %v3163_v15 = vpop.f32.mrb[0].mxu1  ;;  %v568_v16 = vadd.f32 %v3159_v14, %v2886_v13  ;;  %v559_v18 = vpop.f32.mrb[1].mxu0 }
  0xec   : > { %v584_v17 = vadd.f32 %v3163_v15, %v2886_v13  ;;  %v575_v19 = vpop.f32.mrb[1].mxu1  ;;  %v560_v20 = vadd.f32 %v2886_v13, %v559_v18  ;;  %v3160_v22 = vpop.f32.mrb[2].mxu0 }
  0xed   : > { %v576_v21 = vadd.f32 %v2886_v13, %v575_v19  ;;  %v3164_v23 = vpop.f32.mrb[2].mxu1  ;;  %593 = vst.msk [vmem:[%s3755_s26 + $0x10] sm:$0xff] %vm590_vm1, %v568_v16  ;;  %v571_v24 = vadd.f32 %v3160_v22, %v2886_v13  ;;  %v562_v26 = vpop.f32.mrb[3].mxu0 }
  0xee   : > { %597 = vst.msk [vmem:[%s3755_s26 + $0x30] sm:$0xff] %vm590_vm1, %v584_v17  ;;  %v587_v25 = vadd.f32 %v3164_v23, %v2886_v13  ;;  %v578_v27 = vpop.f32.mrb[3].mxu1  ;;  %591 = vst.msk [vmem:[%s3755_s26] sm:$0xff] %vm590_vm1, %v560_v20  ;;  %v563_v28 = vadd.f32 %v2886_v13, %v562_v26 }
  0xef   : > { %595 = vst.msk [vmem:[%s3755_s26 + $0x20] sm:$0xff] %vm590_vm1, %v576_v21  ;;  %v579_v29 = vadd.f32 %v2886_v13, %v578_v27  ;;  %594 = vst.msk [vmem:[%s3755_s26 + $0x18] sm:$0xff] %vm590_vm1, %v571_v24 }
  0xf0   : > { %598 = vst.msk [vmem:[%s3755_s26 + $0x38] sm:$0xff] %vm590_vm1, %v587_v25  ;;  %592 = vst.msk [vmem:[%s3755_s26 + $0x8] sm:$0xff] %vm590_vm1, %v563_v28 }
  0xf1   : > { %596 = vst.msk [vmem:[%s3755_s26 + $0x28] sm:$0xff] %vm590_vm1, %v579_v29 }
  0xf2 PF: > { %vm719_vm2 = vcmask 523264   ;;  %s3014_s21 = smul.u32 192, %s3623_s29  ;;  %s715_s28 = scalar_lea.vmem %s4491_s3, %s3623_s29  ;;  %vm1427_vm3 = vcmask 261120  }
  0xf3   : > { %s3015_s22 = sshll.u32 %s3623_s29, 5  ;;  %s2130_s30 = scalar_lea.vmem %s4495_s7, %s3623_s29 }
  0xf4   : > { %v601_v31 = vld [vmem:[%s3755_s26 + $0x10] sm:$0xff]  ;;  %s3844_s24 = scalar_lea.vmem %s4493_s5, %s3014_s21  ;;  %s717_s21 = scalar_lea.vmem %s4492_s4, %s3623_s29 }
  0xf5   : > { %v599_v30 = vld [vmem:[%s3755_s26] sm:$0xff]  ;;  %v726_v34 = vsel %vm719_vm2, %v601_v31, 0.0  ;;  %v605_v42 = vld [vmem:[%s3755_s26 + $0x30] sm:$0xff]  ;;  %v3411_v24 = vld [vmem:[%s3844_s24 + $0x8] sm:$0xff]   ;;  %s4145_s25 = scalar_lea.vmem %s4494_s6, %s3015_s22  ;;  %s3016_s20 = sshll.u32 %s3623_s29, 6 }
  0xf6   : > { %v720_v33 = vsel %vm719_vm2, %v599_v30, 0.0  ;;  %v602_v35 = vld [vmem:[%s3755_s26 + $0x18] sm:$0xff]  ;;  %727 = vadd.xlane.f32.xlu1 %v726_v34  ;;  %v603_v38 = vld [vmem:[%s3755_s26 + $0x20] sm:$0xff]  ;;  %v738_v44 = vsel %vm719_vm2, %v605_v42, 0.0  ;;  %v3412_v25 = vld [vmem:[%s3844_s24 + $0x28] sm:$0xff]   ;;  %s671_s23 = scalar_lea.vmem %s4498_s10, %s3016_s20  ;;  %s2178_s27 = scalar_lea.vmem %s4496_s8, %s3623_s29 }
  0xf7   : > { %v600_v32 = vld [vmem:[%s3755_s26 + $0x8] sm:$0xff]  ;;  %721 = vadd.xlane.f32.xlu0 %v720_v33  ;;  %v729_v37 = vsel %vm719_vm2, %v602_v35, 0.0  ;;  %v732_v40 = vsel %vm719_vm2, %v603_v38, 0.0  ;;  %v606_v43 = vld [vmem:[%s3755_s26 + $0x38] sm:$0xff]  ;;  %v3409_v22 = vld [vmem:[%s3844_s24] sm:$0xff]   ;;  %s2180_s20 = scalar_lea.vmem %s4497_s9, %s3623_s29  ;;  %s2609_s22 = scalar_lea.vmem %s4501_s13, %s3623_s29 }
  0xf8   : > { %v723_v36 = vsel %vm719_vm2, %v600_v32, 0.0  ;;  %v604_v39 = vld [vmem:[%s3755_s26 + $0x28] sm:$0xff]  ;;  %v741_v45 = vsel %vm719_vm2, %v606_v43, 0.0  ;;  %v3410_v23 = vld [vmem:[%s3844_s24 + $0x20] sm:$0xff]   ;;  %3165 = vmatprep.subr.bf16.mxu0 %v3409_v22  ;;  %v3413_v26 = vld [vmem:[%s3844_s24 + $0x10] sm:$0xff]  }
  0xf9   : > { %v735_v41 = vsel %vm719_vm2, %v604_v39, 0.0  ;;  %3166 = vmatpush3.bf16.msra.mxu0 %v3409_v22  ;;  %3181 = vmatprep.subr.bf16.mxu1 %v3410_v23  ;;  %v3414_v27 = vld [vmem:[%s3844_s24 + $0x30] sm:$0xff]   ;;  %v3415_v28 = vld [vmem:[%s3844_s24 + $0x18] sm:$0xff]  }
  0xfa   : > { %730 = vadd.xlane.f32.xlu1 %v729_v37  ;;  %3182 = vmatpush3.bf16.msra.mxu1 %v3410_v23  ;;  %v3416_v29 = vld [vmem:[%s3844_s24 + $0x38] sm:$0xff]   ;;  %v3419_v23 = vld [vmem:[%s3844_s24 + $0x48] sm:$0xff]  }
  0xfb   : > { %724 = vadd.xlane.f32.xlu0 %v723_v36  ;;  %3167 = vmatprep.subr.bf16.mxu0 %v3411_v24 }
  0xfc   : > { %3183 = vmatprep.subr.bf16.mxu1 %v3412_v25 }
  0xfd   : > { %3168 = vmatpush3.bf16.msra.mxu0 %v3411_v24  ;;  %v3420_v24 = vld [vmem:[%s3844_s24 + $0x68] sm:$0xff]  }
  0xfe   : > { %736 = vadd.xlane.f32.xlu1 %v735_v41  ;;  %3184 = vmatpush3.bf16.msra.mxu1 %v3412_v25 }
  0xff   : > { %733 = vadd.xlane.f32.xlu0 %v732_v40  ;;  %3169 = vmatprep.subr.bf16.mxu0 %v3413_v26 }
 0x100   : > { %3185 = vmatprep.subr.bf16.mxu1 %v3414_v27 }
 0x101   : > { %3170 = vmatpush3.bf16.msra.mxu0 %v3413_v26 }
 0x102   : > { %742 = vadd.xlane.f32.xlu1 %v741_v45  ;;  %3186 = vmatpush3.bf16.msra.mxu1 %v3414_v27 }
 0x103   : > { %739 = vadd.xlane.f32.xlu0 %v738_v44  ;;  %3171 = vmatprep.subr.bf16.mxu0 %v3415_v28 }
 0x104   : > { %3187 = vmatprep.subr.bf16.mxu1 %v3416_v29 }
 0x105   : > { %3172 = vmatpush3.bf16.msra.mxu0 %v3415_v28 }
 0x106   : > { %3188 = vmatpush3.bf16.msra.mxu1 %v3416_v29 }
 0x183   : > { %v728_v47 = vpop.xlane.xlu1 %727 }
 0x184   : > { %v722_v46 = vpop.xlane.xlu0 %721  ;;  %v747_v49 = vmul.f32 0.015625, %v728_v47 }
 0x185   : > { %v745_v48 = vmul.f32 0.015625, %v722_v46 }
 0x186   : > { %v3802_v51 = vsub.f32 %v601_v31, %v747_v49  ;;  %v3858_v31 = vld [vmem:[%s3844_s24 + $0x60] sm:$0xff]  }
 0x187   : > { %v3800_v50 = vsub.f32 %v599_v30, %v745_v48  ;;  %v731_v53 = vpop.xlane.xlu1 %730  ;;  %v3855_v30 = vld [vmem:[%s3844_s24 + $0x40] sm:$0xff]   ;;  %3213 = vmatprep.subr.bf16.mxu1 %v3858_v31 }
 0x188   : > { %v725_v52 = vpop.xlane.xlu0 %724  ;;  %v748_v55 = vmul.f32 0.015625, %v731_v53  ;;  %v763_v57 = vmul.f32 %v3802_v51, %v3802_v51  ;;  %3197 = vmatprep.subr.bf16.mxu0 %v3855_v30 }
 0x189   : > { %v746_v54 = vmul.f32 0.015625, %v725_v52  ;;  %v761_v56 = vmul.f32 %v3800_v50, %v3800_v50 }
 0x18a   : > { %v3810_v59 = vsub.f32 %v602_v35, %v748_v55  ;;  %v775_v63 = vsel %vm719_vm2, %v763_v57, 0.0 }
 0x18b   : > { %v3808_v58 = vsub.f32 %v600_v32, %v746_v54  ;;  %v769_v60 = vsel %vm719_vm2, %v761_v56, 0.0  ;;  %v737_v62 = vpop.xlane.xlu1 %736 }
 0x18c   : > { %770 = vadd.xlane.f32.xlu0 %v769_v60  ;;  %v734_v61 = vpop.xlane.xlu0 %733  ;;  %v750_v1 = vmul.f32 0.015625, %v737_v62  ;;  %v764_v3 = vmul.f32 %v3810_v59, %v3810_v59  ;;  %v2899_v60 = vld [vmem:[%s715_s28] ss:$0 sm:$0xff] }
 0x18d   : > { %v749_v0 = vmul.f32 0.015625, %v734_v61  ;;  %v762_v2 = vmul.f32 %v3808_v58, %v3808_v58 }
 0x18e   : > { %v3820_v5 = vsub.f32 %v604_v39, %v750_v1  ;;  %v778_v9 = vsel %vm719_vm2, %v764_v3, 0.0  ;;  %v2900_v3 = vld [vmem:[%s717_s21] ss:$0 sm:$0xff]  ;;  %s3017_s21 = sshll.u32 %s3623_s29, 7 }
 0x18f   : > { %v3818_v4 = vsub.f32 %v603_v38, %v749_v0  ;;  %v772_v6 = vsel %vm719_vm2, %v762_v2, 0.0  ;;  %v743_v8 = vpop.xlane.xlu1 %742 }
 0x190   : > { %776 = vadd.xlane.f32.xlu0 %v775_v63  ;;  %773 = vadd.xlane.f32.xlu1 %v772_v6  ;;  %v740_v7 = vpop.xlane.xlu0 %739  ;;  %v752_v11 = vmul.f32 0.015625, %v743_v8  ;;  %v766_v13 = vmul.f32 %v3820_v5, %v3820_v5 }
 0x191   : > { %v751_v10 = vmul.f32 0.015625, %v740_v7  ;;  %v765_v12 = vmul.f32 %v3818_v4, %v3818_v4 }
 0x192   : > { %v3830_v15 = vsub.f32 %v606_v43, %v752_v11  ;;  %v784_v17 = vsel %vm719_vm2, %v766_v13, 0.0 }
 0x193   : > { %v3828_v14 = vsub.f32 %v605_v42, %v751_v10  ;;  %v781_v16 = vsel %vm719_vm2, %v765_v12, 0.0 }
 0x194   : > { %779 = vadd.xlane.f32.xlu1 %v778_v9  ;;  %782 = vadd.xlane.f32.xlu0 %v781_v16  ;;  %v768_v19 = vmul.f32 %v3830_v15, %v3830_v15 }
 0x195   : > { %v767_v18 = vmul.f32 %v3828_v14, %v3828_v14 }
 0x196   : > { %v790_v21 = vsel %vm719_vm2, %v768_v19, 0.0 }
 0x197   : > { %v787_v20 = vsel %vm719_vm2, %v767_v18, 0.0 }
 0x198   : > { %785 = vadd.xlane.f32.xlu1 %v784_v17  ;;  %788 = vadd.xlane.f32.xlu0 %v787_v20 }
 0x19c   : > { %791 = vadd.xlane.f32.xlu1 %v790_v21 }
 0x219   : > { %v771_v32 = vpop.xlane.xlu0 %770 }
 0x21a   : > { %v793_v33 = vmul.f32 0.015625, %v771_v32  ;;  %v3421_v32 = vld [vmem:[%s3844_s24 + $0x50] sm:$0xff]  }
 0x21c   : > { %v801_v34 = vadd.f32 1e-05, %v793_v33  ;;  %v3422_v33 = vld [vmem:[%s3844_s24 + $0x70] sm:$0xff]  }
 0x21d   : > { %v774_v35 = vpop.xlane.xlu1 %773  ;;  %v777_v36 = vpop.xlane.xlu0 %776 }
 0x21e   : > { %3465 = vrsqrt.f32 %v801_v34  ;;  %v794_v37 = vmul.f32 0.015625, %v774_v35  ;;  %v795_v38 = vmul.f32 0.015625, %v777_v36  ;;  %v3424_v35 = vld [vmem:[%s3844_s24 + $0x78] sm:$0xff]   ;;  %v3425_v36 = vld [vmem:[%s3844_s24 + $0x80] sm:$0xff]  }
 0x220   : > { %v802_v39 = vadd.f32 1e-05, %v794_v37  ;;  %v803_v40 = vadd.f32 1e-05, %v795_v38  ;;  %v3426_v37 = vld [vmem:[%s3844_s24 + $0xa0] sm:$0xff]   ;;  %v3427_v38 = vld [vmem:[%s3844_s24 + $0x88] sm:$0xff]  }
 0x221   : > { %v780_v41 = vpop.xlane.xlu1 %779  ;;  %v783_v42 = vpop.xlane.xlu0 %782 }
 0x222   : > { %3467 = vrsqrt.f32 %v802_v39  ;;  %v796_v43 = vmul.f32 0.015625, %v780_v41  ;;  %v797_v44 = vmul.f32 0.015625, %v783_v42  ;;  %v3428_v39 = vld [vmem:[%s3844_s24 + $0xa8] sm:$0xff]   ;;  %v3430_v41 = vld [vmem:[%s3844_s24 + $0xb0] sm:$0xff]   ;;  %v3431_v42 = vld [vmem:[%s3844_s24 + $0x98] sm:$0xff]  }
 0x223   : > { %3469 = vrsqrt.f32 %v803_v40  ;;  %v3429_v40 = vld [vmem:[%s3844_s24 + $0x90] sm:$0xff]  }
 0x224   : > { %v804_v45 = vadd.f32 1e-05, %v796_v43  ;;  %v805_v46 = vadd.f32 1e-05, %v797_v44  ;;  %v3432_v43 = vld [vmem:[%s3844_s24 + $0xb8] sm:$0xff]  }
 0x225   : > { %v786_v47 = vpop.xlane.xlu1 %785  ;;  %v789_v48 = vpop.xlane.xlu0 %788 }
 0x226   : > { %3471 = vrsqrt.f32 %v804_v45  ;;  %v798_v49 = vmul.f32 0.015625, %v786_v47  ;;  %v799_v52 = vmul.f32 0.015625, %v789_v48 }
 0x227   : > { %3473 = vrsqrt.f32 %v805_v46 }
 0x228   : > { %v3466_v53 = vpop.eup %3465  ;;  %v806_v54 = vadd.f32 1e-05, %v798_v49  ;;  %v807_v55 = vadd.f32 1e-05, %v799_v52 }
 0x229   : > { %v817_v56 = vmul.f32 %v3466_v53, %v3800_v50  ;;  %v792_v57 = vpop.xlane.xlu1 %791 }
 0x22a   : > { %3475 = vrsqrt.f32 %v806_v54  ;;  %v800_v61 = vmul.f32 0.015625, %v792_v57 }
 0x22b   : > { %3477 = vrsqrt.f32 %v807_v55  ;;  %v831_v1 = vmul.f32 %v2899_v60, %v817_v56 }
 0x22c   : > { %v3468_v62 = vpop.eup %3467  ;;  %v808_v63 = vadd.f32 1e-05, %v800_v61 }
 0x22d   : > { %v3470_v0 = vpop.eup %3469  ;;  %v818_v2 = vmul.f32 %v3468_v62, %v3808_v58  ;;  %v845_v9 = vadd.f32 %v2900_v3, %v831_v1 }
 0x22e   : > { %v819_v6 = vmul.f32 %v3470_v0, %v3802_v51  ;;  %3479 = vrsqrt.f32 %v808_v63 }
 0x22f   : > { %v832_v50 = vmul.f32 %v2899_v60, %v818_v2 }
 0x230   : > { %v3472_v7 = vpop.eup %3471  ;;  %v833_v11 = vmul.f32 %v2899_v60, %v819_v6 }
 0x231   : > { %v3474_v8 = vpop.eup %3473  ;;  %v846_v10 = vadd.f32 %v2900_v3, %v832_v50  ;;  %v820_v12 = vmul.f32 %v3472_v7, %v3810_v59 }
 0x232   : > { %v821_v13 = vmul.f32 %v3474_v8, %v3818_v4  ;;  %v847_v51 = vadd.f32 %v2900_v3, %v833_v11 }
 0x233   : > { %v834_v16 = vmul.f32 %v2899_v60, %v820_v12  ;;  %v3875_v17 = vpack.c.bf16 %v846_v10, %v845_v9 }
 0x234   : > { %v3476_v58 = vpop.eup %3475  ;;  %v835_v18 = vmul.f32 %v2899_v60, %v821_v13 }
 0x235   : > { %v3478_v19 = vpop.eup %3477  ;;  %v848_v20 = vadd.f32 %v2900_v3, %v834_v16  ;;  %v822_v21 = vmul.f32 %v3476_v58, %v3820_v5  ;;  %3173 = vmatprep.mubr.msk.bf16.mxu0 %vm719_vm2, %v3875_v17  ;;  %3189 = vmatprep.mubr.msk.bf16.mxu1 %vm719_vm2, %v3875_v17 }
 0x236   : > { %v823_v59 = vmul.f32 %v3478_v19, %v3828_v14  ;;  %v849_v26 = vadd.f32 %v2900_v3, %v835_v18 }
 0x237   : > { %v836_v22 = vmul.f32 %v2899_v60, %v822_v21  ;;  %v3883_v4 = vpack.c.bf16 %v848_v20, %v847_v51 }
 0x238   : > { %v3480_v25 = vpop.eup %3479  ;;  %v837_v28 = vmul.f32 %v2899_v60, %v823_v59 }
 0x239   : > { %v850_v27 = vadd.f32 %v2900_v3, %v836_v22  ;;  %v824_v5 = vmul.f32 %v3480_v25, %v3830_v15  ;;  %3174 = vmatmul.mubr.msk.bf16.vlgmr.msra.gmra.mrb[0].mxu0 %vm719_vm2, %v3883_v4  ;;  %3190 = vmatmul.mubr.msk.bf16.vlgmr.msra.gmra.mrb[0].mxu1 %vm719_vm2, %v3883_v4 }
 0x23a   : > { %3198 = vmatpush3.bf16.msra.mxu0 %v3855_v30  ;;  %3214 = vmatpush3.bf16.msra.mxu1 %v3858_v31  ;;  %v851_v34 = vadd.f32 %v2900_v3, %v837_v28  ;;  %v3423_v31 = vld [vmem:[%s3844_s24 + $0x58] sm:$0xff]   ;;  %s682_s24 = scalar_lea.vmem %s4500_s12, %s3017_s21 }
 0x23b   : > { %v838_v14 = vmul.f32 %v2899_v60, %v824_v5  ;;  %3199 = vmatprep.subr.bf16.mxu0 %v3419_v23  ;;  %v855_v29 = vpack.c.bf16 %v850_v27, %v849_v26  ;;  %3215 = vmatprep.subr.bf16.mxu1 %v3420_v24 }
 0x23d   : > { %v852_v15 = vadd.f32 %v2900_v3, %v838_v14  ;;  %3177 = vmatprep.mubr.msk.bf16.mxu0 %vm719_vm2, %v855_v29  ;;  %3193 = vmatprep.mubr.msk.bf16.mxu1 %vm719_vm2, %v855_v29 }
 0x23e   : > { %3200 = vmatpush3.bf16.msra.mxu0 %v3419_v23  ;;  %3216 = vmatpush3.bf16.msra.mxu1 %v3420_v24 }
 0x23f   : > { %3201 = vmatprep.subr.bf16.mxu0 %v3421_v32  ;;  %v856_v30 = vpack.c.bf16 %v852_v15, %v851_v34  ;;  %3217 = vmatprep.subr.bf16.mxu1 %v3422_v33 }
 0x241   : > { %3178 = vmatmul.mubr.msk.bf16.gmra.mrb[4].mxu0 %vm719_vm2, %v856_v30  ;;  %3194 = vmatmul.mubr.msk.bf16.gmra.mrb[4].mxu1 %vm719_vm2, %v856_v30 }
 0x242   : > { %3202 = vmatpush3.bf16.msra.mxu0 %v3421_v32  ;;  %3205 = vmatprep.mubr.msk.bf16.mxu0 %vm719_vm2, %v3875_v17 }
 0x243   : > { %3218 = vmatpush3.bf16.msra.mxu1 %v3422_v33  ;;  %3221 = vmatprep.mubr.msk.bf16.mxu1 %vm719_vm2, %v3875_v17 }
 0x244   : > { %3203 = vmatprep.subr.bf16.mxu0 %v3423_v31  ;;  %3219 = vmatprep.subr.bf16.mxu1 %v3424_v35 }
 0x246   : > { %3204 = vmatpush3.bf16.msra.mxu0 %v3423_v31 }
 0x247   : > { %3220 = vmatpush3.bf16.msra.mxu1 %v3424_v35  ;;  %3229 = vmatprep.subr.bf16.mxu0 %v3425_v36 }
 0x248   : > { %3245 = vmatprep.subr.bf16.mxu1 %v3426_v37 }
 0x249   : > { %3206 = vmatmul.mubr.msk.bf16.vlgmr.msra.gmra.mrb[8].mxu0 %vm719_vm2, %v3883_v4 }
 0x24a   : > { %3222 = vmatmul.mubr.msk.bf16.vlgmr.msra.gmra.mrb[8].mxu1 %vm719_vm2, %v3883_v4  ;;  %3209 = vmatprep.mubr.msk.bf16.mxu0 %vm719_vm2, %v855_v29 }
 0x24b   : > { %3225 = vmatprep.mubr.msk.bf16.mxu1 %vm719_vm2, %v855_v29  ;;  %3230 = vmatpush3.bf16.msra.mxu0 %v3425_v36 }
 0x24c   : > { %3246 = vmatpush3.bf16.msra.mxu1 %v3426_v37  ;;  %3231 = vmatprep.subr.bf16.mxu0 %v3427_v38 }
 0x24d   : > { %3247 = vmatprep.subr.bf16.mxu1 %v3428_v39 }
 0x24f   : > { %3232 = vmatpush3.bf16.msra.mxu0 %v3427_v38 }
 0x250   : > { %3248 = vmatpush3.bf16.msra.mxu1 %v3428_v39  ;;  %3233 = vmatprep.subr.bf16.mxu0 %v3429_v40 }
 0x251   : > { %3210 = vmatmul.mubr.msk.bf16.gmra.mrb[12].mxu0 %vm719_vm2, %v856_v30  ;;  %3249 = vmatprep.subr.bf16.mxu1 %v3430_v41 }
 0x252   : > { %3226 = vmatmul.mubr.msk.bf16.gmra.mrb[12].mxu1 %vm719_vm2, %v856_v30  ;;  %3237 = vmatprep.mubr.msk.bf16.mxu0 %vm719_vm2, %v3875_v17 }
 0x253   : > { %3234 = vmatpush3.bf16.msra.mxu0 %v3429_v40  ;;  %3253 = vmatprep.mubr.msk.bf16.mxu1 %vm719_vm2, %v3875_v17 }
 0x254   : > { %3250 = vmatpush3.bf16.msra.mxu1 %v3430_v41  ;;  %3235 = vmatprep.subr.bf16.mxu0 %v3431_v42 }
 0x255   : > { %3251 = vmatprep.subr.bf16.mxu1 %v3432_v43 }
 0x257   : > { %3236 = vmatpush3.bf16.msra.mxu0 %v3431_v42 }
 0x258   : > { %3252 = vmatpush3.bf16.msra.mxu1 %v3432_v43 }
 0x25a   : > { %3238 = vmatmul.mubr.msk.bf16.vlgmr.msra.gmra.mrb[16].mxu0 %vm719_vm2, %v3883_v4 }
 0x25b   : > { %3254 = vmatmul.mubr.msk.bf16.vlgmr.msra.gmra.mrb[16].mxu1 %vm719_vm2, %v3883_v4  ;;  %3241 = vmatprep.mubr.msk.bf16.mxu0 %vm719_vm2, %v855_v29 }
 0x25c   : > { %3257 = vmatprep.mubr.msk.bf16.mxu1 %vm719_vm2, %v855_v29 }
 0x262   : > { %3242 = vmatmul.mubr.msk.bf16.gmra.mrb[20].mxu0 %vm719_vm2, %v856_v30 }
 0x263   : > { %3258 = vmatmul.mubr.msk.bf16.gmra.mrb[20].mxu1 %vm719_vm2, %v856_v30 }
 0x30c   : > { %v3934_v44 = vpop.f32.mrb[0].mxu0  ;;  %v3936_v45 = vpop.f32.mrb[0].mxu1 }
 0x30d   : > { %v927_v46 = vpop.f32.mrb[1].mxu0  ;;  %v1016_v47 = vpop.f32.mrb[1].mxu1 }
 0x30e   : > { %v3938_v48 = vpop.f32.mrb[2].mxu0  ;;  %v3940_v49 = vpop.f32.mrb[2].mxu1 }
 0x30f   : > { %v1404_v52 = vpack.c.bf16 %v3938_v48, %v3934_v44  ;;  %v1408_v53 = vpack.c.bf16 %v3940_v49, %v3936_v45  ;;  %v930_v54 = vpop.f32.mrb[3].mxu0  ;;  %v1019_v55 = vpop.f32.mrb[3].mxu1 }
 0x310   : > { %v1403_v56 = vpack.c.bf16 %v930_v54, %v927_v46  ;;  %v1407_v57 = vpack.c.bf16 %v1019_v55, %v1016_v47 }
 0x312   : > { %3269 = vmatprep.mubr.msk.bf16.mxu0 %vm1427_vm3, %v1403_v56  ;;  %3285 = vmatprep.mubr.msk.bf16.mxu1 %vm1427_vm3, %v1407_v57 }
 0x314   : > { %v3948_v60 = vpop.f32.mrb[4].mxu0  ;;  %v3950_v61 = vpop.f32.mrb[4].mxu1 }
 0x315   : > { %v3952_v62 = vpop.f32.mrb[5].mxu0  ;;  %v3954_v63 = vpop.f32.mrb[5].mxu1 }
 0x316   : > { %v3956_v0 = vpop.f32.mrb[6].mxu0  ;;  %v3958_v1 = vpop.f32.mrb[6].mxu1 }
 0x317   : > { %v1406_v2 = vpack.c.bf16 %v3956_v0, %v3948_v60  ;;  %v1410_v3 = vpack.c.bf16 %v3958_v1, %v3950_v61  ;;  %v3964_v6 = vpop.f32.mrb[7].mxu0  ;;  %v3966_v50 = vpop.f32.mrb[7].mxu1 }
 0x318   : > { %v1405_v7 = vpack.c.bf16 %v3964_v6, %v3952_v62  ;;  %v1409_v8 = vpack.c.bf16 %v3966_v50, %v3954_v63 }
 0x31c   : > { %v3207_v9 = vpop.f32.mrb[8].mxu0 }
 0x31d   : > { %v3223_v10 = vpop.f32.mrb[8].mxu1  ;;  %v1105_v11 = vpop.f32.mrb[9].mxu0 }
 0x31e   : > { %v1194_v12 = vpop.f32.mrb[9].mxu1  ;;  %v3208_v13 = vpop.f32.mrb[10].mxu0 }
 0x31f   : > { %v1412_v16 = vpack.c.bf16 %v3208_v13, %v3207_v9  ;;  %v3224_v17 = vpop.f32.mrb[10].mxu1  ;;  %v1108_v58 = vpop.f32.mrb[11].mxu0 }
 0x320   : > { %v1416_v18 = vpack.c.bf16 %v3224_v17, %v3223_v10  ;;  %v1411_v19 = vpack.c.bf16 %v1108_v58, %v1105_v11  ;;  %v1197_v51 = vpop.f32.mrb[11].mxu1 }
 0x321   : > { %v1415_v20 = vpack.c.bf16 %v1197_v51, %v1194_v12  ;;  %v1444_v33 = vsel %vm1427_vm3, %v1412_v16, 0 }
 0x322   : > { %v1441_v21 = vsel %vm1427_vm3, %v1411_v19, 0  ;;  %3359 = vmatprep.subr.msk.bf16.mxu0 %vm1427_vm3, %v1411_v19  ;;  %v1533_v34 = vsel %vm1427_vm3, %v1416_v18, 0 }
 0x323   : > { %v1530_v59 = vsel %vm1427_vm3, %v1415_v20, 0  ;;  %3363 = vmatprep.subr.msk.bf16.mxu1 %vm1427_vm3, %v1415_v20  ;;  %3262 = vmatpush3.bf16.xpose.msra.mxu0 %v1441_v21 }
 0x324   : > { %3278 = vmatpush3.bf16.xpose.msra.mxu1 %v1530_v59  ;;  %v3211_v22 = vpop.f32.mrb[12].mxu0  ;;  %3360 = vmatprep.subr.msk.bf16.mxu0 %vm1427_vm3, %v1412_v16 }
 0x325   : > { %v3227_v4 = vpop.f32.mrb[12].mxu1  ;;  %3364 = vmatprep.subr.msk.bf16.mxu1 %vm1427_vm3, %v1416_v18  ;;  %v1121_v23 = vpop.f32.mrb[13].mxu0 }
 0x326   : > { %v1210_v24 = vpop.f32.mrb[13].mxu1  ;;  %v3212_v25 = vpop.f32.mrb[14].mxu0 }
 0x327   : > { %v1414_v26 = vpack.c.bf16 %v3212_v25, %v3211_v22  ;;  %v3228_v27 = vpop.f32.mrb[14].mxu1  ;;  %v1124_v28 = vpop.f32.mrb[15].mxu0 }
 0x328   : > { %v1418_v5 = vpack.c.bf16 %v3228_v27, %v3227_v4  ;;  %v1413_v14 = vpack.c.bf16 %v1124_v28, %v1121_v23  ;;  %v1213_v29 = vpop.f32.mrb[15].mxu1 }
 0x329   : > { %v1417_v32 = vpack.c.bf16 %v1213_v29, %v1210_v24  ;;  %v1450_v58 = vsel %vm1427_vm3, %v1414_v26, 0 }
 0x32a   : > { %v1447_v43 = vsel %vm1427_vm3, %v1413_v14, 0  ;;  %v1539_v19 = vsel %vm1427_vm3, %v1418_v5, 0 }
 0x32b   : > { %3264 = vmatpush3.bf16.xpose.msra.mxu0 %v1444_v33  ;;  %v1536_v47 = vsel %vm1427_vm3, %v1417_v32, 0 }
 0x32c   : > { %3280 = vmatpush3.bf16.xpose.msra.mxu1 %v1533_v34  ;;  %3361 = vmatprep.subr.msk.bf16.mxu0 %vm1427_vm3, %v1413_v14 }
 0x32d   : > { %v3239_v15 = vpop.f32.mrb[16].mxu0  ;;  %3365 = vmatprep.subr.msk.bf16.mxu1 %vm1427_vm3, %v1417_v32 }
 0x32e   : > { %v3255_v30 = vpop.f32.mrb[16].mxu1  ;;  %v1283_v31 = vpop.f32.mrb[17].mxu0 }
 0x32f   : > { %v1372_v35 = vpop.f32.mrb[17].mxu1  ;;  %v3240_v36 = vpop.f32.mrb[18].mxu0 }
 0x330   : > { %v1420_v37 = vpack.c.bf16 %v3240_v36, %v3239_v15  ;;  %v3256_v38 = vpop.f32.mrb[18].mxu1  ;;  %v1286_v39 = vpop.f32.mrb[19].mxu0 }
 0x331   : > { %v3982_v40 = vpack.c.bf16 %v3256_v38, %v3255_v30  ;;  %v1419_v41 = vpack.c.bf16 %v1286_v39, %v1283_v31  ;;  %v1375_v42 = vpop.f32.mrb[19].mxu1 }
 0x332   : > { %v3985_v46 = vpack.c.bf16 %v1375_v42, %v1372_v35 }
 0x333   : > { %3266 = vmatpush3.bf16.xpose.msra.mxu0 %v1447_v43 }
 0x334   : > { %3282 = vmatpush3.bf16.xpose.msra.mxu1 %v1536_v47  ;;  %3362 = vmatprep.subr.msk.bf16.mxu0 %vm1427_vm3, %v1414_v26 }
 0x335   : > { %v3243_v54 = vpop.f32.mrb[20].mxu0  ;;  %3366 = vmatprep.subr.msk.bf16.mxu1 %vm1427_vm3, %v1418_v5 }
 0x336   : > { %v3259_v55 = vpop.f32.mrb[20].mxu1  ;;  %v1299_v56 = vpop.f32.mrb[21].mxu0 }
 0x337   : > { %v1388_v57 = vpop.f32.mrb[21].mxu1  ;;  %v3244_v9 = vpop.f32.mrb[22].mxu0 }
 0x338   : > { %v1422_v10 = vpack.c.bf16 %v3244_v9, %v3243_v54  ;;  %v3260_v11 = vpop.f32.mrb[22].mxu1  ;;  %v1302_v12 = vpop.f32.mrb[23].mxu0 }
 0x339   : > { %v3990_v13 = vpack.c.bf16 %v3260_v11, %v3259_v55  ;;  %v1421_v16 = vpack.c.bf16 %v1302_v12, %v1299_v56  ;;  %v1391_v17 = vpop.f32.mrb[23].mxu1 }
 0x33a   : > { %v3993_v18 = vpack.c.bf16 %v1391_v17, %v1388_v57 }
 0x33b   : > { %3268 = vmatpush3.bf16.xpose.msra.mxu0 %v1450_v58 }
 0x33c   : > { %3284 = vmatpush3.bf16.xpose.msra.mxu1 %v1539_v19  ;;  %3293 = vmatprep.subr.bf16.mxu0 %v1419_v41 }
 0x33d   : > { %3351 = vmatprep.subr.bf16.mxu1 %v3985_v46 }
 0x342   : > { %3270 = vmatmul.mubr.msk.bf16.vlgmr.msra.gmra.mrb[24].mxu0 %vm1427_vm3, %v1404_v52 }
 0x343   : > { %3286 = vmatmul.mubr.msk.bf16.vlgmr.msra.gmra.mrb[24].mxu1 %vm1427_vm3, %v1408_v53  ;;  %3273 = vmatprep.mubr.msk.bf16.mxu0 %vm1427_vm3, %v1405_v7 }
 0x344   : > { %3289 = vmatprep.mubr.msk.bf16.mxu1 %vm1427_vm3, %v1409_v8  ;;  %3294 = vmatpush3.bf16.msra.mxu0 %v1419_v41 }
 0x345   : > { %3355 = vmatpush3.bf16.msra.mxu1 %v3985_v46  ;;  %3295 = vmatprep.subr.bf16.mxu0 %v1420_v37 }
 0x346   : > { %3352 = vmatprep.subr.bf16.mxu1 %v3982_v40 }
 0x348   : > { %3296 = vmatpush3.bf16.msra.mxu0 %v1420_v37 }
 0x349   : > { %3356 = vmatpush3.bf16.msra.mxu1 %v3982_v40  ;;  %3297 = vmatprep.subr.bf16.mxu0 %v1421_v16 }
 0x34a   : > { %3353 = vmatprep.subr.bf16.mxu1 %v3993_v18  ;;  %3274 = vmatmul.mubr.msk.bf16.gmra.mrb[28].mxu0 %vm1427_vm3, %v1406_v2 }
 0x34b   : > { %3290 = vmatmul.mubr.msk.bf16.gmra.mrb[28].mxu1 %vm1427_vm3, %v1410_v3 }
 0x34c   : > { %3298 = vmatpush3.bf16.msra.mxu0 %v1421_v16 }
 0x34d   : > { %3357 = vmatpush3.bf16.msra.mxu1 %v3993_v18  ;;  %3299 = vmatprep.subr.bf16.mxu0 %v1422_v10 }
 0x34e   : > { %3354 = vmatprep.subr.bf16.mxu1 %v3990_v13 }
 0x350   : > { %3300 = vmatpush3.bf16.msra.mxu0 %v1422_v10 }
 0x351   : > { %3358 = vmatpush3.bf16.msra.mxu1 %v3990_v13  ;;  %3309 = vmatprep.subr.bf16.mxu0 %v3985_v46 }
 0x415   : > { %v3271_v44 = vpop.f32.mrb[24].mxu0 }
 0x416   : > { %v4029_v45 = vpop.f32.mrb[24].mxu1  ;;  %v1486_v48 = vpop.f32.mrb[25].mxu0  ;;  %v1612_v0 = vsel %vm719_vm2, %v3271_v44, -inf }
 0x417   : > { %v4031_v49 = vpop.f32.mrb[25].mxu1  ;;  %v3272_v52 = vpop.f32.mrb[26].mxu0  ;;  %v1606_v53 = vsel %vm719_vm2, %v1486_v48, -inf  ;;  %v1636_v25 = vsel %vm719_vm2, %v4029_v45, -inf }
 0x418   : > { %v4034_v60 = vpop.f32.mrb[26].mxu1  ;;  %1607 = vmax.xlane.f32.xlu0 %v1606_v53  ;;  %v1489_v61 = vpop.f32.mrb[27].mxu0  ;;  %v1615_v2 = vsel %vm719_vm2, %v3272_v52, -inf  ;;  %v1630_v23 = vsel %vm719_vm2, %v4031_v49, -inf }
 0x419   : > { %v4036_v62 = vpop.f32.mrb[27].mxu1  ;;  %v1609_v63 = vsel %vm719_vm2, %v1489_v61, -inf  ;;  %v1639_v26 = vsel %vm719_vm2, %v4034_v60, -inf }
 0x41a   : > { %1610 = vmax.xlane.f32.xlu1 %v1609_v63  ;;  %v1633_v24 = vsel %vm719_vm2, %v4036_v62, -inf }
 0x41c   : > { %1613 = vmax.xlane.f32.xlu0 %v1612_v0 }
 0x41d   : > { %v3275_v1 = vpop.f32.mrb[28].mxu0 }
 0x41e   : > { %v4041_v3 = vpop.f32.mrb[28].mxu1  ;;  %1616 = vmax.xlane.f32.xlu1 %v1615_v2  ;;  %v1502_v6 = vpop.f32.mrb[29].mxu0  ;;  %v1624_v22 = vsel %vm719_vm2, %v3275_v1, -inf }
 0x41f   : > { %v4043_v50 = vpop.f32.mrb[29].mxu1  ;;  %v3276_v7 = vpop.f32.mrb[30].mxu0  ;;  %v1618_v8 = vsel %vm719_vm2, %v1502_v6, -inf  ;;  %v1648_v5 = vsel %vm719_vm2, %v4041_v3, -inf }
 0x420   : > { %v4046_v51 = vpop.f32.mrb[30].mxu1  ;;  %1619 = vmax.xlane.f32.xlu0 %v1618_v8  ;;  %v1505_v20 = vpop.f32.mrb[31].mxu0  ;;  %v1627_v4 = vsel %vm719_vm2, %v3276_v7, -inf  ;;  %v1642_v27 = vsel %vm719_vm2, %v4043_v50, -inf }
 0x421   : > { %v4048_v21 = vpop.f32.mrb[31].mxu1  ;;  %v1621_v59 = vsel %vm719_vm2, %v1505_v20, -inf  ;;  %v1651_v14 = vsel %vm719_vm2, %v4046_v51, -inf }
 0x422   : > { %1622 = vmax.xlane.f32.xlu1 %v1621_v59  ;;  %v1645_v28 = vsel %vm719_vm2, %v4048_v21, -inf }
 0x424   : > { %1625 = vmax.xlane.f32.xlu0 %v1624_v22 }
 0x426   : > { %1628 = vmax.xlane.f32.xlu1 %v1627_v4 }
 0x428   : > { %1631 = vmax.xlane.f32.xlu0 %v1630_v23 }
 0x42a   : > { %1634 = vmax.xlane.f32.xlu1 %v1633_v24 }
 0x42c   : > { %1637 = vmax.xlane.f32.xlu0 %v1636_v25 }
 0x42e   : > { %1640 = vmax.xlane.f32.xlu1 %v1639_v26 }
 0x430   : > { %1643 = vmax.xlane.f32.xlu0 %v1642_v27 }
 0x432   : > { %1646 = vmax.xlane.f32.xlu1 %v1645_v28 }
 0x434   : > { %1649 = vmax.xlane.f32.xlu0 %v1648_v5 }
 0x436   : > { %1652 = vmax.xlane.f32.xlu1 %v1651_v14 }
 0x4a5   : > { %v1608_v29 = vpop.xlane.xlu0 %1607 }
 0x4a6   : > { %v1654_v32 = vsub.f32 %v1486_v48, %v1608_v29 }
 0x4a7   : > { %v1611_v33 = vpop.xlane.xlu1 %1610 }
 0x4a8   : > { %v1670_v34 = vmul.f32 1.442695, %v1654_v32  ;;  %v1655_v15 = vsub.f32 %v1489_v61, %v1611_v33 }
 0x4a9   : > { %v1614_v30 = vpop.xlane.xlu0 %1613 }
 0x4aa   : > { %3481 = vpow2.f32 %v1670_v34  ;;  %v1672_v31 = vmul.f32 1.442695, %v1655_v15  ;;  %v1656_v35 = vsub.f32 %v3271_v44, %v1614_v30 }
 0x4ab   : > { %v1617_v36 = vpop.xlane.xlu1 %1616 }
 0x4ac   : > { %3483 = vpow2.f32 %v1672_v31  ;;  %v1674_v37 = vmul.f32 1.442695, %v1656_v35  ;;  %v1657_v38 = vsub.f32 %v3272_v52, %v1617_v36 }
 0x4ad   : > { %v1620_v39 = vpop.xlane.xlu0 %1619 }
 0x4ae   : > { %3485 = vpow2.f32 %v1674_v37  ;;  %v1676_v41 = vmul.f32 1.442695, %v1657_v38  ;;  %v1658_v42 = vsub.f32 %v1502_v6, %v1620_v39 }
 0x4af   : > { %v1623_v43 = vpop.xlane.xlu1 %1622 }
 0x4b0   : > { %3487 = vpow2.f32 %v1676_v41  ;;  %v1678_v47 = vmul.f32 1.442695, %v1658_v42  ;;  %v1659_v54 = vsub.f32 %v1505_v20, %v1623_v43 }
 0x4b1   : > { %v1626_v55 = vpop.xlane.xlu0 %1625 }
 0x4b2   : > { %3489 = vpow2.f32 %v1678_v47  ;;  %v1680_v56 = vmul.f32 1.442695, %v1659_v54  ;;  %v1660_v57 = vsub.f32 %v3275_v1, %v1626_v55 }
 0x4b3   : > { %v1629_v9 = vpop.xlane.xlu1 %1628 }
 0x4b4   : > { %v4069_v10 = vpop.eup %3481  ;;  %3491 = vpow2.f32 %v1680_v56  ;;  %v1682_v11 = vmul.f32 1.442695, %v1660_v57  ;;  %v1661_v12 = vsub.f32 %v3276_v7, %v1629_v9 }
 0x4b5   : > { %v1632_v16 = vpop.xlane.xlu0 %1631  ;;  %v1702_v17 = vsel %vm719_vm2, %v4069_v10, 0.0 }
 0x4b6   : > { %v4073_v58 = vpop.eup %3483  ;;  %3493 = vpow2.f32 %v1682_v11  ;;  %v1684_v19 = vmul.f32 1.442695, %v1661_v12  ;;  %v1662_v44 = vsub.f32 %v4031_v49, %v1632_v16  ;;  %1703 = vadd.xlane.f32.xlu0 %v1702_v17 }
 0x4b7   : > { %v1635_v48 = vpop.xlane.xlu1 %1634  ;;  %v1705_v52 = vsel %vm719_vm2, %v4073_v58, 0.0 }
 0x4b8   : > { %v4078_v53 = vpop.eup %3485  ;;  %3495 = vpow2.f32 %v1684_v19  ;;  %v1686_v61 = vmul.f32 1.442695, %v1662_v44  ;;  %v1663_v63 = vsub.f32 %v4036_v62, %v1635_v48  ;;  %1706 = vadd.xlane.f32.xlu1 %v1705_v52 }
 0x4b9   : > { %v1638_v0 = vpop.xlane.xlu0 %1637  ;;  %v1708_v1 = vsel %vm719_vm2, %v4078_v53, 0.0 }
 0x4ba   : > { %v4083_v2 = vpop.eup %3487  ;;  %3497 = vpow2.f32 %v1686_v61  ;;  %v1688_v49 = vmul.f32 1.442695, %v1663_v63  ;;  %v1664_v6 = vsub.f32 %v4029_v45, %v1638_v0  ;;  %1709 = vadd.xlane.f32.xlu0 %v1708_v1 }
 0x4bb   : > { %v1641_v7 = vpop.xlane.xlu1 %1640  ;;  %v1711_v8 = vsel %vm719_vm2, %v4083_v2, 0.0 }
 0x4bc   : > { %v4088_v20 = vpop.eup %3489  ;;  %3499 = vpow2.f32 %v1688_v49  ;;  %v1690_v62 = vmul.f32 1.442695, %v1664_v6  ;;  %v1665_v59 = vsub.f32 %v4034_v60, %v1641_v7  ;;  %1712 = vadd.xlane.f32.xlu1 %v1711_v8 }
 0x4bd   : > { %v1644_v22 = vpop.xlane.xlu0 %1643  ;;  %v1714_v4 = vsel %vm719_vm2, %v4088_v20, 0.0 }
 0x4be   : > { %v4093_v23 = vpop.eup %3491  ;;  %3501 = vpow2.f32 %v1690_v62  ;;  %v1692_v45 = vmul.f32 1.442695, %v1665_v59  ;;  %v1666_v24 = vsub.f32 %v4043_v50, %v1644_v22  ;;  %1715 = vadd.xlane.f32.xlu0 %v1714_v4 }
 0x4bf   : > { %v1647_v25 = vpop.xlane.xlu1 %1646  ;;  %v1717_v26 = vsel %vm719_vm2, %v4093_v23, 0.0 }
 0x4c0   : > { %v4098_v27 = vpop.eup %3493  ;;  %3503 = vpow2.f32 %v1692_v45  ;;  %v1694_v60 = vmul.f32 1.442695, %v1666_v24  ;;  %v1667_v28 = vsub.f32 %v4048_v21, %v1647_v25  ;;  %1718 = vadd.xlane.f32.xlu1 %v1717_v26 }
 0x4c1   : > { %v1650_v5 = vpop.xlane.xlu0 %1649  ;;  %v1720_v14 = vsel %vm719_vm2, %v4098_v27, 0.0 }
 0x4c2   : > { %v4103_v29 = vpop.eup %3495  ;;  %3505 = vpow2.f32 %v1694_v60  ;;  %v1696_v50 = vmul.f32 1.442695, %v1667_v28  ;;  %v1668_v32 = vsub.f32 %v4041_v3, %v1650_v5  ;;  %1721 = vadd.xlane.f32.xlu0 %v1720_v14 }
 0x4c3   : > { %v1653_v33 = vpop.xlane.xlu1 %1652  ;;  %v1723_v34 = vsel %vm719_vm2, %v4103_v29, 0.0 }
 0x4c4   : > { %v4108_v15 = vpop.eup %3497  ;;  %3507 = vpow2.f32 %v1696_v50  ;;  %v1698_v21 = vmul.f32 1.442695, %v1668_v32  ;;  %v1669_v30 = vsub.f32 %v4046_v51, %v1653_v33  ;;  %1724 = vadd.xlane.f32.xlu1 %v1723_v34 }
 0x4c5   : > { %v1726_v31 = vsel %vm719_vm2, %v4108_v15, 0.0 }
 0x4c6   : > { %v4113_v35 = vpop.eup %3499  ;;  %3509 = vpow2.f32 %v1698_v21  ;;  %v1700_v36 = vmul.f32 1.442695, %v1669_v30  ;;  %1727 = vadd.xlane.f32.xlu0 %v1726_v31 }
 0x4c7   : > { %v1729_v3 = vsel %vm719_vm2, %v4113_v35, 0.0 }
 0x4c8   : > { %v4117_v37 = vpop.eup %3501  ;;  %3511 = vpow2.f32 %v1700_v36  ;;  %1730 = vadd.xlane.f32.xlu1 %v1729_v3 }
 0x4c9   : > { %v1732_v38 = vsel %vm719_vm2, %v4117_v37, 0.0 }
 0x4ca   : > { %v4121_v51 = vpop.eup %3503  ;;  %1733 = vadd.xlane.f32.xlu0 %v1732_v38 }
 0x4cb   : > { %v1735_v39 = vsel %vm719_vm2, %v4121_v51, 0.0 }
 0x4cc   : > { %v4125_v41 = vpop.eup %3505  ;;  %1736 = vadd.xlane.f32.xlu1 %v1735_v39 }
 0x4cd   : > { %v1738_v42 = vsel %vm719_vm2, %v4125_v41, 0.0 }
 0x4ce   : > { %v4129_v43 = vpop.eup %3507  ;;  %1739 = vadd.xlane.f32.xlu0 %v1738_v42 }
 0x4cf   : > { %v1741_v47 = vsel %vm719_vm2, %v4129_v43, 0.0 }
 0x4d0   : > { %v4133_v54 = vpop.eup %3509  ;;  %1742 = vadd.xlane.f32.xlu1 %v1741_v47  ;;  %v3434_v47 = vld [vmem:[%s4145_s25 + $0x8] sm:$0xff]  }
 0x4d1   : > { %v1744_v55 = vsel %vm719_vm2, %v4133_v54, 0.0 }
 0x4d2   : > { %v4137_v56 = vpop.eup %3511  ;;  %1745 = vadd.xlane.f32.xlu0 %v1744_v55 }
 0x4d3   : > { %v1747_v57 = vsel %vm719_vm2, %v4137_v56, 0.0 }
 0x4d4   : > { %1748 = vadd.xlane.f32.xlu1 %v1747_v57 }
 0x543   : > { %v1704_v9 = vpop.xlane.xlu0 %1703 }
 0x544   : > { %3513 = vrcp.f32 %v1704_v9 }
 0x545   : > { %v1707_v11 = vpop.xlane.xlu1 %1706 }
 0x546   : > { %3515 = vrcp.f32 %v1707_v11 }
 0x547   : > { %v1710_v12 = vpop.xlane.xlu0 %1709 }
 0x548   : > { %3517 = vrcp.f32 %v1710_v12 }
 0x549   : > { %v1713_v16 = vpop.xlane.xlu1 %1712 }
 0x54a   : > { %3519 = vrcp.f32 %v1713_v16 }
 0x54b   : > { %v1716_v17 = vpop.xlane.xlu0 %1715 }
 0x54c   : > { %3521 = vrcp.f32 %v1716_v17 }
 0x54d   : > { %v1719_v19 = vpop.xlane.xlu1 %1718 }
 0x54e   : > { %v3514_v44 = vpop.eup %3513  ;;  %3523 = vrcp.f32 %v1719_v19 }
 0x54f   : > { %v1722_v48 = vpop.xlane.xlu0 %1721  ;;  %v1766_v63 = vmul.f32 %v3514_v44, %v4069_v10 }
 0x550   : > { %v3516_v52 = vpop.eup %3515  ;;  %3525 = vrcp.f32 %v1722_v48 }
 0x551   : > { %v1725_v61 = vpop.xlane.xlu1 %1724  ;;  %v1767_v0 = vmul.f32 %v3516_v52, %v4073_v58 }
 0x552   : > { %v3518_v1 = vpop.eup %3517  ;;  %3527 = vrcp.f32 %v1725_v61 }
 0x553   : > { %v1728_v49 = vpop.xlane.xlu0 %1727  ;;  %v1782_v6 = vpack.c.bf16 %v1767_v0, %v1766_v63  ;;  %v1768_v8 = vmul.f32 %v3518_v1, %v4078_v53 }
 0x554   : > { %v3520_v7 = vpop.eup %3519  ;;  %3529 = vrcp.f32 %v1728_v49 }
 0x555   : > { %v1769_v62 = vmul.f32 %v3520_v7, %v4083_v2  ;;  %3301 = vmatprep.mubr.msk.bf16.mxu0 %vm719_vm2, %v1782_v6  ;;  %v1731_v59 = vpop.xlane.xlu1 %1730 }
 0x556   : > { %v3522_v22 = vpop.eup %3521  ;;  %3531 = vrcp.f32 %v1731_v59 }
 0x557   : > { %v1783_v4 = vpack.c.bf16 %v1769_v62, %v1768_v8  ;;  %v1734_v45 = vpop.xlane.xlu0 %1733  ;;  %v1770_v24 = vmul.f32 %v3522_v22, %v4088_v20 }
 0x558   : > { %v3524_v10 = vpop.eup %3523  ;;  %3533 = vrcp.f32 %v1734_v45 }
 0x559   : > { %v1737_v58 = vpop.xlane.xlu1 %1736  ;;  %3302 = vmatmul.mubr.msk.bf16.vlgmr.msra.gmra.mrb[32].mxu0 %vm719_vm2, %v1783_v4  ;;  %v1771_v25 = vmul.f32 %v3524_v10, %v4093_v23 }
 0x55a   : > { %v3526_v26 = vpop.eup %3525  ;;  %3535 = vrcp.f32 %v1737_v58  ;;  %3310 = vmatpush3.bf16.msra.mxu0 %v3985_v46 }
 0x55b   : > { %3311 = vmatprep.subr.bf16.mxu0 %v3982_v40  ;;  %v1740_v53 = vpop.xlane.xlu0 %1739  ;;  %v1784_v2 = vpack.c.bf16 %v1771_v25, %v1770_v24  ;;  %v1772_v5 = vmul.f32 %v3526_v26, %v4098_v27 }
 0x55c   : > { %v3528_v60 = vpop.eup %3527  ;;  %3537 = vrcp.f32 %v1740_v53 }
 0x55d   : > { %v1743_v28 = vpop.xlane.xlu1 %1742  ;;  %3305 = vmatprep.mubr.msk.bf16.mxu0 %vm719_vm2, %v1784_v2  ;;  %v1773_v14 = vmul.f32 %v3528_v60, %v4103_v29  ;;  %v3433_v29 = vld [vmem:[%s4145_s25] sm:$0xff]  }
 0x55e   : > { %v3530_v20 = vpop.eup %3529  ;;  %3539 = vrcp.f32 %v1743_v28  ;;  %3312 = vmatpush3.bf16.msra.mxu0 %v3982_v40  ;;  %v2977_v2 = vld [vmem:[%s2130_s30] ss:$0 sm:$0xff] }
 0x55f   : > { %3313 = vmatprep.subr.bf16.mxu0 %v3993_v18  ;;  %v1746_v46 = vpop.xlane.xlu0 %1745  ;;  %v1785_v23 = vpack.c.bf16 %v1773_v14, %v1772_v5  ;;  %v1774_v33 = vmul.f32 %v3530_v20, %v4108_v15  ;;  %v3593_v20 = vld [vmem:[%s3755_s26] sm:$0xff] }
 0x560   : > { %v3532_v50 = vpop.eup %3531  ;;  %3541 = vrcp.f32 %v1746_v46  ;;  %v2138_v46 = vadd.f32 %v3593_v20, %v2977_v2 }
 0x561   : > { %v1749_v32 = vpop.xlane.xlu1 %1748  ;;  %3306 = vmatmul.mubr.msk.bf16.gmra.mrb[36].mxu0 %vm719_vm2, %v1785_v23  ;;  %v1775_v27 = vmul.f32 %v3532_v50, %v4113_v35  ;;  %v3594_v50 = vld [vmem:[%s3755_s26 + $0x10] sm:$0xff] }
 0x562   : > { %v3534_v34 = vpop.eup %3533  ;;  %3543 = vrcp.f32 %v1749_v32  ;;  %3314 = vmatpush3.bf16.msra.mxu0 %v3993_v18  ;;  %v2140_v32 = vadd.f32 %v3594_v50, %v2977_v2 }
 0x563   : > { %3315 = vmatprep.subr.bf16.mxu0 %v3990_v13  ;;  %v1786_v40 = vpack.c.bf16 %v1775_v27, %v1774_v33  ;;  %v1776_v30 = vmul.f32 %v3534_v34, %v4117_v37 }
 0x564   : > { %v3536_v21 = vpop.eup %3535 }
 0x565   : > { %v1777_v31 = vmul.f32 %v3536_v21, %v4121_v51  ;;  %3317 = vmatprep.mubr.msk.bf16.mxu0 %vm719_vm2, %v1786_v40 }
 0x566   : > { %v3538_v36 = vpop.eup %3537  ;;  %3316 = vmatpush3.bf16.msra.mxu0 %v3990_v13 }
 0x567   : > { %v1787_v15 = vpack.c.bf16 %v1777_v31, %v1776_v30  ;;  %3325 = vmatprep.subr.bf16.mxu0 %v3433_v29  ;;  %v1778_v18 = vmul.f32 %v3538_v36, %v4125_v41  ;;  %v3435_v41 = vld [vmem:[%s4145_s25 + $0x10] sm:$0xff]   ;;  %v3595_v31 = vld [vmem:[%s3755_s26 + $0x8] sm:$0xff] }
 0x568   : > { %v3540_v35 = vpop.eup %3539  ;;  %3337 = vmatprep.subr.bf16.mxu1 %v3435_v41  ;;  %v2139_v36 = vadd.f32 %v3595_v31, %v2977_v2 }
 0x569   : > { %3318 = vmatmul.mubr.msk.bf16.vlgmr.msra.gmra.mrb[40].mxu0 %vm719_vm2, %v1787_v15  ;;  %v1779_v3 = vmul.f32 %v3540_v35, %v4129_v43  ;;  %v3436_v43 = vld [vmem:[%s4145_s25 + $0x18] sm:$0xff]   ;;  %s2980_s25 = sshll.u32 %s3623_s29, 1 }
 0x56a   : > { %v3542_v37 = vpop.eup %3541  ;;  %3326 = vmatpush3.bf16.msra.mxu0 %v3433_v29  ;;  %s2319_s30 = scalar_lea.vmem %s4499_s11, %s2980_s25 }
 0x56b   : > { %v1788_v38 = vpack.c.bf16 %v1779_v3, %v1778_v18  ;;  %v1780_v39 = vmul.f32 %v3542_v37, %v4133_v54  ;;  %3327 = vmatprep.subr.bf16.mxu0 %v3434_v47  ;;  %v3596_v37 = vld [vmem:[%s3755_s26 + $0x18] sm:$0xff] }
 0x56c   : > { %v3544_v51 = vpop.eup %3543 }
 0x56d   : > { %v1781_v13 = vmul.f32 %v3544_v51, %v4137_v56  ;;  %3321 = vmatprep.mubr.msk.bf16.mxu1 %vm719_vm2, %v1788_v38  ;;  %v2141_v38 = vadd.f32 %v3596_v37, %v2977_v2 }
 0x56e   : > { %3328 = vmatpush3.bf16.msra.mxu0 %v3434_v47 }
 0x56f   : > { %v1789_v42 = vpack.c.bf16 %v1781_v13, %v1780_v39 }
 0x571   : > { %3322 = vmatmul.mubr.msk.bf16.vlgmr.msra.gmra.mrb[32].mxu1 %vm719_vm2, %v1789_v42 }
 0x572   : > { %3338 = vmatpush3.bf16.msra.mxu1 %v3435_v41  ;;  %v3597_v41 = vld [vmem:[%s3755_s26 + $0x30] sm:$0xff] }
 0x573   : > { %3339 = vmatprep.subr.bf16.mxu1 %v3436_v43 }
 0x576   : > { %3340 = vmatpush3.bf16.msra.mxu1 %v3436_v43  ;;  %v2144_v43 = vadd.f32 %v3597_v41, %v2977_v2 }
 0x62c   : > { %v3303_v55 = vpop.f32.mrb[32].mxu0 }
 0x62d   : > { %v1836_v57 = vpop.f32.mrb[33].mxu0 }
 0x62e   : > { %v3304_v9 = vpop.f32.mrb[34].mxu0 }
 0x62f   : > { %v1945_v54 = vpack.c.bf16 %v3304_v9, %v3303_v55  ;;  %v1839_v11 = vpop.f32.mrb[35].mxu0  ;;  %v3598_v55 = vld [vmem:[%s3755_s26 + $0x20] sm:$0xff] }
 0x630   : > { %v1944_v56 = vpack.c.bf16 %v1839_v11, %v1836_v57  ;;  %v2142_v57 = vadd.f32 %v3598_v55, %v2977_v2 }
 0x632   : > { %3329 = vmatprep.mubr.msk.bf16.mxu0 %vm1427_vm3, %v1944_v56 }
 0x633   : > { %3330 = vmatmul.mubr.msk.bf16.vlgmr.msra.gmra.mrb[44].mxu0 %vm1427_vm3, %v1945_v54 }
 0x634   : > { %v3307_v12 = vpop.f32.mrb[36].mxu0 }
 0x635   : > { %v1852_v16 = vpop.f32.mrb[37].mxu0 }
 0x636   : > { %v3308_v17 = vpop.f32.mrb[38].mxu0 }
 0x637   : > { %v1947_v19 = vpack.c.bf16 %v3308_v17, %v3307_v12  ;;  %v1855_v44 = vpop.f32.mrb[39].mxu0 }
 0x638   : > { %v1946_v48 = vpack.c.bf16 %v1855_v44, %v1852_v16 }
 0x63a   : > { %3333 = vmatprep.mubr.msk.bf16.mxu0 %vm1427_vm3, %v1946_v48  ;;  %v3599_v48 = vld [vmem:[%s3755_s26 + $0x28] sm:$0xff] }
 0x63b   : > { %3334 = vmatmul.mubr.msk.bf16.gmra.mrb[48].mxu0 %vm1427_vm3, %v1947_v19 }
 0x63c   : > { %v3319_v52 = vpop.f32.mrb[40].mxu0 }
 0x63d   : > { %v1913_v61 = vpop.f32.mrb[41].mxu0 }
 0x63e   : > { %v3320_v63 = vpop.f32.mrb[42].mxu0 }
 0x63f   : > { %v1949_v0 = vpack.c.bf16 %v3320_v63, %v3319_v52  ;;  %v1916_v1 = vpop.f32.mrb[43].mxu0  ;;  %v2143_v52 = vadd.f32 %v3599_v48, %v2977_v2 }
 0x640   : > { %v1948_v49 = vpack.c.bf16 %v1916_v1, %v1913_v61 }
 0x642   : > { %3341 = vmatprep.mubr.msk.bf16.mxu1 %vm1427_vm3, %v1948_v49 }
 0x643   : > { %3342 = vmatmul.mubr.msk.bf16.vlgmr.msra.gmra.mrb[36].mxu1 %vm1427_vm3, %v1949_v0 }
 0x644   : > { %v3323_v6 = vpop.f32.mrb[32].mxu1 }
 0x645   : > { %v1929_v7 = vpop.f32.mrb[33].mxu1 }
 0x646   : > { %v3324_v8 = vpop.f32.mrb[34].mxu1 }
 0x647   : > { %v1951_v62 = vpack.c.bf16 %v3324_v8, %v3323_v6  ;;  %v1932_v59 = vpop.f32.mrb[35].mxu1 }
 0x648   : > { %v1950_v22 = vpack.c.bf16 %v1932_v59, %v1929_v7  ;;  %v3600_v59 = vld [vmem:[%s3755_s26 + $0x38] sm:$0xff] }
 0x64a   : > { %3345 = vmatprep.mubr.msk.bf16.mxu1 %vm1427_vm3, %v1950_v22  ;;  %v2145_v22 = vadd.f32 %v3600_v59, %v2977_v2  ;;  %v3641_v59 = vmov 0  }
 0x64b   : > { %3346 = vmatmul.mubr.msk.bf16.gmra.mrb[40].mxu1 %vm1427_vm3, %v1951_v62  ;;  %2416 = vmatprep.mubr.bf16.mxu0 %v3641_v59 }
 0x706   : > { %v3331_v4 = vpop.f32.mrb[44].mxu0 }
 0x707   : > { %v2010_v45 = vpop.f32.mrb[45].mxu0  ;;  %v2152_v28 = vsel %vm719_vm2, %v3331_v4, 0.0 }
 0x708   : > { %v3332_v10 = vpop.f32.mrb[46].mxu0  ;;  %v2146_v23 = vsel %vm719_vm2, %v2010_v45, 0.0 }
 0x709   : > { %v2013_v58 = vpop.f32.mrb[47].mxu0  ;;  %v2155_v40 = vsel %vm719_vm2, %v3332_v10, 0.0 }
 0x70a   : > { %v2149_v15 = vsel %vm719_vm2, %v2013_v58, 0.0 }
 0x70e   : > { %v3335_v24 = vpop.f32.mrb[48].mxu0 }
 0x70f   : > { %v2026_v25 = vpop.f32.mrb[49].mxu0  ;;  %v2164_v9 = vsel %vm719_vm2, %v3335_v24, 0.0 }
 0x710   : > { %v3336_v26 = vpop.f32.mrb[50].mxu0  ;;  %v2158_v16 = vsel %vm719_vm2, %v2026_v25, 0.0 }
 0x711   : > { %v2029_v53 = vpop.f32.mrb[51].mxu0  ;;  %v2167_v61 = vsel %vm719_vm2, %v3336_v26, 0.0 }
 0x712   : > { %v2161_v6 = vsel %vm719_vm2, %v2029_v53, 0.0 }
 0x716   : > { %v3343_v60 = vpop.f32.mrb[36].mxu1 }
 0x717   : > { %v2153_v5 = vsel %vm719_vm2, %v3343_v60, 0.0  ;;  %v2099_v14 = vpop.f32.mrb[37].mxu1 }
 0x718   : > { %v2154_v33 = vadd.f32 %v2153_v5, %v2152_v28  ;;  %v2147_v27 = vsel %vm719_vm2, %v2099_v14, 0.0  ;;  %v3344_v34 = vpop.f32.mrb[38].mxu1 }
 0x719   : > { %v2148_v29 = vadd.f32 %v2147_v27, %v2146_v23  ;;  %v2156_v21 = vsel %vm719_vm2, %v3344_v34, 0.0  ;;  %v2102_v30 = vpop.f32.mrb[39].mxu1 }
 0x71a   : > { %v2157_v35 = vadd.f32 %v2156_v21, %v2155_v40  ;;  %v2150_v18 = vsel %vm719_vm2, %v2102_v30, 0.0  ;;  %v4208_v39 = vadd.f32 %v2154_v33, %v2140_v32 }
 0x71b   : > { %v4205_v3 = vadd.f32 %v2148_v29, %v2138_v46  ;;  %v2151_v51 = vadd.f32 %v2150_v18, %v2149_v15 }
 0x71c   : > { %v4217_v54 = vadd.f32 %v2157_v35, %v2141_v38  ;;  %v2188_v49 = vsel %vm719_vm2, %v4208_v39, 0.0 }
 0x71d   : > { %v4210_v13 = vadd.f32 %v2151_v51, %v2139_v36  ;;  %v2182_v42 = vsel %vm719_vm2, %v4205_v3, 0.0 }
 0x71e   : > { %2183 = vadd.xlane.f32.xlu0 %v2182_v42  ;;  %v3347_v47 = vpop.f32.mrb[40].mxu1  ;;  %v2191_v45 = vsel %vm719_vm2, %v4217_v54, 0.0 }
 0x71f   : > { %v2165_v11 = vsel %vm719_vm2, %v3347_v47, 0.0  ;;  %v2115_v56 = vpop.f32.mrb[41].mxu1  ;;  %v2185_v12 = vsel %vm719_vm2, %v4210_v13, 0.0 }
 0x720   : > { %v2166_v17 = vadd.f32 %v2165_v11, %v2164_v9  ;;  %v2159_v19 = vsel %vm719_vm2, %v2115_v56, 0.0  ;;  %2186 = vadd.xlane.f32.xlu1 %v2185_v12  ;;  %v3348_v44 = vpop.f32.mrb[42].mxu1 }
 0x721   : > { %v2160_v63 = vadd.f32 %v2159_v19, %v2158_v16  ;;  %v2168_v0 = vsel %vm719_vm2, %v3348_v44, 0.0  ;;  %v2118_v1 = vpop.f32.mrb[43].mxu1 }
 0x722   : > { %v2169_v7 = vadd.f32 %v2168_v0, %v2167_v61  ;;  %v2162_v8 = vsel %vm719_vm2, %v2118_v1, 0.0  ;;  %2189 = vadd.xlane.f32.xlu0 %v2188_v49  ;;  %v4236_v10 = vadd.f32 %v2166_v17, %v2144_v43  ;;  %v3439_v61 = vld [vmem:[%s671_s23 + $0x4] ss:$8 sps:$4 sm:$0xff]   ;;  %v3442_v0 = vld [vmem:[%s671_s23 + $0x14] ss:$8 sps:$4 sm:$0xff]  }
 0x723   : > { %v4231_v62 = vadd.f32 %v2160_v63, %v2142_v57  ;;  %v2163_v4 = vadd.f32 %v2162_v8, %v2161_v6  ;;  %v3437_v63 = vld [vmem:[%s671_s23] ss:$8 sps:$4 sm:$0xff]   ;;  %2384 = vmatprep.subr.bf16.mxu0 %v3439_v61  ;;  %v3440_v1 = vld [vmem:[%s671_s23 + $0x10] ss:$8 sps:$4 sm:$0xff]   ;;  %v3445_v49 = vld [vmem:[%s671_s23 + $0x24] ss:$8 sps:$4 sm:$0xff]  }
 0x724   : > { %2192 = vadd.xlane.f32.xlu1 %v2191_v45  ;;  %v4242_v25 = vadd.f32 %v2169_v7, %v2145_v22  ;;  %v2200_v53 = vsel %vm719_vm2, %v4236_v10, 0.0  ;;  %2385 = vmatpush1.bf16.msra.mxu0 %v3437_v63  ;;  %v3443_v6 = vld [vmem:[%s671_s23 + $0x20] ss:$8 sps:$4 sm:$0xff]   ;;  %v3448_v7 = vld [vmem:[%s671_s23 + $0x34] ss:$8 sps:$4 sm:$0xff]  }
 0x725   : > { %v4238_v58 = vadd.f32 %v2163_v4, %v2143_v52  ;;  %v2194_v24 = vsel %vm719_vm2, %v4231_v62, 0.0  ;;  %2386 = vmatprep.subr.bf16.mxu0 %v3442_v0  ;;  %v3446_v8 = vld [vmem:[%s671_s23 + $0x30] ss:$8 sps:$4 sm:$0xff]  }
 0x726   : > { %2195 = vadd.xlane.f32.xlu0 %v2194_v24  ;;  %v2203_v2 = vsel %vm719_vm2, %v4242_v25, 0.0 }
 0x727   : > { %v2197_v26 = vsel %vm719_vm2, %v4238_v58, 0.0 }
 0x728   : > { %2198 = vadd.xlane.f32.xlu1 %v2197_v26  ;;  %2387 = vmatpush1.bf16.msra.mxu0 %v3440_v1 }
 0x729   : > { %2388 = vmatprep.subr.bf16.mxu0 %v3445_v49 }
 0x72a   : > { %2201 = vadd.xlane.f32.xlu0 %v2200_v53 }
 0x72c   : > { %2204 = vadd.xlane.f32.xlu1 %v2203_v2  ;;  %2389 = vmatpush1.bf16.msra.mxu0 %v3443_v6 }
 0x72d   : > { %2390 = vmatprep.subr.bf16.mxu0 %v3448_v7 }
 0x730   : > { %2391 = vmatpush1.bf16.msra.mxu0 %v3446_v8 }
 0x7ab   : > { %v2184_v60 = vpop.xlane.xlu0 %2183 }
 0x7ac   : > { %v2206_v28 = vmul.f32 0.015625, %v2184_v60 }
 0x7ad   : > { %v2187_v5 = vpop.xlane.xlu1 %2186 }
 0x7ae   : > { %v4251_v14 = vsub.f32 %v4205_v3, %v2206_v28  ;;  %v2207_v20 = vmul.f32 0.015625, %v2187_v5 }
 0x7af   : > { %v2190_v46 = vpop.xlane.xlu0 %2189 }
 0x7b0   : > { %v4254_v23 = vsub.f32 %v4210_v13, %v2207_v20  ;;  %v2208_v50 = vmul.f32 0.015625, %v2190_v46  ;;  %v2222_v32 = vmul.f32 %v4251_v14, %v4251_v14 }
 0x7b1   : > { %v2193_v33 = vpop.xlane.xlu1 %2192 }
 0x7b2   : > { %v4259_v27 = vsub.f32 %v4208_v39, %v2208_v50  ;;  %v2209_v34 = vmul.f32 0.015625, %v2193_v33  ;;  %v2230_v40 = vsel %vm719_vm2, %v2222_v32, 0.0  ;;  %v2223_v29 = vmul.f32 %v4254_v23, %v4254_v23 }
 0x7b3   : > { %2231 = vadd.xlane.f32.xlu0 %v2230_v40  ;;  %v2196_v21 = vpop.xlane.xlu0 %2195 }
 0x7b4   : > { %v4265_v30 = vsub.f32 %v4217_v54, %v2209_v34  ;;  %v2210_v31 = vmul.f32 0.015625, %v2196_v21  ;;  %v2233_v36 = vsel %vm719_vm2, %v2223_v29, 0.0  ;;  %v2224_v15 = vmul.f32 %v4259_v27, %v4259_v27 }
 0x7b5   : > { %2234 = vadd.xlane.f32.xlu1 %v2233_v36  ;;  %v2199_v35 = vpop.xlane.xlu1 %2198 }
 0x7b6   : > { %v4271_v18 = vsub.f32 %v4231_v62, %v2210_v31  ;;  %v2211_v37 = vmul.f32 0.015625, %v2199_v35  ;;  %v2236_v38 = vsel %vm719_vm2, %v2224_v15, 0.0  ;;  %v2225_v51 = vmul.f32 %v4265_v30, %v4265_v30  ;;  %v2978_v15 = vld [vmem:[%s2178_s27] ss:$0 sm:$0xff] }
 0x7b7   : > { %2237 = vadd.xlane.f32.xlu0 %v2236_v38  ;;  %v2202_v42 = vpop.xlane.xlu0 %2201 }
 0x7b8   : > { %v4277_v47 = vsub.f32 %v4238_v58, %v2211_v37  ;;  %v2212_v41 = vmul.f32 0.015625, %v2202_v42  ;;  %v2239_v43 = vsel %vm719_vm2, %v2225_v51, 0.0  ;;  %v2226_v55 = vmul.f32 %v4271_v18, %v4271_v18 }
 0x7b9   : > { %2240 = vadd.xlane.f32.xlu1 %v2239_v43  ;;  %v2205_v57 = vpop.xlane.xlu1 %2204 }
 0x7ba   : > { %v4283_v9 = vsub.f32 %v4236_v10, %v2212_v41  ;;  %v2213_v11 = vmul.f32 0.015625, %v2205_v57  ;;  %v2242_v56 = vsel %vm719_vm2, %v2226_v55, 0.0  ;;  %v2227_v12 = vmul.f32 %v4277_v47, %v4277_v47  ;;  %v2979_v55 = vld [vmem:[%s2180_s20] ss:$0 sm:$0xff] }
 0x7bb   : > { %2243 = vadd.xlane.f32.xlu0 %v2242_v56 }
 0x7bc   : > { %v4289_v16 = vsub.f32 %v4242_v25, %v2213_v11  ;;  %v2245_v17 = vsel %vm719_vm2, %v2227_v12, 0.0  ;;  %v2228_v19 = vmul.f32 %v4283_v9, %v4283_v9 }
 0x7bd   : > { %2246 = vadd.xlane.f32.xlu1 %v2245_v17 }
 0x7be   : > { %v2248_v44 = vsel %vm719_vm2, %v2228_v19, 0.0  ;;  %v2229_v48 = vmul.f32 %v4289_v16, %v4289_v16 }
 0x7bf   : > { %2249 = vadd.xlane.f32.xlu0 %v2248_v44 }
 0x7c0   : > { %v2251_v52 = vsel %vm719_vm2, %v2229_v48, 0.0 }
 0x7c1   : > { %2252 = vadd.xlane.f32.xlu1 %v2251_v52 }
 0x840   : > { %v2232_v22 = vpop.xlane.xlu0 %2231 }
 0x841   : > { %v2254_v4 = vmul.f32 0.015625, %v2232_v22 }
 0x842   : > { %v2235_v45 = vpop.xlane.xlu1 %2234 }
 0x843   : > { %v2262_v24 = vadd.f32 1e-05, %v2254_v4  ;;  %v2255_v26 = vmul.f32 0.015625, %v2235_v45 }
 0x844   : > { %v2238_v53 = vpop.xlane.xlu0 %2237 }
 0x845   : > { %3545 = vrsqrt.f32 %v2262_v24  ;;  %v2263_v2 = vadd.f32 1e-05, %v2255_v26  ;;  %v2256_v60 = vmul.f32 0.015625, %v2238_v53 }
 0x846   : > { %v2241_v28 = vpop.xlane.xlu1 %2240 }
 0x847   : > { %3547 = vrsqrt.f32 %v2263_v2  ;;  %v2264_v5 = vadd.f32 1e-05, %v2256_v60  ;;  %v2257_v20 = vmul.f32 0.015625, %v2241_v28 }
 0x848   : > { %v2244_v46 = vpop.xlane.xlu0 %2243 }
 0x849   : > { %3549 = vrsqrt.f32 %v2264_v5  ;;  %v2265_v50 = vadd.f32 1e-05, %v2257_v20  ;;  %v2258_v32 = vmul.f32 0.015625, %v2244_v46  ;;  %v3451_v5 = vld [vmem:[%s682_s24 + $0x48] sm:$0xff]   ;;  %v3453_v46 = vld [vmem:[%s682_s24 + $0x50] sm:$0xff]  }
 0x84a   : > { %v2247_v33 = vpop.xlane.xlu1 %2246  ;;  %v3452_v20 = vld [vmem:[%s682_s24 + $0x8] sm:$0xff]  }
 0x84b   : > { %3551 = vrsqrt.f32 %v2265_v50  ;;  %v2259_v34 = vmul.f32 0.015625, %v2247_v33  ;;  %v2266_v40 = vadd.f32 1e-05, %v2258_v32  ;;  %v3455_v50 = vld [vmem:[%s682_s24 + $0x58] sm:$0xff]   ;;  %v3457_v33 = vld [vmem:[%s682_s24 + $0x60] sm:$0xff]  }
 0x84c   : > { %v2250_v21 = vpop.xlane.xlu0 %2249  ;;  %v3456_v32 = vld [vmem:[%s682_s24 + $0x18] sm:$0xff]  }
 0x84d   : > { %v2267_v29 = vadd.f32 1e-05, %v2259_v34  ;;  %v2260_v51 = vmul.f32 0.015625, %v2250_v21  ;;  %v3458_v34 = vld [vmem:[%s682_s24 + $0x20] sm:$0xff]   ;;  %v3461_v21 = vld [vmem:[%s682_s24 + $0x70] sm:$0xff]  }
 0x84e   : > { %v2253_v31 = vpop.xlane.xlu1 %2252 }
 0x84f   : > { %v3546_v36 = vpop.eup %3545  ;;  %3553 = vrsqrt.f32 %v2267_v29  ;;  %v2261_v35 = vmul.f32 0.015625, %v2253_v31  ;;  %v2268_v12 = vadd.f32 1e-05, %v2260_v51  ;;  %v3460_v29 = vld [vmem:[%s682_s24 + $0x28] sm:$0xff]   ;;  %v3462_v31 = vld [vmem:[%s682_s24 + $0x30] sm:$0xff]  }
 0x850   : > { %v2278_v37 = vmul.f32 %v3546_v36, %v4251_v14  ;;  %3555 = vrsqrt.f32 %v2266_v40  ;;  %v3459_v40 = vld [vmem:[%s682_s24 + $0x68] sm:$0xff]   ;;  %v3463_v36 = vld [vmem:[%s682_s24 + $0x78] sm:$0xff]   ;;  %v2320_v51 = vld [vmem:[%s2319_s30] sm:$0x3] }
 0x851   : > { %v3548_v38 = vpop.eup %3547  ;;  %v2269_v57 = vadd.f32 1e-05, %v2261_v35  ;;  %v2322_v35 = vlaneseq }
 0x852   : > { %v2292_v42 = vmul.f32 %v2978_v15, %v2278_v37  ;;  %v2279_v41 = vmul.f32 %v3548_v38, %v4254_v23 }
 0x853   : > { %v3550_v43 = vpop.eup %3549  ;;  %3557 = vrsqrt.f32 %v2269_v57  ;;  %v2323_v37 = vshrl.u32 %v2322_v35, 7 }
 0x854   : > { %v2293_v11 = vmul.f32 %v2978_v15, %v2279_v41  ;;  %v2306_v17 = vadd.f32 %v2979_v55, %v2292_v42  ;;  %v2280_v44 = vmul.f32 %v3550_v43, %v4259_v27  ;;  %3559 = vrsqrt.f32 %v2268_v12 }
 0x855   : > { %v3552_v56 = vpop.eup %3551  ;;  %v2324_v38 = vsub.s32 0, %v2323_v37  ;;  %v2328_v42 = vsub.s32 1, %v2323_v37 }
 0x856   : > { %v2307_v19 = vadd.f32 %v2979_v55, %v2293_v11  ;;  %v2281_v48 = vmul.f32 %v3552_v56, %v4265_v30  ;;  %v2294_v23 = vmul.f32 %v2978_v15, %v2280_v44 }
 0x857   : > { %v4334_v41 = vrot.slane %v2320_v51, %v2324_v38  ;;  %v4336_v43 = vrot.slane %v2320_v51, %v2328_v42 }
 0x858   : > { %v2314_v14 = vpack.c.bf16 %v2307_v19, %v2306_v17  ;;  %v2295_v52 = vmul.f32 %v2978_v15, %v2281_v48  ;;  %v2308_v6 = vadd.f32 %v2979_v55, %v2294_v23 }
 0x859   : > { %v3554_v61 = vpop.eup %3553 }
 0x85a   : > { %2989 = vmatmul.mubr.msk.bf16.vlgmr.msra.gmra.mrb[52].mxu0 %vm719_vm2, %v2314_v14  ;;  %v3556_v63 = vpop.eup %3555  ;;  %v2283_v0 = vmul.f32 %v3554_v61, %v4277_v47  ;;  %v2309_v1 = vadd.f32 %v2979_v55, %v2295_v52 }
 0x85b   : > { %2426 = vmatprep.mubr.bf16.mxu0 %v3641_v59  ;;  %v2282_v49 = vmul.f32 %v3556_v63, %v4271_v18 }
 0x85c   : > { %v2315_v27 = vpack.c.bf16 %v2309_v1, %v2308_v6  ;;  %v2297_v7 = vmul.f32 %v2978_v15, %v2283_v0 }
 0x85d   : > { %v3558_v30 = vpop.eup %3557  ;;  %v2296_v8 = vmul.f32 %v2978_v15, %v2282_v49 }
 0x85e   : > { %v3560_v22 = vpop.eup %3559  ;;  %v2285_v4 = vmul.f32 %v3558_v30, %v4289_v16  ;;  %v2311_v45 = vadd.f32 %v2979_v55, %v2297_v7  ;;  %v3449_v16 = vld [vmem:[%s682_s24 + $0x40] sm:$0xff]  }
 0x85f   : > { %v2284_v24 = vmul.f32 %v3560_v22, %v4283_v9  ;;  %v2310_v47 = vadd.f32 %v2979_v55, %v2296_v8  ;;  %v3450_v9 = vld [vmem:[%s682_s24] sm:$0xff]   ;;  %3115 = vmatprep.subr.bf16.mxu1 %v3449_v16 }
 0x860   : > { %v2299_v53 = vmul.f32 %v2978_v15, %v2285_v4  ;;  %3116 = vmatpush3.bf16.msra.mxu1 %v3450_v9 }
 0x861   : > { %v2316_v26 = vpack.c.bf16 %v2311_v45, %v2310_v47  ;;  %v2298_v18 = vmul.f32 %v2978_v15, %v2284_v24  ;;  %3117 = vmatprep.subr.bf16.mxu1 %v3451_v5  ;;  %v3464_v15 = vld [vmem:[%s682_s24 + $0x38] sm:$0xff]  }
 0x862   : > { %2990 = vmatmul.mubr.msk.bf16.gmra.mrb[56].mxu0 %vm719_vm2, %v2315_v27  ;;  %v2313_v2 = vadd.f32 %v2979_v55, %v2299_v53 }
 0x863   : > { %2436 = vmatprep.mubr.bf16.mxu0 %v3641_v59  ;;  %v2312_v60 = vadd.f32 %v2979_v55, %v2298_v18 }
 0x864   : > { %3118 = vmatpush3.bf16.msra.mxu1 %v3452_v20 }
 0x865   : > { %v2317_v28 = vpack.c.bf16 %v2313_v2, %v2312_v60  ;;  %3119 = vmatprep.subr.bf16.mxu1 %v3453_v46 }
 0x86a   : > { %2991 = vmatmul.mubr.msk.bf16.gmra.mrb[60].mxu0 %vm719_vm2, %v2316_v26 }
 0x86b   : > { %2446 = vmatprep.mubr.bf16.mxu0 %v3641_v59  ;;  %v3454_v59 = vld [vmem:[%s682_s24 + $0x10] sm:$0xff]  }
 0x86c   : > { %3120 = vmatpush3.bf16.msra.mxu1 %v3454_v59 }
 0x86d   : > { %3121 = vmatprep.subr.bf16.mxu1 %v3455_v50 }
 0x870   : > { %3122 = vmatpush3.bf16.msra.mxu1 %v3456_v32 }
 0x871   : > { %3123 = vmatprep.subr.bf16.mxu1 %v3457_v33 }
 0x872   : > { %2992 = vmatmul.mubr.msk.bf16.gmra.mrb[64].mxu0 %vm719_vm2, %v2317_v28 }
 0x874   : > { %3124 = vmatpush3.bf16.msra.mxu1 %v3458_v34 }
 0x875   : > { %3125 = vmatprep.subr.bf16.mxu1 %v3459_v40 }
 0x878   : > { %3126 = vmatpush3.bf16.msra.mxu1 %v3460_v29 }
 0x879   : > { %3127 = vmatprep.subr.bf16.mxu1 %v3461_v21 }
 0x87c   : > { %3128 = vmatpush3.bf16.msra.mxu1 %v3462_v31 }
 0x87d   : > { %3129 = vmatprep.subr.bf16.mxu1 %v3463_v36 }
 0x880   : > { %3130 = vmatpush3.bf16.msra.mxu1 %v3464_v15 }
 0x92d   : > { %v2418_v55 = vpop.f32.mrb[52].mxu0 }
 0x92e   : > { %v2419_v57 = vadd.f32 %v2418_v55, %v4334_v41  ;;  %v2420_v11 = vpop.f32.mrb[53].mxu0 }
 0x92f   : > { %v2421_v56 = vadd.f32 %v2420_v11, %v4336_v43  ;;  %v2422_v12 = vpop.f32.mrb[54].mxu0 }
 0x930   : > { %v2473_v17 = vmul.f32 0.044715, %v2419_v57  ;;  %v4341_v19 = vadd.f32 %v2422_v12, %v4334_v41  ;;  %v2424_v44 = vpop.f32.mrb[55].mxu0  ;;  %v2457_v36 = vmul.f32 0.5, %v2419_v57 }
 0x931   : > { %v2474_v48 = vmul.f32 0.044715, %v2421_v56  ;;  %v4344_v14 = vadd.f32 %v2424_v44, %v4336_v43  ;;  %v2458_v44 = vmul.f32 0.5, %v2421_v56 }
 0x932   : > { %v2489_v52 = vmul.f32 %v2473_v17, %v2419_v57  ;;  %v2475_v61 = vmul.f32 0.044715, %v4341_v19 }
 0x933   : > { %v2490_v23 = vmul.f32 %v2474_v48, %v2421_v56  ;;  %v2476_v63 = vmul.f32 0.044715, %v4344_v14 }
 0x934   : > { %v2505_v0 = vmul.f32 %v2489_v52, %v2419_v57  ;;  %v2491_v1 = vmul.f32 %v2475_v61, %v4341_v19 }
 0x935   : > { %v2506_v49 = vmul.f32 %v2490_v23, %v2421_v56  ;;  %v2492_v6 = vmul.f32 %v2476_v63, %v4344_v14  ;;  %v2428_v27 = vpop.f32.mrb[56].mxu0 }
 0x936   : > { %v2521_v7 = vadd.f32 %v2505_v0, %v2419_v57  ;;  %v2507_v30 = vmul.f32 %v2491_v1, %v4341_v19  ;;  %v4352_v8 = vadd.f32 %v2428_v27, %v4334_v41  ;;  %v2430_v22 = vpop.f32.mrb[57].mxu0 }
 0x937   : > { %v2508_v4 = vmul.f32 %v2492_v6, %v4344_v14  ;;  %v2431_v45 = vadd.f32 %v2430_v22, %v4336_v43  ;;  %v2432_v24 = vpop.f32.mrb[58].mxu0  ;;  %v2522_v47 = vadd.f32 %v2506_v49, %v2421_v56  ;;  %v2459_v22 = vmul.f32 0.5, %v4341_v19 }
 0x938   : > { %v2537_v26 = vmul.f32 0.7978846, %v2521_v7  ;;  %v2523_v53 = vadd.f32 %v2507_v30, %v4341_v19  ;;  %v2477_v18 = vmul.f32 0.044715, %v4352_v8  ;;  %v4359_v2 = vadd.f32 %v2432_v24, %v4334_v41  ;;  %v2434_v60 = vpop.f32.mrb[59].mxu0 }
 0x939   : > { %v2478_v28 = vmul.f32 0.044715, %v2431_v45  ;;  %v4362_v16 = vadd.f32 %v2434_v60, %v4336_v43  ;;  %v2524_v9 = vadd.f32 %v2508_v4, %v4344_v14  ;;  %v2538_v5 = vmul.f32 0.7978846, %v2522_v47 }
 0x93a   : > { %3561 = vtanh.f32 %v2537_v26  ;;  %v2539_v20 = vmul.f32 0.7978846, %v2523_v53  ;;  %v2493_v46 = vmul.f32 %v2477_v18, %v4352_v8  ;;  %v2479_v59 = vmul.f32 0.044715, %v4359_v2 }
 0x93b   : > { %v2494_v50 = vmul.f32 %v2478_v28, %v2431_v45  ;;  %v2480_v32 = vmul.f32 0.044715, %v4362_v16  ;;  %v2540_v33 = vmul.f32 0.7978846, %v2524_v9  ;;  %3563 = vtanh.f32 %v2538_v5 }
 0x93c   : > { %3565 = vtanh.f32 %v2539_v20  ;;  %v2509_v34 = vmul.f32 %v2493_v46, %v4352_v8  ;;  %v2495_v40 = vmul.f32 %v2479_v59, %v4359_v2  ;;  %v2460_v24 = vmul.f32 0.5, %v4344_v14 }
 0x93d   : > { %v2510_v29 = vmul.f32 %v2494_v50, %v2431_v45  ;;  %v2496_v21 = vmul.f32 %v2480_v32, %v4362_v16  ;;  %v2438_v31 = vpop.f32.mrb[60].mxu0  ;;  %3567 = vtanh.f32 %v2540_v33  ;;  %v2462_v60 = vmul.f32 0.5, %v2431_v45 }
 0x93e   : > { %v2511_v15 = vmul.f32 %v2495_v40, %v4359_v2  ;;  %v4373_v35 = vadd.f32 %v2438_v31, %v4334_v41  ;;  %v2440_v37 = vpop.f32.mrb[61].mxu0  ;;  %v2525_v11 = vadd.f32 %v2509_v34, %v4352_v8 }
 0x93f   : > { %v2512_v38 = vmul.f32 %v2496_v21, %v4362_v16  ;;  %v4377_v51 = vadd.f32 %v2440_v37, %v4336_v43  ;;  %v2442_v42 = vpop.f32.mrb[62].mxu0  ;;  %v2526_v55 = vadd.f32 %v2510_v29, %v2431_v45 }
 0x940   : > { %v2481_v12 = vmul.f32 0.044715, %v4373_v35  ;;  %v4382_v17 = vadd.f32 %v2442_v42, %v4334_v41  ;;  %v2444_v57 = vpop.f32.mrb[63].mxu0  ;;  %v2527_v48 = vadd.f32 %v2511_v15, %v4359_v2  ;;  %v2541_v49 = vmul.f32 0.7978846, %v2525_v11 }
 0x941   : > { %v2482_v52 = vmul.f32 0.044715, %v4377_v51  ;;  %v4387_v61 = vadd.f32 %v2444_v57, %v4336_v43  ;;  %v2528_v23 = vadd.f32 %v2512_v38, %v4362_v16  ;;  %v2542_v63 = vmul.f32 0.7978846, %v2526_v55 }
 0x942   : > { %v2497_v0 = vmul.f32 %v2481_v12, %v4373_v35  ;;  %v2483_v1 = vmul.f32 0.044715, %v4382_v17  ;;  %v2543_v6 = vmul.f32 0.7978846, %v2527_v48 }
 0x943   : > { %v2498_v27 = vmul.f32 %v2482_v52, %v4377_v51  ;;  %v2484_v56 = vmul.f32 0.044715, %v4387_v61  ;;  %v2544_v7 = vmul.f32 0.7978846, %v2528_v23  ;;  %3569 = vtanh.f32 %v2542_v63 }
 0x944   : > { %v3562_v30 = vpop.eup %3561  ;;  %v2499_v4 = vmul.f32 %v2483_v1, %v4382_v17  ;;  %3571 = vtanh.f32 %v2541_v49  ;;  %v2513_v14 = vmul.f32 %v2497_v0, %v4373_v35  ;;  %v2461_v49 = vmul.f32 0.5, %v4352_v8 }
 0x945   : > { %v3564_v47 = vpop.eup %3563  ;;  %v2500_v26 = vmul.f32 %v2484_v56, %v4387_v61  ;;  %v2448_v53 = vpop.f32.mrb[64].mxu0  ;;  %v2569_v18 = vadd.f32 1.0, %v3562_v30  ;;  %3573 = vtanh.f32 %v2544_v7  ;;  %v2514_v9 = vmul.f32 %v2498_v27, %v4377_v51 }
 0x946   : > { %v3566_v28 = vpop.eup %3565  ;;  %v4400_v5 = vadd.f32 %v2448_v53, %v4334_v41  ;;  %v2450_v20 = vpop.f32.mrb[65].mxu0  ;;  %v2570_v19 = vadd.f32 1.0, %v3564_v47  ;;  %3575 = vtanh.f32 %v2543_v6  ;;  %v2515_v33 = vmul.f32 %v2499_v4, %v4382_v17 }
 0x947   : > { %v3568_v46 = vpop.eup %3567  ;;  %v2516_v59 = vmul.f32 %v2500_v26, %v4387_v61  ;;  %v4405_v50 = vadd.f32 %v2450_v20, %v4336_v43  ;;  %v2452_v32 = vpop.f32.mrb[66].mxu0  ;;  %v2571_v45 = vadd.f32 1.0, %v3566_v28  ;;  %v2585_v37 = vmul.f32 %v2569_v18, %v2457_v36 }
 0x948   : > { %v2485_v34 = vmul.f32 0.044715, %v4400_v5  ;;  %v4410_v40 = vadd.f32 %v2452_v32, %v4334_v41  ;;  %v2454_v29 = vpop.f32.mrb[67].mxu0  ;;  %v2572_v21 = vadd.f32 1.0, %v3568_v46  ;;  %v2586_v55 = vmul.f32 %v2570_v19, %v2458_v44 }
 0x949   : > { %v2486_v31 = vmul.f32 0.044715, %v4405_v50  ;;  %v4414_v15 = vadd.f32 %v2454_v29, %v4336_v43  ;;  %v2587_v38 = vmul.f32 %v2571_v45, %v2459_v22  ;;  %v2530_v12 = vadd.f32 %v2514_v9, %v4377_v51 }
 0x94a   : > { %v2487_v42 = vmul.f32 0.044715, %v4410_v40  ;;  %v2588_v11 = vmul.f32 %v2572_v21, %v2460_v24  ;;  %v2532_v52 = vadd.f32 %v2516_v59, %v4387_v61  ;;  %v2501_v23 = vmul.f32 %v2485_v34, %v4400_v5 }
 0x94b   : > { %v2502_v57 = vmul.f32 %v2486_v31, %v4405_v50  ;;  %v2488_v41 = vmul.f32 0.044715, %v4414_v15  ;;  %v2601_v48 = vpack.c.bf16 %v2587_v38, %v2585_v37  ;;  %v2464_v43 = vmul.f32 0.5, %v4362_v16 }
 0x94c   : > { %v2602_v63 = vpack.c.bf16 %v2588_v11, %v2586_v55  ;;  %v2546_v36 = vmul.f32 0.7978846, %v2530_v12  ;;  %v2503_v1 = vmul.f32 %v2487_v42, %v4410_v40  ;;  %v2548_v6 = vmul.f32 0.7978846, %v2532_v52 }
 0x94d   : > { %v3570_v0 = vpop.eup %3569  ;;  %v2504_v44 = vmul.f32 %v2488_v41, %v4414_v15  ;;  %v2518_v56 = vmul.f32 %v2502_v57, %v4405_v50  ;;  %v2529_v30 = vadd.f32 %v2513_v14, %v4373_v35  ;;  %v2531_v24 = vadd.f32 %v2515_v33, %v4382_v17 }
 0x94e   : > { %v3572_v27 = vpop.eup %3571  ;;  %2745 = vmatprep.mubr.bf16.mxu1 %v2602_v63  ;;  %v2574_v7 = vadd.f32 1.0, %v3570_v0  ;;  %3577 = vtanh.f32 %v2546_v36  ;;  %v2517_v8 = vmul.f32 %v2501_v23, %v4400_v5  ;;  %v2463_v53 = vmul.f32 0.5, %v4359_v2 }
 0x94f   : > { %v3574_v22 = vpop.eup %3573  ;;  %v2520_v16 = vmul.f32 %v2504_v44, %v4414_v15  ;;  %2746 = vmatmul.mubr.bf16.vlgmr.msra.gmra.mrb[44].mxu1 %v2601_v48  ;;  %v2573_v4 = vadd.f32 1.0, %v3572_v27  ;;  %3579 = vtanh.f32 %v2548_v6  ;;  %v2545_v18 = vmul.f32 0.7978846, %v2529_v30 }
 0x950   : > { %v3576_v47 = vpop.eup %3575  ;;  %v2576_v26 = vadd.f32 1.0, %v3574_v22  ;;  %v2519_v28 = vmul.f32 %v2503_v1, %v4410_v40  ;;  %v2590_v9 = vmul.f32 %v2574_v7, %v2462_v60  ;;  %v2547_v19 = vmul.f32 0.7978846, %v2531_v24 }
 0x951   : > { %v2575_v20 = vadd.f32 1.0, %v3576_v47  ;;  %3581 = vtanh.f32 %v2545_v18  ;;  %v2534_v14 = vadd.f32 %v2518_v56, %v4405_v50  ;;  %v2536_v59 = vadd.f32 %v2520_v16, %v4414_v15 }
 0x952   : > { %v2592_v46 = vmul.f32 %v2576_v26, %v2464_v43  ;;  %v2589_v32 = vmul.f32 %v2573_v4, %v2461_v49  ;;  %3583 = vtanh.f32 %v2547_v19  ;;  %v2533_v2 = vadd.f32 %v2517_v8, %v4400_v5 }
 0x953   : > { %v2591_v45 = vmul.f32 %v2575_v20, %v2463_v53  ;;  %v2550_v34 = vmul.f32 0.7978846, %v2534_v14  ;;  %v2552_v29 = vmul.f32 0.7978846, %v2536_v59  ;;  %v2535_v31 = vadd.f32 %v2519_v28, %v4410_v40 }
 0x954   : > { %v2604_v33 = vpack.c.bf16 %v2592_v46, %v2590_v9  ;;  %v2549_v60 = vmul.f32 0.7978846, %v2533_v2  ;;  %v2466_v11 = vmul.f32 0.5, %v4377_v51  ;;  %v2468_v12 = vmul.f32 0.5, %v4387_v61 }
 0x955   : > { %v2603_v21 = vpack.c.bf16 %v2591_v45, %v2589_v32  ;;  %3585 = vtanh.f32 %v2550_v34  ;;  %v2551_v37 = vmul.f32 0.7978846, %v2535_v31  ;;  %v2465_v36 = vmul.f32 0.5, %v4373_v35 }
 0x956   : > { %2753 = vmatprep.mubr.bf16.mxu1 %v2604_v33  ;;  %3587 = vtanh.f32 %v2552_v29  ;;  %v2467_v0 = vmul.f32 0.5, %v4382_v17  ;;  %v2470_v7 = vmul.f32 0.5, %v4405_v50  ;;  %v2472_v30 = vmul.f32 0.5, %v4414_v15  ;;  %v2993_v15 = vld [vmem:[%s2609_s22] ss:$0 sm:$0xff] }
 0x957   : > { %2754 = vmatmul.mubr.bf16.gmra.mrb[48].mxu1 %v2603_v21  ;;  %3589 = vtanh.f32 %v2549_v60  ;;  %v2469_v35 = vmul.f32 0.5, %v4400_v5  ;;  %v2471_v47 = vmul.f32 0.5, %v4410_v40 }
 0x958   : > { %v3578_v38 = vpop.eup %3577  ;;  %3591 = vtanh.f32 %v2551_v37 }
 0x959   : > { %v3580_v42 = vpop.eup %3579  ;;  %v2578_v55 = vadd.f32 1.0, %v3578_v38 }
 0x95a   : > { %v2580_v57 = vadd.f32 1.0, %v3580_v42 }
 0x95b   : > { %v3582_v41 = vpop.eup %3581  ;;  %v2594_v48 = vmul.f32 %v2578_v55, %v2466_v11 }
 0x95c   : > { %v2596_v52 = vmul.f32 %v2580_v57, %v2468_v12  ;;  %v3584_v23 = vpop.eup %3583  ;;  %v2577_v63 = vadd.f32 1.0, %v3582_v41 }
 0x95d   : > { %v2579_v1 = vadd.f32 1.0, %v3584_v23 }
 0x95e   : > { %v2606_v43 = vpack.c.bf16 %v2596_v52, %v2594_v48  ;;  %v2593_v49 = vmul.f32 %v2577_v63, %v2465_v36 }
 0x95f   : > { %v3586_v44 = vpop.eup %3585  ;;  %v2595_v6 = vmul.f32 %v2579_v1, %v2467_v0 }
 0x960   : > { %2761 = vmatprep.mubr.bf16.mxu1 %v2606_v43  ;;  %v3588_v27 = vpop.eup %3587  ;;  %v2582_v51 = vadd.f32 1.0, %v3586_v44 }
 0x961   : > { %v3590_v56 = vpop.eup %3589  ;;  %v2605_v61 = vpack.c.bf16 %v2595_v6, %v2593_v49  ;;  %v2584_v22 = vadd.f32 1.0, %v3588_v27 }
 0x962   : > { %v3592_v16 = vpop.eup %3591  ;;  %v2581_v4 = vadd.f32 1.0, %v3590_v56  ;;  %v2598_v17 = vmul.f32 %v2582_v51, %v2470_v7 }
 0x963   : > { %2762 = vmatmul.mubr.bf16.gmra.mrb[52].mxu1 %v2605_v61  ;;  %v2600_v24 = vmul.f32 %v2584_v22, %v2472_v30  ;;  %v2583_v8 = vadd.f32 1.0, %v3592_v16 }
 0x964   : > { %v2597_v53 = vmul.f32 %v2581_v4, %v2469_v35 }
 0x965   : > { %v2608_v26 = vpack.c.bf16 %v2600_v24, %v2598_v17  ;;  %v2599_v18 = vmul.f32 %v2583_v8, %v2471_v47 }
 0x967   : > { %2769 = vmatprep.mubr.bf16.mxu1 %v2608_v26  ;;  %v2607_v50 = vpack.c.bf16 %v2599_v18, %v2597_v53 }
 0x96b   : > { %2770 = vmatmul.mubr.bf16.gmra.mrb[56].mxu1 %v2607_v50 }
 0xa22   : > { %v3131_v5 = vpop.f32.mrb[44].mxu1 }
 0xa23   : > { %v3132_v28 = vpop.f32.mrb[45].mxu1 }
 0xa24   : > { %v3133_v9 = vadd.f32 %v3132_v28, %v3131_v5  ;;  %v3134_v20 = vpop.f32.mrb[46].mxu1 }
 0xa25   : > { %v3135_v19 = vpop.f32.mrb[47].mxu1 }
 0xa26   : > { %v2748_v40 = vadd.f32 %v3133_v9, %v2993_v15  ;;  %v3136_v46 = vadd.f32 %v3135_v19, %v3134_v20 }
 0xa28   : > { %v2778_v14 = vadd.f32 %v2748_v40, %v4205_v3  ;;  %v2751_v59 = vadd.f32 %v3136_v46, %v2993_v15 }
 0xa2a   : > { %2786 = vst.msk [vmem:[%s3755_s26] sm:$0xff] %vm719_vm2, %v2778_v14  ;;  %v2779_v32 = vadd.f32 %v2751_v59, %v4210_v13  ;;  %v3137_v45 = vpop.f32.mrb[48].mxu1 }
 0xa2b   : > { %v3138_v33 = vpop.f32.mrb[49].mxu1 }
 0xa2c   : > { %2787 = vst.msk [vmem:[%s3755_s26 + $0x8] sm:$0xff] %vm719_vm2, %v2779_v32  ;;  %v3139_v34 = vadd.f32 %v3138_v33, %v3137_v45  ;;  %v3140_v29 = vpop.f32.mrb[50].mxu1 }
 0xa2d   : > { %v3141_v2 = vpop.f32.mrb[51].mxu1 }
 0xa2e   : > { %v2756_v21 = vadd.f32 %v3139_v34, %v2993_v15  ;;  %v3142_v31 = vadd.f32 %v3141_v2, %v3140_v29 }
 0xa30   : > { %v2780_v60 = vadd.f32 %v2756_v21, %v4208_v39  ;;  %v2759_v37 = vadd.f32 %v3142_v31, %v2993_v15 }
 0xa32   : > { %2788 = vst.msk [vmem:[%s3755_s26 + $0x10] sm:$0xff] %vm719_vm2, %v2780_v60  ;;  %v2781_v3 = vadd.f32 %v2759_v37, %v4217_v54 }
 0xa34   : > { %2789 = vst.msk [vmem:[%s3755_s26 + $0x18] sm:$0xff] %vm719_vm2, %v2781_v3 }
 0xa36   : > { %v3143_v13 = vpop.f32.mrb[52].mxu1 }
 0xa37   : > { %v3144_v38 = vpop.f32.mrb[53].mxu1 }
 0xa38   : > { %v3145_v42 = vadd.f32 %v3144_v38, %v3143_v13  ;;  %v3146_v55 = vpop.f32.mrb[54].mxu1 }
 0xa39   : > { %v3147_v11 = vpop.f32.mrb[55].mxu1 }
 0xa3a   : > { %v2764_v12 = vadd.f32 %v3145_v42, %v2993_v15  ;;  %v3148_v57 = vadd.f32 %v3147_v11, %v3146_v55 }
 0xa3c   : > { %v2782_v41 = vadd.f32 %v2764_v12, %v4231_v62  ;;  %v2767_v39 = vadd.f32 %v3148_v57, %v2993_v15 }
 0xa3e   : > { %2790 = vst.msk [vmem:[%s3755_s26 + $0x20] sm:$0xff] %vm719_vm2, %v2782_v41  ;;  %v2783_v48 = vadd.f32 %v2767_v39, %v4238_v58  ;;  %v3149_v52 = vpop.f32.mrb[56].mxu1 }
 0xa3f   : > { %v3150_v54 = vpop.f32.mrb[57].mxu1 }
 0xa40   : > { %2791 = vst.msk [vmem:[%s3755_s26 + $0x28] sm:$0xff] %vm719_vm2, %v2783_v48  ;;  %v3151_v23 = vadd.f32 %v3150_v54, %v3149_v52  ;;  %v3152_v63 = vpop.f32.mrb[58].mxu1 }
 0xa41   : > { %v3153_v43 = vpop.f32.mrb[59].mxu1 }
 0xa42   : > { %v2772_v36 = vadd.f32 %v3151_v23, %v2993_v15  ;;  %v3154_v0 = vadd.f32 %v3153_v43, %v3152_v63 }
 0xa44   : > { %v2784_v1 = vadd.f32 %v2772_v36, %v4236_v10  ;;  %v2775_v44 = vadd.f32 %v3154_v0, %v2993_v15 }
 0xa46   : > { %2792 = vst.msk [vmem:[%s3755_s26 + $0x30] sm:$0xff] %vm719_vm2, %v2784_v1  ;;  %v2785_v62 = vadd.f32 %v2775_v44, %v4242_v25 }
 0xa48   : > { %2793 = vst.msk [vmem:[%s3755_s26 + $0x38] sm:$0xff] %vm719_vm2, %v2785_v62 }
 0xa49 PF: > { %s24_s17 = sadd.s32 1, %s3639_s17   ;;  %s4503_s29 = smov %s3631_s15 }
 0xa4a   : > { %p21_p7 = scmp.ge.s32.totalorder %s24_s17, 6   ;;  %s4504_s30 = smov %s3635_s16 }
 0xa4b   : > { %s4505_s15 = smov %s4508_s18  ;;  %s4506_s16 = smov %s4512_s19 }
 0xa4c   :  { %23 = sbr.rel (!%p21_p7) target bundleno = 3 (0x3), region = 121 }

// kernel: swin_forward.6
= control target key start
LH: loop header
LB: loop body
LE: loop exit
PB: predicated region body
PF: predicated region fallthrough
CT: control target
= control target key end

     0   :  { %s4441_s21 = smov 0   ;;  %s4443_s22 = smov 0   ;;  %s5010_s0 = inlined_call_operand.vmem [shape: f32[2,16,128], index: 0, kind: input, shape index: {}]   ;;  %s5011_s1 = inlined_call_operand.vmem [shape: f32[2,1,128], index: 1, kind: input, shape index: {}]   ;;  %s5012_s2 = inlined_call_operand.vmem [shape: f32[2,1,128], index: 2, kind: input, shape index: {}]   ;;  %s5013_s3 = inlined_call_operand.vmem [shape: bf16[2,12,128,32], index: 3, kind: input, shape index: {}]   ;;  %s5014_s4 = inlined_call_operand.vmem [shape: bf16[2,4,32,128], index: 4, kind: input, shape index: {}]   ;;  %s5015_s5 = inlined_call_operand.vmem [shape: f32[2,1,128], index: 5, kind: input, shape index: {}]   ;;  %s5016_s6 = inlined_call_operand.vmem [shape: f32[2,1,128], index: 6, kind: input, shape index: {}]   ;;  %s5017_s7 = inlined_call_operand.vmem [shape: f32[2,1,128], index: 7, kind: input, shape index: {}]   ;;  %s5018_s8 = inlined_call_operand.vmem [shape: bf16[2,128,512], index: 8, kind: input, shape index: {}]   ;;  %s5019_s9 = inlined_call_operand.vmem [shape: f32[2,1,512], index: 9, kind: input, shape index: {}]   ;;  %s5020_s10 = inlined_call_operand.vmem [shape: bf16[2,512,128], index: 10, kind: input, shape index: {}]   ;;  %s5021_s11 = inlined_call_operand.vmem [shape: f32[2,1,128], index: 11, kind: input, shape index: {}]   ;;  %s5022_s12 = inlined_call_operand.vmem [shape: f32[2,16,128], index: 12, kind: output, shape index: {}]  }
   0x1   :  { %s4445_s23 = smov 0   ;;  %s4447_s24 = smov 0  }
   0x2   :  { %s4449_s25 = smov 0  }
   0x3 LB: > { %s31_s26 = sadd.s32 1, %s4363_s23  ;;  %s34_s27 = sadd.s32 1, %s4367_s24  ;;  %s4371_s25 = sphi %s4449_s25, %s22_s25   ;;  %s4367_s24 = sphi %s4447_s24, %s5026_s24   ;;  %s4363_s23 = sphi %s4445_s23, %s5025_s23   ;;  %s4359_s22 = sphi %s4443_s22, %s5024_s22   ;;  %s4355_s21 = sphi %s4441_s21, %s5023_s21  }
   0x4   : > { %p32_p0 = scmp.ge.s32.totalorder %s31_s26, 2  ;;  %p3341_p1 = scmp.ge.s32.totalorder %s4371_s25, 1 }
   0x5   : > { %p374_p2 = scmp.lt.s32.totalorder %s4371_s25, 5 }
   0x6   : > { %s5028_s26 = smov (%p32_p0, %s31_s26), 0  ;;  %s5030_s27 = smov (!%p32_p0, %s34_s27), %s4367_s24 }
   0x7   : > { %p375_p3 = pnand %p3341_p1, %p374_p2  ;;  %p36_p4 = scmp.ge.s32.totalorder %s5030_s27, 2 }
   0x8   : > { %p416_p5 = scmp.lt.s32.totalorder (!%p375_p3), %s4359_s22, 1  ;;  %p3346_p6 = scmp.ne.s32.totalorder (!%p375_p3), %s4355_s21, 0 }
   0x9   : > { %s5032_s27 = smov (%p36_p4, %s5030_s27), 0  ;;  %378 = sbr.rel (%p375_p3) target bundleno = 2417 (0x971), region = 68 }
  0x10   : > { %s5034_s22 = smov (!%p416_p5, %s4359_s22), 1  ;;  %430 = sbr.rel (%p3346_p6) target bundleno = 23 (0x17), region = 72 }
  0x11   : > { %s3542_s28 = sshll.u32 %s5034_s22, 4 }
  0x12   : > { %s420_s13 = scalar_lea.vmem %s5010_s0, %s3542_s28  ;;  %s4479_s16 = scalar_lea.vmem %s5022_s12, %s3542_s28 }
  0x13   : > { %v431_v0 = vld [vmem:[%s420_s13] sm:$0xff] (!%p3346_p6)  ;;  %v432_v1 = vld [vmem:[%s420_s13 + $0x8] sm:$0xff] (!%p3346_p6) }
  0x14   : > { %433 = vst [vmem:[%s4479_s16] sm:$0xff] (!%p3346_p6), %v431_v0  ;;  %434 = vst [vmem:[%s4479_s16 + $0x8] sm:$0xff] (!%p3346_p6), %v432_v1 }
  0x17 PF: > { %s3544_s17 = smul.u32 768, %s4355_s21  ;;  %v4373_v4 = vmov 0.0   ;;  %vm4374_vm0 = vmmov 0   ;;  %s752_s29 = scalar_lea.vmem %s5011_s1, %s4355_s21  ;;  %vm1876_vm1 = vcmask 261120   ;;  %vm2065_vm2 = vcmask 130048  }
  0x18   : > { %3728 = vmatprep.subr.bf16.mxu0 %v4373_v4  ;;  %3748 = vmatprep.subr.bf16.mxu1 %v4373_v4  ;;  %v3353_v37 = vld [vmem:[%s752_s29] ss:$0 sm:$0xff]  ;;  %s754_s14 = scalar_lea.vmem %s5012_s2, %s4355_s21  ;;  %s3545_s15 = sshll.u32 %s4355_s21, 6 }
  0x19   : > { %s4492_s20 = scalar_lea.vmem %s5013_s3, %s3544_s17  ;;  %3744 = vmatprep.mubr.msk.bf16.mxu0 %vm4374_vm0, %v4373_v4  ;;  %3764 = vmatprep.mubr.msk.bf16.mxu1 %vm4374_vm0, %v4373_v4  ;;  %v3354_v41 = vld [vmem:[%s754_s14] ss:$0 sm:$0xff]  ;;  %s4790_s19 = scalar_lea.vmem %s5014_s4, %s3545_s15 }
  0x1a   : > { %v4091_v5 = vld [vmem:[%s4492_s20] sm:$0xff]   ;;  %v4093_v7 = vld [vmem:[%s4492_s20 + $0x8] sm:$0xff]   ;;  %v4095_v17 = vld [vmem:[%s4492_s20 + $0x10] sm:$0xff]   ;;  %s2562_s28 = scalar_lea.vmem %s5015_s5, %s4355_s21  ;;  %s3546_s29 = sshll.u32 %s4355_s21, 8 }
  0x1b   : > { %v435_v2 = vld [vmem:[%s4479_s16] sm:$0xff]  ;;  %v436_v3 = vld [vmem:[%s4479_s16 + $0x8] sm:$0xff]  ;;  %3729 = vmatpush3.bf16.msra.mxu0 %v4091_v5  ;;  %v4096_v18 = vld [vmem:[%s4492_s20 + $0x50] sm:$0xff]   ;;  %s4850_s14 = scalar_lea.vmem %s5018_s8, %s3546_s29  ;;  %s4863_s18 = scalar_lea.vmem %s5020_s10, %s3546_s29 }
  0x1c   : > { %756 = vadd.xlane.f32.xlu0 %v435_v2  ;;  %v4092_v6 = vld [vmem:[%s4492_s20 + $0x40] sm:$0xff]   ;;  %3730 = vmatprep.subr.bf16.mxu0 %v4373_v4  ;;  %v4094_v8 = vld [vmem:[%s4492_s20 + $0x48] sm:$0xff]   ;;  %v4097_v19 = vld [vmem:[%s4492_s20 + $0x18] sm:$0xff]   ;;  %s2580_s22 = scalar_lea.vmem %s5016_s6, %s4355_s21  ;;  %s2582_s30 = scalar_lea.vmem %s5017_s7, %s4355_s21 }
  0x1d   : > { %3749 = vmatpush3.bf16.msra.mxu1 %v4092_v6  ;;  %v4098_v20 = vld [vmem:[%s4492_s20 + $0x58] sm:$0xff]   ;;  %v4099_v21 = vld [vmem:[%s4492_s20 + $0x20] sm:$0xff]   ;;  %v4101_v23 = vld [vmem:[%s4492_s20 + $0x28] sm:$0xff]   ;;  %s3474_s13 = sshll.u32 %s4355_s21, 2 }
  0x1e   : > { %3750 = vmatprep.subr.bf16.mxu1 %v4373_v4  ;;  %v4100_v22 = vld [vmem:[%s4492_s20 + $0x60] sm:$0xff]   ;;  %v4102_v24 = vld [vmem:[%s4492_s20 + $0x68] sm:$0xff]   ;;  %v4103_v25 = vld [vmem:[%s4492_s20 + $0x30] sm:$0xff]   ;;  %s2624_s17 = scalar_lea.vmem %s5019_s9, %s3474_s13 }
  0x1f   : > { %3731 = vmatpush3.bf16.msra.mxu0 %v4093_v7  ;;  %v4104_v26 = vld [vmem:[%s4492_s20 + $0x70] sm:$0xff]   ;;  %v4105_v27 = vld [vmem:[%s4492_s20 + $0x38] sm:$0xff]   ;;  %v4107_v45 = vld [vmem:[%s4492_s20 + $0x80] sm:$0xff]  }
  0x20   : > { %758 = vadd.xlane.f32.xlu0 %v436_v3  ;;  %3732 = vmatprep.subr.bf16.mxu0 %v4373_v4  ;;  %v4106_v28 = vld [vmem:[%s4492_s20 + $0x78] sm:$0xff]   ;;  %v4108_v46 = vld [vmem:[%s4492_s20 + $0xc0] sm:$0xff]   ;;  %v4109_v48 = vld [vmem:[%s4492_s20 + $0x88] sm:$0xff]  }
  0x21   : > { %3751 = vmatpush3.bf16.msra.mxu1 %v4094_v8  ;;  %v4110_v49 = vld [vmem:[%s4492_s20 + $0xc8] sm:$0xff]   ;;  %v4111_v50 = vld [vmem:[%s4492_s20 + $0x90] sm:$0xff]   ;;  %v4113_v52 = vld [vmem:[%s4492_s20 + $0x98] sm:$0xff]  }
  0x22   : > { %3752 = vmatprep.subr.bf16.mxu1 %v4373_v4  ;;  %v4112_v51 = vld [vmem:[%s4492_s20 + $0xd0] sm:$0xff]   ;;  %v4114_v53 = vld [vmem:[%s4492_s20 + $0xd8] sm:$0xff]   ;;  %v4115_v54 = vld [vmem:[%s4492_s20 + $0xa0] sm:$0xff]  }
  0x23   : > { %3733 = vmatpush3.bf16.msra.mxu0 %v4095_v17  ;;  %v4116_v55 = vld [vmem:[%s4492_s20 + $0xe0] sm:$0xff]   ;;  %v4117_v56 = vld [vmem:[%s4492_s20 + $0xa8] sm:$0xff]   ;;  %v4119_v58 = vld [vmem:[%s4492_s20 + $0xb0] sm:$0xff]  }
  0x24   : > { %3734 = vmatprep.subr.bf16.mxu0 %v4373_v4  ;;  %v4118_v57 = vld [vmem:[%s4492_s20 + $0xe8] sm:$0xff]   ;;  %v4120_v59 = vld [vmem:[%s4492_s20 + $0xf0] sm:$0xff]   ;;  %v4121_v60 = vld [vmem:[%s4492_s20 + $0xb8] sm:$0xff]  }
  0x25   : > { %3753 = vmatpush3.bf16.msra.mxu1 %v4096_v18  ;;  %v4122_v61 = vld [vmem:[%s4492_s20 + $0xf8] sm:$0xff]   ;;  %v4123_v62 = vld [vmem:[%s4492_s20 + $0x100] sm:$0xff]   ;;  %v4125_v0 = vld [vmem:[%s4492_s20 + $0x108] sm:$0xff]  }
  0x26   : > { %3754 = vmatprep.subr.bf16.mxu1 %v4373_v4  ;;  %v4124_v63 = vld [vmem:[%s4492_s20 + $0x140] sm:$0xff]   ;;  %v4126_v1 = vld [vmem:[%s4492_s20 + $0x148] sm:$0xff]   ;;  %v4129_v5 = vld [vmem:[%s4492_s20 + $0x118] sm:$0xff]  }
  0x27   : > { %3735 = vmatpush3.bf16.msra.mxu0 %v4097_v19  ;;  %v4130_v6 = vld [vmem:[%s4492_s20 + $0x158] sm:$0xff]   ;;  %v4131_v7 = vld [vmem:[%s4492_s20 + $0x120] sm:$0xff]   ;;  %v4141_v17 = vld [vmem:[%s4492_s20 + $0x188] sm:$0xff]  }
  0x28   : > { %3736 = vmatprep.subr.bf16.mxu0 %v4373_v4  ;;  %v4132_v8 = vld [vmem:[%s4492_s20 + $0x160] sm:$0xff]   ;;  %v4142_v18 = vld [vmem:[%s4492_s20 + $0x1c8] sm:$0xff]   ;;  %v4143_v19 = vld [vmem:[%s4492_s20 + $0x190] sm:$0xff]  }
  0x29   : > { %3755 = vmatpush3.bf16.msra.mxu1 %v4098_v20  ;;  %v4144_v20 = vld [vmem:[%s4492_s20 + $0x1d0] sm:$0xff]  }
  0x2a   : > { %3756 = vmatprep.subr.bf16.mxu1 %v4373_v4 }
  0x2b   : > { %3737 = vmatpush3.bf16.msra.mxu0 %v4099_v21  ;;  %v4145_v21 = vld [vmem:[%s4492_s20 + $0x198] sm:$0xff]  }
  0x2c   : > { %3738 = vmatprep.subr.bf16.mxu0 %v4373_v4 }
  0x2d   : > { %3757 = vmatpush3.bf16.msra.mxu1 %v4100_v22  ;;  %v4146_v22 = vld [vmem:[%s4492_s20 + $0x1d8] sm:$0xff]  }
  0x2e   : > { %3758 = vmatprep.subr.bf16.mxu1 %v4373_v4 }
  0x2f   : > { %3739 = vmatpush3.bf16.msra.mxu0 %v4101_v23  ;;  %v4147_v23 = vld [vmem:[%s4492_s20 + $0x1a0] sm:$0xff]  }
  0x30   : > { %3740 = vmatprep.subr.bf16.mxu0 %v4373_v4 }
  0x31   : > { %3759 = vmatpush3.bf16.msra.mxu1 %v4102_v24  ;;  %v4148_v24 = vld [vmem:[%s4492_s20 + $0x1e0] sm:$0xff]  }
  0x32   : > { %3760 = vmatprep.subr.bf16.mxu1 %v4373_v4 }
  0x33   : > { %3741 = vmatpush3.bf16.msra.mxu0 %v4103_v25  ;;  %v4149_v25 = vld [vmem:[%s4492_s20 + $0x1a8] sm:$0xff]  }
  0x34   : > { %3742 = vmatprep.subr.bf16.mxu0 %v4373_v4 }
  0x35   : > { %3761 = vmatpush3.bf16.msra.mxu1 %v4104_v26  ;;  %v4150_v26 = vld [vmem:[%s4492_s20 + $0x1e8] sm:$0xff]  }
  0x36   : > { %3762 = vmatprep.subr.bf16.mxu1 %v4373_v4 }
  0x37   : > { %3743 = vmatpush3.bf16.msra.mxu0 %v4105_v27  ;;  %v4151_v27 = vld [vmem:[%s4492_s20 + $0x1b0] sm:$0xff]  }
  0x38   : > { %3768 = vmatprep.subr.bf16.mxu0 %v4373_v4 }
  0x39   : > { %3763 = vmatpush3.bf16.msra.mxu1 %v4106_v28  ;;  %v4152_v28 = vld [vmem:[%s4492_s20 + $0x1f0] sm:$0xff]  }
  0x3a   : > { %3788 = vmatprep.subr.bf16.mxu1 %v4373_v4 }
  0xa9   : > { %v757_v9 = vpop.xlane.xlu0 %756 }
  0xaa   : > { %v761_v10 = vmul.f32 0.0078125, %v757_v9  ;;  %v4133_v9 = vld [vmem:[%s4492_s20 + $0x128] sm:$0xff]  }
  0xac   : > { %v763_v11 = vsub.f32 %v435_v2, %v761_v10  ;;  %v4127_v2 = vld [vmem:[%s4492_s20 + $0x110] sm:$0xff]   ;;  %v4134_v10 = vld [vmem:[%s4492_s20 + $0x168] sm:$0xff]  }
  0xad   : > { %v759_v12 = vpop.xlane.xlu0 %758 }
  0xae   : > { %v762_v13 = vmul.f32 0.0078125, %v759_v12  ;;  %v765_v14 = vmul.f32 %v763_v11, %v763_v11  ;;  %v4136_v12 = vld [vmem:[%s4492_s20 + $0x170] sm:$0xff]  }
  0xb0   : > { %v764_v15 = vsub.f32 %v436_v3, %v762_v13  ;;  %767 = vadd.xlane.f32.xlu1 %v765_v14  ;;  %v4128_v3 = vld [vmem:[%s4492_s20 + $0x150] sm:$0xff]   ;;  %v4137_v13 = vld [vmem:[%s4492_s20 + $0x138] sm:$0xff]  }
  0xb1   : > { %v4138_v14 = vld [vmem:[%s4492_s20 + $0x178] sm:$0xff]  }
  0xb2   : > { %v766_v16 = vmul.f32 %v764_v15, %v764_v15 }
  0xb4   : > { %769 = vadd.xlane.f32.xlu1 %v766_v16  ;;  %v4140_v16 = vld [vmem:[%s4492_s20 + $0x1c0] sm:$0xff]  }
 0x13d   : > { %v768_v29 = vpop.xlane.xlu1 %767 }
 0x13e   : > { %v771_v30 = vmul.f32 0.0078125, %v768_v29  ;;  %v4153_v29 = vld [vmem:[%s4492_s20 + $0x1b8] sm:$0xff]  }
 0x140   : > { %v773_v31 = vadd.f32 1e-05, %v771_v30  ;;  %v4154_v30 = vld [vmem:[%s4492_s20 + $0x1f8] sm:$0xff]  }
 0x141   : > { %v770_v32 = vpop.xlane.xlu1 %769 }
 0x142   : > { %4275 = vrsqrt.f32 %v773_v31  ;;  %v772_v33 = vmul.f32 0.0078125, %v770_v32  ;;  %v4155_v31 = vld [vmem:[%s4492_s20 + $0x200] sm:$0xff]  }
 0x143   : > { %v4156_v32 = vld [vmem:[%s4492_s20 + $0x240] sm:$0xff]  }
 0x144   : > { %v774_v34 = vadd.f32 1e-05, %v772_v33  ;;  %v4157_v33 = vld [vmem:[%s4492_s20 + $0x208] sm:$0xff]  }
 0x146   : > { %4277 = vrsqrt.f32 %v774_v34  ;;  %v4158_v34 = vld [vmem:[%s4492_s20 + $0x248] sm:$0xff]  }
 0x14c   : > { %v4276_v35 = vpop.eup %4275 }
 0x14d   : > { %v777_v36 = vmul.f32 %v4276_v35, %v763_v11  ;;  %v4135_v11 = vld [vmem:[%s4492_s20 + $0x130] sm:$0xff]  }
 0x14e   : > { %v4159_v35 = vld [vmem:[%s4492_s20 + $0x210] sm:$0xff]  }
 0x14f   : > { %v785_v39 = vmul.f32 %v3353_v37, %v777_v36  ;;  %v4160_v36 = vld [vmem:[%s4492_s20 + $0x250] sm:$0xff]  }
 0x150   : > { %v4278_v38 = vpop.eup %4277 }
 0x151   : > { %v778_v40 = vmul.f32 %v4278_v38, %v764_v15  ;;  %v793_v43 = vadd.f32 %v3354_v41, %v785_v39  ;;  %v4139_v15 = vld [vmem:[%s4492_s20 + $0x180] sm:$0xff]   ;;  %v4162_v38 = vld [vmem:[%s4492_s20 + $0x258] sm:$0xff]  }
 0x152   : > { %v4163_v39 = vld [vmem:[%s4492_s20 + $0x220] sm:$0xff]  }
 0x153   : > { %v786_v42 = vmul.f32 %v3353_v37, %v778_v40  ;;  %v4161_v37 = vld [vmem:[%s4492_s20 + $0x218] sm:$0xff]   ;;  %v4164_v40 = vld [vmem:[%s4492_s20 + $0x260] sm:$0xff]  }
 0x155   : > { %v794_v44 = vadd.f32 %v3354_v41, %v786_v42  ;;  %v4165_v41 = vld [vmem:[%s4492_s20 + $0x228] sm:$0xff]  }
 0x156   : > { %v4166_v42 = vld [vmem:[%s4492_s20 + $0x268] sm:$0xff]  }
 0x157   : > { %v4540_v47 = vpack.c.bf16 %v794_v44, %v793_v43  ;;  %v4167_v43 = vld [vmem:[%s4492_s20 + $0x230] sm:$0xff]  }
 0x158   : > { %v4168_v44 = vld [vmem:[%s4492_s20 + $0x270] sm:$0xff]  }
 0x159   : > { %3745 = vmatmul.mubr.bf16.vlgmr.msra.gmra.mrb[0].mxu0 %v4540_v47  ;;  %3765 = vmatmul.mubr.bf16.vlgmr.msra.gmra.mrb[0].mxu1 %v4540_v47 }
 0x15a   : > { %3769 = vmatpush3.bf16.msra.mxu0 %v4107_v45  ;;  %3789 = vmatpush3.bf16.msra.mxu1 %v4108_v46  ;;  %v4169_v45 = vld [vmem:[%s4492_s20 + $0x238] sm:$0xff]  }
 0x15b   : > { %3770 = vmatprep.subr.bf16.mxu0 %v4373_v4  ;;  %3790 = vmatprep.subr.bf16.mxu1 %v4373_v4  ;;  %v4170_v46 = vld [vmem:[%s4492_s20 + $0x278] sm:$0xff]  }
 0x15c   : > { %3784 = vmatprep.mubr.msk.bf16.mxu0 %vm4374_vm0, %v4373_v4  ;;  %3804 = vmatprep.mubr.msk.bf16.mxu1 %vm4374_vm0, %v4373_v4 }
 0x15e   : > { %3771 = vmatpush3.bf16.msra.mxu0 %v4109_v48  ;;  %3791 = vmatpush3.bf16.msra.mxu1 %v4110_v49  ;;  %v4171_v48 = vld [vmem:[%s4492_s20 + $0x280] sm:$0xff]  }
 0x15f   : > { %3772 = vmatprep.subr.bf16.mxu0 %v4373_v4  ;;  %3792 = vmatprep.subr.bf16.mxu1 %v4373_v4  ;;  %v4172_v49 = vld [vmem:[%s4492_s20 + $0x2c0] sm:$0xff]  }
 0x162   : > { %3773 = vmatpush3.bf16.msra.mxu0 %v4111_v50  ;;  %3793 = vmatpush3.bf16.msra.mxu1 %v4112_v51  ;;  %v4173_v50 = vld [vmem:[%s4492_s20 + $0x288] sm:$0xff]  }
 0x163   : > { %3774 = vmatprep.subr.bf16.mxu0 %v4373_v4  ;;  %3794 = vmatprep.subr.bf16.mxu1 %v4373_v4  ;;  %v4174_v51 = vld [vmem:[%s4492_s20 + $0x2c8] sm:$0xff]  }
 0x166   : > { %3775 = vmatpush3.bf16.msra.mxu0 %v4113_v52  ;;  %3795 = vmatpush3.bf16.msra.mxu1 %v4114_v53  ;;  %v4175_v52 = vld [vmem:[%s4492_s20 + $0x290] sm:$0xff]  }
 0x167   : > { %3776 = vmatprep.subr.bf16.mxu0 %v4373_v4  ;;  %3796 = vmatprep.subr.bf16.mxu1 %v4373_v4  ;;  %v4176_v53 = vld [vmem:[%s4492_s20 + $0x2d0] sm:$0xff]  }
 0x16a   : > { %3777 = vmatpush3.bf16.msra.mxu0 %v4115_v54  ;;  %3797 = vmatpush3.bf16.msra.mxu1 %v4116_v55  ;;  %v4177_v54 = vld [vmem:[%s4492_s20 + $0x298] sm:$0xff]  }
 0x16b   : > { %3778 = vmatprep.subr.bf16.mxu0 %v4373_v4  ;;  %3798 = vmatprep.subr.bf16.mxu1 %v4373_v4  ;;  %v4178_v55 = vld [vmem:[%s4492_s20 + $0x2d8] sm:$0xff]  }
 0x16e   : > { %3779 = vmatpush3.bf16.msra.mxu0 %v4117_v56  ;;  %3799 = vmatpush3.bf16.msra.mxu1 %v4118_v57  ;;  %v4179_v56 = vld [vmem:[%s4492_s20 + $0x2a0] sm:$0xff]  }
 0x16f   : > { %3780 = vmatprep.subr.bf16.mxu0 %v4373_v4  ;;  %3800 = vmatprep.subr.bf16.mxu1 %v4373_v4  ;;  %v4180_v57 = vld [vmem:[%s4492_s20 + $0x2e0] sm:$0xff]  }
 0x172   : > { %3781 = vmatpush3.bf16.msra.mxu0 %v4119_v58  ;;  %3801 = vmatpush3.bf16.msra.mxu1 %v4120_v59  ;;  %v4181_v58 = vld [vmem:[%s4492_s20 + $0x2a8] sm:$0xff]  }
 0x173   : > { %3782 = vmatprep.subr.bf16.mxu0 %v4373_v4  ;;  %3802 = vmatprep.subr.bf16.mxu1 %v4373_v4  ;;  %v4182_v59 = vld [vmem:[%s4492_s20 + $0x2e8] sm:$0xff]  }
 0x176   : > { %3783 = vmatpush3.bf16.msra.mxu0 %v4121_v60  ;;  %3803 = vmatpush3.bf16.msra.mxu1 %v4122_v61  ;;  %v4183_v60 = vld [vmem:[%s4492_s20 + $0x2b0] sm:$0xff]  }
 0x177   : > { %3808 = vmatprep.subr.bf16.mxu0 %v4373_v4  ;;  %3828 = vmatprep.subr.bf16.mxu1 %v4373_v4  ;;  %v4184_v61 = vld [vmem:[%s4492_s20 + $0x2f0] sm:$0xff]  }
 0x179   : > { %3785 = vmatmul.mubr.bf16.vlgmr.msra.gmra.mrb[4].mxu0 %v4540_v47  ;;  %3805 = vmatmul.mubr.bf16.vlgmr.msra.gmra.mrb[4].mxu1 %v4540_v47 }
 0x17a   : > { %3809 = vmatpush3.bf16.msra.mxu0 %v4123_v62  ;;  %3829 = vmatpush3.bf16.msra.mxu1 %v4124_v63  ;;  %v4185_v62 = vld [vmem:[%s4492_s20 + $0x2b8] sm:$0xff]  }
 0x17b   : > { %3810 = vmatprep.subr.bf16.mxu0 %v4373_v4  ;;  %3830 = vmatprep.subr.bf16.mxu1 %v4373_v4  ;;  %v4186_v63 = vld [vmem:[%s4492_s20 + $0x2f8] sm:$0xff]   ;;  %s2969_s20 = scalar_lea.vmem %s5021_s11, %s4355_s21 }
 0x17c   : > { %3824 = vmatprep.mubr.msk.bf16.mxu0 %vm4374_vm0, %v4373_v4  ;;  %3844 = vmatprep.mubr.msk.bf16.mxu1 %vm4374_vm0, %v4373_v4 }
 0x17e   : > { %3811 = vmatpush3.bf16.msra.mxu0 %v4125_v0  ;;  %3831 = vmatpush3.bf16.msra.mxu1 %v4126_v1 }
 0x17f   : > { %3812 = vmatprep.subr.bf16.mxu0 %v4373_v4  ;;  %3832 = vmatprep.subr.bf16.mxu1 %v4373_v4 }
 0x182   : > { %3813 = vmatpush3.bf16.msra.mxu0 %v4127_v2  ;;  %3833 = vmatpush3.bf16.msra.mxu1 %v4128_v3 }
 0x183   : > { %3814 = vmatprep.subr.bf16.mxu0 %v4373_v4  ;;  %3834 = vmatprep.subr.bf16.mxu1 %v4373_v4 }
 0x186   : > { %3815 = vmatpush3.bf16.msra.mxu0 %v4129_v5  ;;  %3835 = vmatpush3.bf16.msra.mxu1 %v4130_v6 }
 0x187   : > { %3816 = vmatprep.subr.bf16.mxu0 %v4373_v4  ;;  %3836 = vmatprep.subr.bf16.mxu1 %v4373_v4 }
 0x18a   : > { %3817 = vmatpush3.bf16.msra.mxu0 %v4131_v7  ;;  %3837 = vmatpush3.bf16.msra.mxu1 %v4132_v8 }
 0x18b   : > { %3818 = vmatprep.subr.bf16.mxu0 %v4373_v4  ;;  %3838 = vmatprep.subr.bf16.mxu1 %v4373_v4 }
 0x18e   : > { %3819 = vmatpush3.bf16.msra.mxu0 %v4133_v9  ;;  %3839 = vmatpush3.bf16.msra.mxu1 %v4134_v10 }
 0x18f   : > { %3820 = vmatprep.subr.bf16.mxu0 %v4373_v4  ;;  %3840 = vmatprep.subr.bf16.mxu1 %v4373_v4 }
 0x192   : > { %3821 = vmatpush3.bf16.msra.mxu0 %v4135_v11  ;;  %3841 = vmatpush3.bf16.msra.mxu1 %v4136_v12 }
 0x193   : > { %3822 = vmatprep.subr.bf16.mxu0 %v4373_v4  ;;  %3842 = vmatprep.subr.bf16.mxu1 %v4373_v4 }
 0x196   : > { %3823 = vmatpush3.bf16.msra.mxu0 %v4137_v13  ;;  %3843 = vmatpush3.bf16.msra.mxu1 %v4138_v14 }
 0x197   : > { %3848 = vmatprep.subr.bf16.mxu0 %v4373_v4  ;;  %3868 = vmatprep.subr.bf16.mxu1 %v4373_v4 }
 0x199   : > { %3825 = vmatmul.mubr.bf16.vlgmr.msra.gmra.mrb[8].mxu0 %v4540_v47  ;;  %3845 = vmatmul.mubr.bf16.vlgmr.msra.gmra.mrb[8].mxu1 %v4540_v47 }
 0x19a   : > { %3849 = vmatpush3.bf16.msra.mxu0 %v4139_v15  ;;  %3869 = vmatpush3.bf16.msra.mxu1 %v4140_v16 }
 0x19b   : > { %3850 = vmatprep.subr.bf16.mxu0 %v4373_v4  ;;  %3870 = vmatprep.subr.bf16.mxu1 %v4373_v4 }
 0x19c   : > { %3864 = vmatprep.mubr.msk.bf16.mxu0 %vm4374_vm0, %v4373_v4  ;;  %3884 = vmatprep.mubr.msk.bf16.mxu1 %vm4374_vm0, %v4373_v4 }
 0x19e   : > { %3851 = vmatpush3.bf16.msra.mxu0 %v4141_v17  ;;  %3871 = vmatpush3.bf16.msra.mxu1 %v4142_v18 }
 0x19f   : > { %3852 = vmatprep.subr.bf16.mxu0 %v4373_v4  ;;  %3872 = vmatprep.subr.bf16.mxu1 %v4373_v4 }
 0x1a2   : > { %3853 = vmatpush3.bf16.msra.mxu0 %v4143_v19  ;;  %3873 = vmatpush3.bf16.msra.mxu1 %v4144_v20 }
 0x1a3   : > { %3854 = vmatprep.subr.bf16.mxu0 %v4373_v4  ;;  %3874 = vmatprep.subr.bf16.mxu1 %v4373_v4 }
 0x1a6   : > { %3855 = vmatpush3.bf16.msra.mxu0 %v4145_v21  ;;  %3875 = vmatpush3.bf16.msra.mxu1 %v4146_v22 }
 0x1a7   : > { %3856 = vmatprep.subr.bf16.mxu0 %v4373_v4  ;;  %3876 = vmatprep.subr.bf16.mxu1 %v4373_v4 }
 0x1aa   : > { %3857 = vmatpush3.bf16.msra.mxu0 %v4147_v23  ;;  %3877 = vmatpush3.bf16.msra.mxu1 %v4148_v24 }
 0x1ab   : > { %3858 = vmatprep.subr.bf16.mxu0 %v4373_v4  ;;  %3878 = vmatprep.subr.bf16.mxu1 %v4373_v4 }
 0x1ae   : > { %3859 = vmatpush3.bf16.msra.mxu0 %v4149_v25  ;;  %3879 = vmatpush3.bf16.msra.mxu1 %v4150_v26 }
 0x1af   : > { %3860 = vmatprep.subr.bf16.mxu0 %v4373_v4  ;;  %3880 = vmatprep.subr.bf16.mxu1 %v4373_v4 }
 0x1b2   : > { %3861 = vmatpush3.bf16.msra.mxu0 %v4151_v27  ;;  %3881 = vmatpush3.bf16.msra.mxu1 %v4152_v28 }
 0x1b3   : > { %3862 = vmatprep.subr.bf16.mxu0 %v4373_v4  ;;  %3882 = vmatprep.subr.bf16.mxu1 %v4373_v4 }
 0x1b6   : > { %3863 = vmatpush3.bf16.msra.mxu0 %v4153_v29  ;;  %3883 = vmatpush3.bf16.msra.mxu1 %v4154_v30 }
 0x1b7   : > { %3888 = vmatprep.subr.bf16.mxu0 %v4373_v4  ;;  %3908 = vmatprep.subr.bf16.mxu1 %v4373_v4 }
 0x1b9   : > { %3865 = vmatmul.mubr.bf16.vlgmr.msra.gmra.mrb[12].mxu0 %v4540_v47  ;;  %3885 = vmatmul.mubr.bf16.vlgmr.msra.gmra.mrb[12].mxu1 %v4540_v47 }
 0x1ba   : > { %3889 = vmatpush3.bf16.msra.mxu0 %v4155_v31  ;;  %3909 = vmatpush3.bf16.msra.mxu1 %v4156_v32 }
 0x1bb   : > { %3890 = vmatprep.subr.bf16.mxu0 %v4373_v4  ;;  %3910 = vmatprep.subr.bf16.mxu1 %v4373_v4 }
 0x1bc   : > { %3904 = vmatprep.mubr.msk.bf16.mxu0 %vm4374_vm0, %v4373_v4  ;;  %3924 = vmatprep.mubr.msk.bf16.mxu1 %vm4374_vm0, %v4373_v4 }
 0x1be   : > { %3891 = vmatpush3.bf16.msra.mxu0 %v4157_v33  ;;  %3911 = vmatpush3.bf16.msra.mxu1 %v4158_v34 }
 0x1bf   : > { %3892 = vmatprep.subr.bf16.mxu0 %v4373_v4  ;;  %3912 = vmatprep.subr.bf16.mxu1 %v4373_v4 }
 0x1c2   : > { %3893 = vmatpush3.bf16.msra.mxu0 %v4159_v35  ;;  %3913 = vmatpush3.bf16.msra.mxu1 %v4160_v36 }
 0x1c3   : > { %3894 = vmatprep.subr.bf16.mxu0 %v4373_v4  ;;  %3914 = vmatprep.subr.bf16.mxu1 %v4373_v4 }
 0x1c6   : > { %3895 = vmatpush3.bf16.msra.mxu0 %v4161_v37  ;;  %3915 = vmatpush3.bf16.msra.mxu1 %v4162_v38 }
 0x1c7   : > { %3896 = vmatprep.subr.bf16.mxu0 %v4373_v4  ;;  %3916 = vmatprep.subr.bf16.mxu1 %v4373_v4 }
 0x1ca   : > { %3897 = vmatpush3.bf16.msra.mxu0 %v4163_v39  ;;  %3917 = vmatpush3.bf16.msra.mxu1 %v4164_v40 }
 0x1cb   : > { %3898 = vmatprep.subr.bf16.mxu0 %v4373_v4  ;;  %3918 = vmatprep.subr.bf16.mxu1 %v4373_v4 }
 0x1ce   : > { %3899 = vmatpush3.bf16.msra.mxu0 %v4165_v41  ;;  %3919 = vmatpush3.bf16.msra.mxu1 %v4166_v42 }
 0x1cf   : > { %3900 = vmatprep.subr.bf16.mxu0 %v4373_v4  ;;  %3920 = vmatprep.subr.bf16.mxu1 %v4373_v4 }
 0x1d2   : > { %3901 = vmatpush3.bf16.msra.mxu0 %v4167_v43  ;;  %3921 = vmatpush3.bf16.msra.mxu1 %v4168_v44 }
 0x1d3   : > { %3902 = vmatprep.subr.bf16.mxu0 %v4373_v4  ;;  %3922 = vmatprep.subr.bf16.mxu1 %v4373_v4 }
 0x1d6   : > { %3903 = vmatpush3.bf16.msra.mxu0 %v4169_v45  ;;  %3923 = vmatpush3.bf16.msra.mxu1 %v4170_v46 }
 0x1d7   : > { %3928 = vmatprep.subr.bf16.mxu0 %v4373_v4  ;;  %3948 = vmatprep.subr.bf16.mxu1 %v4373_v4 }
 0x1d9   : > { %3905 = vmatmul.mubr.bf16.vlgmr.msra.gmra.mrb[16].mxu0 %v4540_v47  ;;  %3925 = vmatmul.mubr.bf16.vlgmr.msra.gmra.mrb[16].mxu1 %v4540_v47 }
 0x1da   : > { %3929 = vmatpush3.bf16.msra.mxu0 %v4171_v48  ;;  %3949 = vmatpush3.bf16.msra.mxu1 %v4172_v49 }
 0x1db   : > { %3930 = vmatprep.subr.bf16.mxu0 %v4373_v4  ;;  %3950 = vmatprep.subr.bf16.mxu1 %v4373_v4 }
 0x1dc   : > { %3944 = vmatprep.mubr.msk.bf16.mxu0 %vm4374_vm0, %v4373_v4  ;;  %3964 = vmatprep.mubr.msk.bf16.mxu1 %vm4374_vm0, %v4373_v4 }
 0x1de   : > { %3931 = vmatpush3.bf16.msra.mxu0 %v4173_v50  ;;  %3951 = vmatpush3.bf16.msra.mxu1 %v4174_v51 }
 0x1df   : > { %3932 = vmatprep.subr.bf16.mxu0 %v4373_v4  ;;  %3952 = vmatprep.subr.bf16.mxu1 %v4373_v4 }
 0x1e2   : > { %3933 = vmatpush3.bf16.msra.mxu0 %v4175_v52  ;;  %3953 = vmatpush3.bf16.msra.mxu1 %v4176_v53 }
 0x1e3   : > { %3934 = vmatprep.subr.bf16.mxu0 %v4373_v4  ;;  %3954 = vmatprep.subr.bf16.mxu1 %v4373_v4 }
 0x1e6   : > { %3935 = vmatpush3.bf16.msra.mxu0 %v4177_v54  ;;  %3955 = vmatpush3.bf16.msra.mxu1 %v4178_v55 }
 0x1e7   : > { %3936 = vmatprep.subr.bf16.mxu0 %v4373_v4  ;;  %3956 = vmatprep.subr.bf16.mxu1 %v4373_v4 }
 0x1ea   : > { %3937 = vmatpush3.bf16.msra.mxu0 %v4179_v56  ;;  %3957 = vmatpush3.bf16.msra.mxu1 %v4180_v57 }
 0x1eb   : > { %3938 = vmatprep.subr.bf16.mxu0 %v4373_v4  ;;  %3958 = vmatprep.subr.bf16.mxu1 %v4373_v4 }
 0x1ee   : > { %3939 = vmatpush3.bf16.msra.mxu0 %v4181_v58  ;;  %3959 = vmatpush3.bf16.msra.mxu1 %v4182_v59 }
 0x1ef   : > { %3940 = vmatprep.subr.bf16.mxu0 %v4373_v4  ;;  %3960 = vmatprep.subr.bf16.mxu1 %v4373_v4 }
 0x1f2   : > { %3941 = vmatpush3.bf16.msra.mxu0 %v4183_v60  ;;  %3961 = vmatpush3.bf16.msra.mxu1 %v4184_v61 }
 0x1f3   : > { %3942 = vmatprep.subr.bf16.mxu0 %v4373_v4  ;;  %3962 = vmatprep.subr.bf16.mxu1 %v4373_v4 }
 0x1f6   : > { %3943 = vmatpush3.bf16.msra.mxu0 %v4185_v62  ;;  %3963 = vmatpush3.bf16.msra.mxu1 %v4186_v63 }
 0x1f7   : > { %3968 = vmatprep.subr.bf16.mxu0 %v4373_v4  ;;  %3974 = vmatprep.subr.bf16.mxu1 %v4373_v4 }
 0x1f9   : > { %3945 = vmatmul.mubr.bf16.vlgmr.msra.gmra.mrb[20].mxu0 %v4540_v47  ;;  %3965 = vmatmul.mubr.bf16.vlgmr.msra.gmra.mrb[20].mxu1 %v4540_v47 }
 0x1fa   : > { %3970 = vmatprep.mubr.msk.bf16.mxu0 %vm4374_vm0, %v4373_v4  ;;  %3976 = vmatprep.mubr.msk.bf16.mxu1 %vm4374_vm0, %v4373_v4 }
 0x22c   : > { %v878_v0 = vpop.f32.mrb[0].mxu0  ;;  %v967_v1 = vpop.f32.mrb[0].mxu1 }
 0x22d   : > { %v3746_v2 = vpop.f32.mrb[1].mxu0  ;;  %v3766_v3 = vpop.f32.mrb[1].mxu1 }
 0x22e   : > { %v881_v5 = vpop.f32.mrb[2].mxu0  ;;  %v970_v6 = vpop.f32.mrb[2].mxu1 }
 0x22f   : > { %v1864_v7 = vpack.c.bf16 %v881_v5, %v878_v0  ;;  %v1865_v8 = vpack.c.bf16 %v970_v6, %v967_v1  ;;  %v3747_v9 = vpop.f32.mrb[3].mxu0  ;;  %v3767_v10 = vpop.f32.mrb[3].mxu1 }
 0x24c   : > { %v1056_v11 = vpop.f32.mrb[4].mxu0  ;;  %v1145_v12 = vpop.f32.mrb[4].mxu1 }
 0x24d   : > { %v3786_v13 = vpop.f32.mrb[5].mxu0  ;;  %v3806_v47 = vpop.f32.mrb[5].mxu1 }
 0x24e   : > { %v1059_v14 = vpop.f32.mrb[6].mxu0  ;;  %v1148_v15 = vpop.f32.mrb[6].mxu1 }
 0x24f   : > { %v1866_v16 = vpack.c.bf16 %v1059_v14, %v1056_v11  ;;  %v1867_v17 = vpack.c.bf16 %v1148_v15, %v1145_v12  ;;  %v3787_v18 = vpop.f32.mrb[7].mxu0  ;;  %v3807_v19 = vpop.f32.mrb[7].mxu1 }
 0x26c   : > { %v1234_v20 = vpop.f32.mrb[8].mxu0  ;;  %v1323_v21 = vpop.f32.mrb[8].mxu1 }
 0x26d   : > { %v3826_v22 = vpop.f32.mrb[9].mxu0  ;;  %v3846_v23 = vpop.f32.mrb[9].mxu1 }
 0x26e   : > { %v1237_v24 = vpop.f32.mrb[10].mxu0  ;;  %v1326_v25 = vpop.f32.mrb[10].mxu1 }
 0x26f   : > { %v1868_v26 = vpack.c.bf16 %v1237_v24, %v1234_v20  ;;  %v1869_v27 = vpack.c.bf16 %v1326_v25, %v1323_v21  ;;  %v3827_v28 = vpop.f32.mrb[11].mxu0  ;;  %v3847_v29 = vpop.f32.mrb[11].mxu1 }
 0x271   : > { %v1881_v30 = vsel %vm1876_vm1, %v1868_v26, 0  ;;  %v1928_v31 = vsel %vm1876_vm1, %v1869_v27, 0 }
 0x272   : > { %3969 = vmatpush3.bf16.xpose.msra.mxu0 %v1881_v30  ;;  %3975 = vmatpush3.bf16.xpose.msra.mxu1 %v1928_v31 }
 0x273   : > { %3980 = vmatprep.subr.bf16.mxu0 %v4373_v4  ;;  %3986 = vmatprep.subr.bf16.mxu1 %v4373_v4 }
 0x279   : > { %3971 = vmatmul.mubr.msk.bf16.vlgmr.msra.gmra.mrb[24].mxu0 %vm1876_vm1, %v1864_v7  ;;  %3977 = vmatmul.mubr.msk.bf16.vlgmr.msra.gmra.mrb[24].mxu1 %vm1876_vm1, %v1865_v8 }
 0x27a   : > { %3982 = vmatprep.mubr.msk.bf16.mxu0 %vm4374_vm0, %v4373_v4  ;;  %3988 = vmatprep.mubr.msk.bf16.mxu1 %vm4374_vm0, %v4373_v4 }
 0x28c   : > { %v1412_v32 = vpop.f32.mrb[12].mxu0  ;;  %v1501_v33 = vpop.f32.mrb[12].mxu1 }
 0x28d   : > { %v3866_v34 = vpop.f32.mrb[13].mxu0  ;;  %v3886_v35 = vpop.f32.mrb[13].mxu1 }
 0x28e   : > { %v1415_v36 = vpop.f32.mrb[14].mxu0  ;;  %v1504_v37 = vpop.f32.mrb[14].mxu1 }
 0x28f   : > { %v1870_v38 = vpack.c.bf16 %v1415_v36, %v1412_v32  ;;  %v1871_v39 = vpack.c.bf16 %v1504_v37, %v1501_v33  ;;  %v3867_v40 = vpop.f32.mrb[15].mxu0  ;;  %v3887_v41 = vpop.f32.mrb[15].mxu1 }
 0x291   : > { %v1975_v42 = vsel %vm1876_vm1, %v1870_v38, 0  ;;  %v2022_v43 = vsel %vm1876_vm1, %v1871_v39, 0 }
 0x292   : > { %3981 = vmatpush3.bf16.xpose.msra.mxu0 %v1975_v42  ;;  %3987 = vmatpush3.bf16.xpose.msra.mxu1 %v2022_v43 }
 0x293   : > { %3992 = vmatprep.subr.bf16.mxu0 %v4373_v4  ;;  %3998 = vmatprep.subr.bf16.mxu1 %v4373_v4 }
 0x299   : > { %3983 = vmatmul.mubr.msk.bf16.vlgmr.msra.gmra.mrb[28].mxu0 %vm1876_vm1, %v1866_v16  ;;  %3989 = vmatmul.mubr.msk.bf16.vlgmr.msra.gmra.mrb[28].mxu1 %vm1876_vm1, %v1867_v17 }
 0x29a   : > { %3994 = vmatprep.mubr.msk.bf16.mxu0 %vm4374_vm0, %v4373_v4  ;;  %4000 = vmatprep.mubr.msk.bf16.mxu1 %vm4374_vm0, %v4373_v4 }
 0x2ac   : > { %v1590_v44 = vpop.f32.mrb[16].mxu0  ;;  %v1679_v45 = vpop.f32.mrb[16].mxu1 }
 0x2ad   : > { %v3906_v46 = vpop.f32.mrb[17].mxu0  ;;  %v3926_v48 = vpop.f32.mrb[17].mxu1 }
 0x2ae   : > { %v1593_v49 = vpop.f32.mrb[18].mxu0  ;;  %v1682_v50 = vpop.f32.mrb[18].mxu1 }
 0x2af   : > { %v1872_v51 = vpack.c.bf16 %v1593_v49, %v1590_v44  ;;  %v1873_v52 = vpack.c.bf16 %v1682_v50, %v1679_v45  ;;  %v3907_v53 = vpop.f32.mrb[19].mxu0  ;;  %v3927_v54 = vpop.f32.mrb[19].mxu1 }
 0x2b1   : > { %3993 = vmatpush3.bf16.msra.mxu0 %v1872_v51  ;;  %3999 = vmatpush3.bf16.msra.mxu1 %v1873_v52 }
 0x2b2   : > { %4004 = vmatprep.subr.bf16.mxu0 %v4373_v4  ;;  %4010 = vmatprep.subr.bf16.mxu1 %v4373_v4 }
 0x2cc   : > { %v4758_v55 = vpop.f32.mrb[20].mxu0  ;;  %v4760_v56 = vpop.f32.mrb[20].mxu1 }
 0x2cd   : > { %v3946_v57 = vpop.f32.mrb[21].mxu0  ;;  %v3966_v58 = vpop.f32.mrb[21].mxu1 }
 0x2ce   : > { %v4762_v59 = vpop.f32.mrb[22].mxu0  ;;  %v4764_v60 = vpop.f32.mrb[22].mxu1 }
 0x2cf   : > { %v1874_v61 = vpack.c.bf16 %v4762_v59, %v4758_v55  ;;  %v1875_v62 = vpack.c.bf16 %v4764_v60, %v4760_v56  ;;  %v3947_v63 = vpop.f32.mrb[23].mxu0  ;;  %v3967_v0 = vpop.f32.mrb[23].mxu1 }
 0x34c   : > { %v1917_v1 = vpop.f32.mrb[24].mxu0  ;;  %v1964_v2 = vpop.f32.mrb[24].mxu1 }
 0x34d   : > { %v3972_v3 = vpop.f32.mrb[25].mxu0  ;;  %v3978_v5 = vpop.f32.mrb[25].mxu1  ;;  %v2066_v6 = vsel %vm2065_vm2, %v1917_v1, -inf  ;;  %v2072_v12 = vsel %vm2065_vm2, %v1964_v2, -inf }
 0x34e   : > { %v1967_v7 = vpop.f32.mrb[26].mxu1  ;;  %2067 = vmax.xlane.f32.xlu0 %v2066_v6  ;;  %v1920_v8 = vpop.f32.mrb[26].mxu0 }
 0x34f   : > { %v3973_v9 = vpop.f32.mrb[27].mxu0  ;;  %v3979_v10 = vpop.f32.mrb[27].mxu1  ;;  %v2069_v11 = vsel %vm2065_vm2, %v1920_v8, -inf  ;;  %v2075_v13 = vsel %vm2065_vm2, %v1967_v7, -inf }
 0x350   : > { %2070 = vmax.xlane.f32.xlu1 %v2069_v11 }
 0x352   : > { %2073 = vmax.xlane.f32.xlu0 %v2072_v12 }
 0x354   : > { %2076 = vmax.xlane.f32.xlu1 %v2075_v13 }
 0x36c   : > { %v2011_v47 = vpop.f32.mrb[28].mxu0  ;;  %v2058_v14 = vpop.f32.mrb[28].mxu1 }
 0x36d   : > { %v3984_v15 = vpop.f32.mrb[29].mxu0  ;;  %v3990_v16 = vpop.f32.mrb[29].mxu1  ;;  %v2078_v17 = vsel %vm2065_vm2, %v2011_v47, -inf  ;;  %v2084_v23 = vsel %vm2065_vm2, %v2058_v14, -inf }
 0x36e   : > { %v2061_v18 = vpop.f32.mrb[30].mxu1  ;;  %2079 = vmax.xlane.f32.xlu0 %v2078_v17  ;;  %v2014_v19 = vpop.f32.mrb[30].mxu0 }
 0x36f   : > { %v3985_v20 = vpop.f32.mrb[31].mxu0  ;;  %v3991_v21 = vpop.f32.mrb[31].mxu1  ;;  %v2081_v22 = vsel %vm2065_vm2, %v2014_v19, -inf  ;;  %v2087_v24 = vsel %vm2065_vm2, %v2061_v18, -inf }
 0x370   : > { %2082 = vmax.xlane.f32.xlu1 %v2081_v22 }
 0x372   : > { %2085 = vmax.xlane.f32.xlu0 %v2084_v23 }
 0x374   : > { %2088 = vmax.xlane.f32.xlu1 %v2087_v24 }
 0x3db   : > { %v2068_v25 = vpop.xlane.xlu0 %2067 }
 0x3dc   : > { %v2090_v26 = vsub.f32 %v1917_v1, %v2068_v25 }
 0x3dd   : > { %v2071_v27 = vpop.xlane.xlu1 %2070 }
 0x3de   : > { %v2098_v28 = vmul.f32 1.442695, %v2090_v26  ;;  %v2091_v29 = vsub.f32 %v1920_v8, %v2071_v27 }
 0x3df   : > { %v2074_v30 = vpop.xlane.xlu0 %2073 }
 0x3e0   : > { %4279 = vpow2.f32 %v2098_v28  ;;  %v2100_v31 = vmul.f32 1.442695, %v2091_v29  ;;  %v2092_v32 = vsub.f32 %v1964_v2, %v2074_v30 }
 0x3e1   : > { %v2077_v33 = vpop.xlane.xlu1 %2076 }
 0x3e2   : > { %4281 = vpow2.f32 %v2100_v31  ;;  %v2102_v34 = vmul.f32 1.442695, %v2092_v32  ;;  %v2093_v35 = vsub.f32 %v1967_v7, %v2077_v33  ;;  %v4188_v31 = vld [vmem:[%s4790_s19 + $0x8] sm:$0xff]   ;;  %v4189_v32 = vld [vmem:[%s4790_s19 + $0x10] sm:$0xff]   ;;  %v4190_v33 = vld [vmem:[%s4790_s19 + $0x18] sm:$0xff]  }
 0x3e4   : > { %4283 = vpow2.f32 %v2102_v34  ;;  %v2104_v36 = vmul.f32 1.442695, %v2093_v35 }
 0x3e6   : > { %4285 = vpow2.f32 %v2104_v36 }
 0x3ea   : > { %v4280_v37 = vpop.eup %4279 }
 0x3eb   : > { %v2114_v38 = vsel %vm2065_vm2, %v4280_v37, 0.0 }
 0x3ec   : > { %v4282_v39 = vpop.eup %4281  ;;  %2115 = vadd.xlane.f32.xlu0 %v2114_v38 }
 0x3ed   : > { %v2117_v40 = vsel %vm2065_vm2, %v4282_v39, 0.0 }
 0x3ee   : > { %v4284_v41 = vpop.eup %4283  ;;  %2118 = vadd.xlane.f32.xlu1 %v2117_v40 }
 0x3ef   : > { %v2120_v42 = vsel %vm2065_vm2, %v4284_v41, 0.0 }
 0x3f0   : > { %v4286_v43 = vpop.eup %4285  ;;  %2121 = vadd.xlane.f32.xlu0 %v2120_v42 }
 0x3f1   : > { %v2123_v44 = vsel %vm2065_vm2, %v4286_v43, 0.0 }
 0x3f2   : > { %2124 = vadd.xlane.f32.xlu1 %v2123_v44  ;;  %v4193_v44 = vld [vmem:[%s4790_s19 + $0x30] sm:$0xff]  }
 0x3fb   : > { %v2080_v45 = vpop.xlane.xlu0 %2079 }
 0x3fc   : > { %v2094_v46 = vsub.f32 %v2011_v47, %v2080_v45 }
 0x3fd   : > { %v2083_v48 = vpop.xlane.xlu1 %2082 }
 0x3fe   : > { %v2106_v49 = vmul.f32 1.442695, %v2094_v46  ;;  %v2095_v50 = vsub.f32 %v2014_v19, %v2083_v48  ;;  %v4194_v48 = vld [vmem:[%s4790_s19 + $0x38] sm:$0xff]  }
 0x3ff   : > { %v2086_v51 = vpop.xlane.xlu0 %2085 }
 0x400   : > { %4287 = vpow2.f32 %v2106_v49  ;;  %v2108_v52 = vmul.f32 1.442695, %v2095_v50  ;;  %v2096_v53 = vsub.f32 %v2058_v14, %v2086_v51 }
 0x401   : > { %v2089_v54 = vpop.xlane.xlu1 %2088 }
 0x402   : > { %4289 = vpow2.f32 %v2108_v52  ;;  %v2110_v57 = vmul.f32 1.442695, %v2096_v53  ;;  %v2097_v58 = vsub.f32 %v2061_v18, %v2089_v54 }
 0x404   : > { %4291 = vpow2.f32 %v2110_v57  ;;  %v2112_v63 = vmul.f32 1.442695, %v2097_v58 }
 0x406   : > { %4293 = vpow2.f32 %v2112_v63 }
 0x40a   : > { %v4288_v0 = vpop.eup %4287 }
 0x40b   : > { %v2126_v1 = vsel %vm2065_vm2, %v4288_v0, 0.0 }
 0x40c   : > { %v4290_v2 = vpop.eup %4289  ;;  %2127 = vadd.xlane.f32.xlu0 %v2126_v1 }
 0x40d   : > { %v2129_v3 = vsel %vm2065_vm2, %v4290_v2, 0.0 }
 0x40e   : > { %v4292_v5 = vpop.eup %4291  ;;  %2130 = vadd.xlane.f32.xlu1 %v2129_v3 }
 0x40f   : > { %v2132_v6 = vsel %vm2065_vm2, %v4292_v5, 0.0 }
 0x410   : > { %v4294_v7 = vpop.eup %4293  ;;  %2133 = vadd.xlane.f32.xlu0 %v2132_v6 }
 0x411   : > { %v2135_v8 = vsel %vm2065_vm2, %v4294_v7, 0.0 }
 0x412   : > { %2136 = vadd.xlane.f32.xlu1 %v2135_v8 }
 0x479   : > { %v2116_v9 = vpop.xlane.xlu0 %2115 }
 0x47a   : > { %4295 = vrcp.f32 %v2116_v9 }
 0x47b   : > { %v2119_v10 = vpop.xlane.xlu1 %2118 }
 0x47c   : > { %4297 = vrcp.f32 %v2119_v10 }
 0x47d   : > { %v2122_v11 = vpop.xlane.xlu0 %2121 }
 0x47e   : > { %4299 = vrcp.f32 %v2122_v11 }
 0x47f   : > { %v2125_v12 = vpop.xlane.xlu1 %2124 }
 0x480   : > { %4301 = vrcp.f32 %v2125_v12  ;;  %v3471_v12 = vld [vmem:[%s2562_s28] ss:$0 sm:$0xff] }
 0x484   : > { %v4296_v13 = vpop.eup %4295 }
 0x485   : > { %v2146_v14 = vmul.f32 %v4296_v13, %v4280_v37  ;;  %v4191_v37 = vld [vmem:[%s4790_s19 + $0x20] sm:$0xff]  }
 0x486   : > { %v4298_v47 = vpop.eup %4297 }
 0x487   : > { %v2147_v15 = vmul.f32 %v4298_v47, %v4282_v39 }
 0x488   : > { %v4300_v16 = vpop.eup %4299 }
 0x489   : > { %v2154_v17 = vpack.c.bf16 %v2147_v15, %v2146_v14  ;;  %v2148_v19 = vmul.f32 %v4300_v16, %v4284_v41 }
 0x48a   : > { %v4302_v18 = vpop.eup %4301 }
 0x48b   : > { %v2149_v20 = vmul.f32 %v4302_v18, %v4286_v43  ;;  %3995 = vmatmul.mubr.msk.bf16.vlgmr.msra.gmra.mrb[32].mxu0 %vm2065_vm2, %v2154_v17  ;;  %v4192_v43 = vld [vmem:[%s4790_s19 + $0x28] sm:$0xff]   ;;  %v4331_v17 = vld [vmem:[%s4479_s16] sm:$0xff] }
 0x48c   : > { %4005 = vmatpush3.bf16.msra.mxu0 %v1874_v61  ;;  %4006 = vmatprep.mubr.msk.bf16.mxu0 %vm4374_vm0, %v4373_v4  ;;  %v2570_v18 = vadd.f32 %v4331_v17, %v3471_v12 }
 0x48d   : > { %v2155_v21 = vpack.c.bf16 %v2149_v20, %v2148_v19  ;;  %4016 = vmatprep.subr.bf16.mxu0 %v4373_v4 }
 0x48f   : > { %4001 = vmatmul.mubr.msk.bf16.vlgmr.msra.gmra.mrb[32].mxu1 %vm2065_vm2, %v2155_v21 }
 0x490   : > { %4011 = vmatpush3.bf16.msra.mxu1 %v1875_v62  ;;  %4012 = vmatprep.mubr.msk.bf16.mxu1 %vm4374_vm0, %v4373_v4  ;;  %v4187_v62 = vld [vmem:[%s4790_s19] sm:$0xff]  }
 0x491   : > { %4024 = vmatprep.subr.bf16.mxu1 %v4373_v4 }
 0x499   : > { %v2128_v55 = vpop.xlane.xlu0 %2127 }
 0x49a   : > { %4303 = vrcp.f32 %v2128_v55  ;;  %v4332_v55 = vld [vmem:[%s4479_s16 + $0x8] sm:$0xff] }
 0x49b   : > { %v2131_v59 = vpop.xlane.xlu1 %2130 }
 0x49c   : > { %4305 = vrcp.f32 %v2131_v59  ;;  %v2571_v59 = vadd.f32 %v4332_v55, %v3471_v12 }
 0x49d   : > { %v2134_v61 = vpop.xlane.xlu0 %2133 }
 0x49e   : > { %4307 = vrcp.f32 %v2134_v61 }
 0x49f   : > { %v2137_v22 = vpop.xlane.xlu1 %2136 }
 0x4a0   : > { %4309 = vrcp.f32 %v2137_v22 }
 0x4a4   : > { %v4304_v23 = vpop.eup %4303 }
 0x4a5   : > { %v2150_v25 = vmul.f32 %v4304_v23, %v4288_v0 }
 0x4a6   : > { %v4306_v24 = vpop.eup %4305 }
 0x4a7   : > { %v2151_v56 = vmul.f32 %v4306_v24, %v4290_v2 }
 0x4a8   : > { %v4308_v60 = vpop.eup %4307 }
 0x4a9   : > { %v2156_v26 = vpack.c.bf16 %v2151_v56, %v2150_v25  ;;  %v2152_v28 = vmul.f32 %v4308_v60, %v4292_v5  ;;  %v4195_v56 = vld [vmem:[%s4850_s14] ss:$16 sps:$4 sm:$0xff]   ;;  %v4197_v60 = vld [vmem:[%s4850_s14 + $0x4] ss:$16 sps:$4 sm:$0xff]  }
 0x4aa   : > { %v4310_v27 = vpop.eup %4309 }
 0x4ab   : > { %v2153_v29 = vmul.f32 %v4310_v27, %v4294_v7  ;;  %4007 = vmatmul.mubr.msk.bf16.vlgmr.msra.gmra.mrb[36].mxu0 %vm2065_vm2, %v2156_v26  ;;  %v4200_v26 = vld [vmem:[%s4850_s14 + $0xc] ss:$16 sps:$4 sm:$0xff]   ;;  %v4201_v27 = vld [vmem:[%s4850_s14 + $0x20] ss:$16 sps:$4 sm:$0xff]  }
 0x4ac   : > { %4017 = vmatpush3.bf16.msra.mxu0 %v4187_v62  ;;  %4020 = vmatprep.mubr.msk.bf16.mxu0 %vm4374_vm0, %v4373_v4  ;;  %v4198_v62 = vld [vmem:[%s4850_s14 + $0x8] ss:$16 sps:$4 sm:$0xff]  }
 0x4ad   : > { %v2157_v30 = vpack.c.bf16 %v2153_v29, %v2152_v28  ;;  %4018 = vmatprep.subr.bf16.mxu0 %v4373_v4  ;;  %v4203_v28 = vld [vmem:[%s4850_s14 + $0x24] ss:$16 sps:$4 sm:$0xff]   ;;  %v4204_v29 = vld [vmem:[%s4850_s14 + $0x28] ss:$16 sps:$4 sm:$0xff]  }
 0x4af   : > { %4013 = vmatmul.mubr.msk.bf16.vlgmr.msra.gmra.mrb[36].mxu1 %vm2065_vm2, %v2157_v30  ;;  %v4206_v30 = vld [vmem:[%s4850_s14 + $0x2c] ss:$16 sps:$4 sm:$0xff]  }
 0x4b0   : > { %4028 = vmatprep.mubr.msk.bf16.mxu1 %vm4374_vm0, %v4373_v4  ;;  %4019 = vmatpush3.bf16.msra.mxu0 %v4188_v31 }
 0x4b1   : > { %4025 = vmatpush3.bf16.msra.mxu1 %v4189_v32  ;;  %4032 = vmatprep.subr.bf16.mxu0 %v4373_v4 }
 0x4b2   : > { %4026 = vmatprep.subr.bf16.mxu1 %v4373_v4 }
 0x4b5   : > { %4027 = vmatpush3.bf16.msra.mxu1 %v4190_v33 }
 0x4b6   : > { %4040 = vmatprep.subr.bf16.mxu1 %v4373_v4 }
 0x55e   : > { %v2195_v34 = vpop.f32.mrb[32].mxu0 }
 0x55f   : > { %v3996_v35 = vpop.f32.mrb[33].mxu0 }
 0x560   : > { %v2198_v36 = vpop.f32.mrb[34].mxu0 }
 0x561   : > { %v2334_v38 = vpack.c.bf16 %v2198_v36, %v2195_v34  ;;  %v3997_v39 = vpop.f32.mrb[35].mxu0 }
 0x562   : > { %v2239_v40 = vpop.f32.mrb[32].mxu1  ;;  %v4209_v39 = vld [vmem:[%s4850_s14 + $0x44] ss:$16 sps:$4 sm:$0xff]  }
 0x563   : > { %v4002_v41 = vpop.f32.mrb[33].mxu1  ;;  %4021 = vmatmul.mubr.msk.bf16.vlgmr.msra.gmra.mrb[40].mxu0 %vm1876_vm1, %v2334_v38 }
 0x564   : > { %v2242_v42 = vpop.f32.mrb[34].mxu1  ;;  %4033 = vmatpush3.bf16.msra.mxu0 %v4191_v37  ;;  %4036 = vmatprep.mubr.msk.bf16.mxu0 %vm4374_vm0, %v4373_v4  ;;  %v4207_v41 = vld [vmem:[%s4850_s14 + $0x40] ss:$16 sps:$4 sm:$0xff]  }
 0x565   : > { %v2335_v45 = vpack.c.bf16 %v2242_v42, %v2239_v40  ;;  %v4003_v46 = vpop.f32.mrb[35].mxu1  ;;  %4034 = vmatprep.subr.bf16.mxu0 %v4373_v4  ;;  %v4212_v40 = vld [vmem:[%s4850_s14 + $0x4c] ss:$16 sps:$4 sm:$0xff]   ;;  %v4210_v42 = vld [vmem:[%s4850_s14 + $0x48] ss:$16 sps:$4 sm:$0xff]  }
 0x566   : > { %v4216_v46 = vld [vmem:[%s4850_s14 + $0x68] ss:$16 sps:$4 sm:$0xff]  }
 0x567   : > { %4029 = vmatmul.mubr.msk.bf16.vlgmr.msra.gmra.mrb[40].mxu1 %vm1876_vm1, %v2335_v45  ;;  %v4213_v45 = vld [vmem:[%s4850_s14 + $0x60] ss:$16 sps:$4 sm:$0xff]  }
 0x568   : > { %4035 = vmatpush3.bf16.msra.mxu0 %v4192_v43  ;;  %4041 = vmatpush3.bf16.msra.mxu1 %v4193_v44  ;;  %v4215_v43 = vld [vmem:[%s4850_s14 + $0x64] ss:$16 sps:$4 sm:$0xff]   ;;  %v4218_v44 = vld [vmem:[%s4850_s14 + $0x6c] ss:$16 sps:$4 sm:$0xff]  }
 0x569   : > { %4042 = vmatprep.subr.bf16.mxu1 %v4373_v4  ;;  %4044 = vmatprep.mubr.msk.bf16.mxu1 %vm4374_vm0, %v4373_v4 }
 0x56a   : > { %2807 = vmatprep.subr.bf16.mxu0 %v4197_v60  ;;  %v4248_v60 = vld [vmem:[%s4863_s18 + $0xc8] sm:$0xff]  }
 0x56c   : > { %4043 = vmatpush3.bf16.msra.mxu1 %v4194_v48  ;;  %v4221_v48 = vld [vmem:[%s4850_s14 + $0x84] ss:$16 sps:$4 sm:$0xff]  }
 0x56d   : > { %2850 = vmatprep.subr.bf16.mxu1 %v4200_v26  ;;  %v4250_v26 = vld [vmem:[%s4863_s18 + $0x88] sm:$0xff]  }
 0x57e   : > { %v2283_v49 = vpop.f32.mrb[36].mxu0 }
 0x57f   : > { %v4008_v50 = vpop.f32.mrb[37].mxu0 }
 0x580   : > { %v2286_v51 = vpop.f32.mrb[38].mxu0  ;;  %v4219_v50 = vld [vmem:[%s4850_s14 + $0x80] ss:$16 sps:$4 sm:$0xff]  }
 0x581   : > { %v2336_v52 = vpack.c.bf16 %v2286_v51, %v2283_v49  ;;  %v4009_v53 = vpop.f32.mrb[39].mxu0  ;;  %v4224_v49 = vld [vmem:[%s4850_s14 + $0x8c] ss:$16 sps:$4 sm:$0xff]   ;;  %v4222_v51 = vld [vmem:[%s4850_s14 + $0x88] ss:$16 sps:$4 sm:$0xff]  }
 0x582   : > { %v2327_v54 = vpop.f32.mrb[36].mxu1  ;;  %v4230_v53 = vld [vmem:[%s4850_s14 + $0xac] ss:$16 sps:$4 sm:$0xff]  }
 0x583   : > { %v4014_v57 = vpop.f32.mrb[37].mxu1  ;;  %4037 = vmatmul.mubr.msk.bf16.vlgmr.msra.gmra.mrb[44].mxu0 %vm1876_vm1, %v2336_v52  ;;  %v4227_v52 = vld [vmem:[%s4850_s14 + $0xa4] ss:$16 sps:$4 sm:$0xff]  }
 0x584   : > { %v2330_v58 = vpop.f32.mrb[38].mxu1  ;;  %2808 = vmatpush1.bf16.msra.mxu0 %v4195_v56  ;;  %v4228_v57 = vld [vmem:[%s4850_s14 + $0xa8] ss:$16 sps:$4 sm:$0xff]  }
 0x585   : > { %v2337_v63 = vpack.c.bf16 %v2330_v58, %v2327_v54  ;;  %v4015_v0 = vpop.f32.mrb[39].mxu1  ;;  %2809 = vmatprep.subr.bf16.mxu0 %v4203_v28  ;;  %v4225_v54 = vld [vmem:[%s4850_s14 + $0xa0] ss:$16 sps:$4 sm:$0xff]   ;;  %v4233_v58 = vld [vmem:[%s4850_s14 + $0xc4] ss:$16 sps:$4 sm:$0xff]   ;;  %v4247_v56 = vld [vmem:[%s4863_s18 + $0x48] sm:$0xff]  }
 0x586   : > { %v4231_v0 = vld [vmem:[%s4850_s14 + $0xc0] ss:$16 sps:$4 sm:$0xff]  }
 0x587   : > { %4045 = vmatmul.mubr.msk.bf16.vlgmr.msra.gmra.mrb[44].mxu1 %vm1876_vm1, %v2337_v63  ;;  %v4236_v63 = vld [vmem:[%s4850_s14 + $0xcc] ss:$16 sps:$4 sm:$0xff]   ;;  %v4252_v28 = vld [vmem:[%s4863_s18 + $0xd0] sm:$0xff]  }
 0x588   : > { %2851 = vmatpush1.bf16.msra.mxu1 %v4198_v62  ;;  %2810 = vmatpush1.bf16.msra.mxu0 %v4201_v27  ;;  %v4249_v62 = vld [vmem:[%s4863_s18 + $0x8] sm:$0xff]   ;;  %v4251_v27 = vld [vmem:[%s4863_s18 + $0x50] sm:$0xff]  }
 0x589   : > { %2852 = vmatprep.subr.bf16.mxu1 %v4206_v30  ;;  %2811 = vmatprep.subr.bf16.mxu0 %v4209_v39  ;;  %v4254_v30 = vld [vmem:[%s4863_s18 + $0x90] sm:$0xff]   ;;  %v4263_v39 = vld [vmem:[%s4863_s18 + $0x68] sm:$0xff]  }
 0x58c   : > { %2853 = vmatpush1.bf16.msra.mxu1 %v4204_v29  ;;  %2812 = vmatpush1.bf16.msra.mxu0 %v4207_v41  ;;  %v4253_v29 = vld [vmem:[%s4863_s18 + $0x10] sm:$0xff]   ;;  %v4265_v41 = vld [vmem:[%s4863_s18 + $0x28] sm:$0xff]  }
 0x58d   : > { %2854 = vmatprep.subr.bf16.mxu1 %v4212_v40  ;;  %2813 = vmatprep.subr.bf16.mxu0 %v4215_v43  ;;  %v4264_v40 = vld [vmem:[%s4863_s18 + $0xe8] sm:$0xff]   ;;  %v4267_v43 = vld [vmem:[%s4863_s18 + $0x70] sm:$0xff]  }
 0x590   : > { %2855 = vmatpush1.bf16.msra.mxu1 %v4210_v42  ;;  %2814 = vmatpush1.bf16.msra.mxu0 %v4213_v45  ;;  %v4266_v42 = vld [vmem:[%s4863_s18 + $0xa8] sm:$0xff]   ;;  %v4269_v45 = vld [vmem:[%s4863_s18 + $0x30] sm:$0xff]  }
 0x591   : > { %2856 = vmatprep.subr.bf16.mxu1 %v4218_v44  ;;  %2815 = vmatprep.subr.bf16.mxu0 %v4221_v48  ;;  %v4268_v44 = vld [vmem:[%s4863_s18 + $0xf0] sm:$0xff]   ;;  %v4271_v48 = vld [vmem:[%s4863_s18 + $0x78] sm:$0xff]  }
 0x594   : > { %2857 = vmatpush1.bf16.msra.mxu1 %v4216_v46  ;;  %2816 = vmatpush1.bf16.msra.mxu0 %v4219_v50  ;;  %v4270_v46 = vld [vmem:[%s4863_s18 + $0xb0] sm:$0xff]   ;;  %v4273_v50 = vld [vmem:[%s4863_s18 + $0x38] sm:$0xff]  }
 0x595   : > { %2858 = vmatprep.subr.bf16.mxu1 %v4224_v49  ;;  %2817 = vmatprep.subr.bf16.mxu0 %v4227_v52  ;;  %v4272_v49 = vld [vmem:[%s4863_s18 + $0xf8] sm:$0xff]   ;;  %v2627_v52 = vlaneseq }
 0x598   : > { %2859 = vmatpush1.bf16.msra.mxu1 %v4222_v51  ;;  %2818 = vmatpush1.bf16.msra.mxu0 %v4225_v54  ;;  %v4274_v51 = vld [vmem:[%s4863_s18 + $0xb8] sm:$0xff]  }
 0x599   : > { %2860 = vmatprep.subr.bf16.mxu1 %v4230_v53  ;;  %2819 = vmatprep.subr.bf16.mxu0 %v4233_v58  ;;  %v2628_v53 = vshrl.u32 %v2627_v52, 7  ;;  %v2625_v58 = vld [vmem:[%s2624_s17] sm:$0xf] }
 0x59b   : > { %v2629_v54 = vsub.s32 0, %v2628_v53 }
 0x59c   : > { %2861 = vmatpush1.bf16.msra.mxu1 %v4228_v57  ;;  %2820 = vmatpush1.bf16.msra.mxu0 %v4231_v0  ;;  %v2637_v57 = vsub.s32 2, %v2628_v53  ;;  %v2641_v0 = vsub.s32 3, %v2628_v53 }
 0x59d   : > { %2862 = vmatprep.subr.bf16.mxu1 %v4236_v63  ;;  %v2633_v63 = vsub.s32 1, %v2628_v53 }
 0x636   : > { %v2387_v1 = vpop.f32.mrb[40].mxu0 }
 0x637   : > { %v4022_v2 = vpop.f32.mrb[41].mxu0 }
 0x638   : > { %v2390_v3 = vpop.f32.mrb[42].mxu0  ;;  %v4239_v2 = vld [vmem:[%s4850_s14 + $0xe4] ss:$16 sps:$4 sm:$0xff]  }
 0x639   : > { %v4023_v4 = vpop.f32.mrb[43].mxu0  ;;  %2821 = vmatprep.subr.bf16.mxu0 %v4239_v2  ;;  %v2638_v2 = vrot.slane %v2625_v58, %v2637_v57 }
 0x63a   : > { %v2443_v5 = vpop.f32.mrb[40].mxu1  ;;  %v4237_v4 = vld [vmem:[%s4850_s14 + $0xe0] ss:$16 sps:$4 sm:$0xff]  }
 0x63b   : > { %v2572_v6 = vadd.f32 %v2443_v5, %v2387_v1  ;;  %v4030_v7 = vpop.f32.mrb[41].mxu1  ;;  %v4234_v1 = vld [vmem:[%s4850_s14 + $0xc8] ss:$16 sps:$4 sm:$0xff]   ;;  %2822 = vmatpush1.bf16.msra.mxu0 %v4237_v4  ;;  %v2642_v4 = vrot.slane %v2625_v58, %v2641_v0 }
 0x63c   : > { %v2446_v8 = vpop.f32.mrb[42].mxu1  ;;  %2863 = vmatpush1.bf16.msra.mxu1 %v4234_v1  ;;  %v4240_v5 = vld [vmem:[%s4850_s14 + $0xe8] ss:$16 sps:$4 sm:$0xff]   ;;  %v2630_v1 = vrot.slane %v2625_v58, %v2629_v54 }
 0x63d   : > { %v2575_v9 = vadd.f32 %v2446_v8, %v2390_v3  ;;  %v4031_v10 = vpop.f32.mrb[43].mxu1  ;;  %v4242_v3 = vld [vmem:[%s4850_s14 + $0xec] ss:$16 sps:$4 sm:$0xff]  }
 0x63e   : > { %2864 = vmatprep.subr.bf16.mxu1 %v4242_v3  ;;  %v2634_v3 = vrot.slane %v2625_v58, %v2633_v63 }
 0x640   : > { %2865 = vmatpush1.bf16.msra.mxu1 %v4240_v5 }
 0x656   : > { %v2499_v11 = vpop.f32.mrb[44].mxu0 }
 0x657   : > { %v2573_v13 = vadd.f32 %v2572_v6, %v2499_v11  ;;  %v4038_v47 = vpop.f32.mrb[45].mxu0  ;;  %v4375_v6 = vmov 0  }
 0x658   : > { %v2502_v14 = vpop.f32.mrb[46].mxu0  ;;  %2839 = vmatprep.mubr.bf16.mxu0 %v4375_v6  ;;  %2882 = vmatprep.mubr.bf16.mxu1 %v4375_v6  ;;  %v3472_v47 = vld [vmem:[%s2580_s22] ss:$0 sm:$0xff] }
 0x659   : > { %v2576_v15 = vadd.f32 %v2575_v9, %v2502_v14  ;;  %v4039_v16 = vpop.f32.mrb[47].mxu0 }
 0x65a   : > { %v2555_v19 = vpop.f32.mrb[44].mxu1 }
 0x65b   : > { %v2574_v20 = vadd.f32 %v2573_v13, %v2555_v19  ;;  %v4046_v21 = vpop.f32.mrb[45].mxu1 }
 0x65c   : > { %v2558_v61 = vpop.f32.mrb[46].mxu1 }
 0x65d   : > { %v4840_v22 = vadd.f32 %v2574_v20, %v2570_v18  ;;  %v2577_v23 = vadd.f32 %v2576_v15, %v2558_v61  ;;  %v4047_v24 = vpop.f32.mrb[47].mxu1  ;;  %v3473_v18 = vld [vmem:[%s2582_s30] ss:$0 sm:$0xff] }
 0x65e   : > { %v4244_v61 = vld [vmem:[%s4863_s18 + $0xc0] sm:$0xff]  }
 0x65f   : > { %v4842_v25 = vadd.f32 %v2577_v23, %v2571_v59  ;;  %2584 = vadd.xlane.f32.xlu0 %v4840_v22  ;;  %v4243_v59 = vld [vmem:[%s4863_s18 + $0x40] sm:$0xff]   ;;  %3706 = vmatprep.subr.bf16.mxu1 %v4244_v61 }
 0x660   : > { %v4245_v23 = vld [vmem:[%s4863_s18] sm:$0xff]   ;;  %3684 = vmatprep.subr.bf16.mxu0 %v4243_v59 }
 0x661   : > { %2586 = vadd.xlane.f32.xlu1 %v4842_v25  ;;  %v4246_v24 = vld [vmem:[%s4863_s18 + $0x80] sm:$0xff]  }
 0x6ec   : > { %v2585_v31 = vpop.xlane.xlu0 %2584 }
 0x6ed   : > { %v2588_v32 = vmul.f32 0.0078125, %v2585_v31  ;;  %v4255_v31 = vld [vmem:[%s4863_s18 + $0x58] sm:$0xff]  }
 0x6ee   : > { %v2587_v33 = vpop.xlane.xlu1 %2586 }
 0x6ef   : > { %v4866_v34 = vsub.f32 %v4840_v22, %v2588_v32  ;;  %v2589_v35 = vmul.f32 0.0078125, %v2587_v33  ;;  %v4256_v32 = vld [vmem:[%s4863_s18 + $0xd8] sm:$0xff]  }
 0x6f0   : > { %v4257_v33 = vld [vmem:[%s4863_s18 + $0x18] sm:$0xff]  }
 0x6f1   : > { %v4869_v36 = vsub.f32 %v4842_v25, %v2589_v35  ;;  %v2592_v37 = vmul.f32 %v4866_v34, %v4866_v34  ;;  %v4259_v35 = vld [vmem:[%s4863_s18 + $0x60] sm:$0xff]  }
 0x6f3   : > { %2594 = vadd.xlane.f32.xlu0 %v2592_v37  ;;  %v2593_v38 = vmul.f32 %v4869_v36, %v4869_v36  ;;  %v4261_v37 = vld [vmem:[%s4863_s18 + $0x20] sm:$0xff]  }
 0x6f5   : > { %2596 = vadd.xlane.f32.xlu1 %v2593_v38  ;;  %v4262_v38 = vld [vmem:[%s4863_s18 + $0xa0] sm:$0xff]  }
 0x780   : > { %v2595_v7 = vpop.xlane.xlu0 %2594 }
 0x781   : > { %v2598_v8 = vmul.f32 0.0078125, %v2595_v7 }
 0x782   : > { %v2597_v9 = vpop.xlane.xlu1 %2596 }
 0x783   : > { %v2600_v10 = vadd.f32 1e-05, %v2598_v8  ;;  %v2599_v11 = vmul.f32 0.0078125, %v2597_v9 }
 0x785   : > { %4311 = vrsqrt.f32 %v2600_v10  ;;  %v2601_v12 = vadd.f32 1e-05, %v2599_v11 }
 0x787   : > { %4313 = vrsqrt.f32 %v2601_v12 }
 0x78f   : > { %v4312_v13 = vpop.eup %4311 }
 0x790   : > { %v2604_v14 = vmul.f32 %v4312_v13, %v4866_v34  ;;  %v4258_v34 = vld [vmem:[%s4863_s18 + $0x98] sm:$0xff]  }
 0x791   : > { %v4314_v15 = vpop.eup %4313 }
 0x792   : > { %v2605_v16 = vmul.f32 %v4314_v15, %v4869_v36  ;;  %v2612_v17 = vmul.f32 %v3472_v47, %v2604_v14  ;;  %v4260_v36 = vld [vmem:[%s4863_s18 + $0xe0] sm:$0xff]  }
 0x794   : > { %v2613_v19 = vmul.f32 %v3472_v47, %v2605_v16  ;;  %v2620_v20 = vadd.f32 %v3473_v18, %v2612_v17 }
 0x796   : > { %v2621_v21 = vadd.f32 %v3473_v18, %v2613_v19 }
 0x798   : > { %v2622_v55 = vpack.c.bf16 %v2621_v21, %v2620_v20 }
 0x79a   : > { %2840 = vmatmul.mubr.bf16.vlgmr.msra.gmra.mrb[48].mxu0 %v2622_v55  ;;  %2883 = vmatmul.mubr.bf16.vlgmr.msra.gmra.mrb[48].mxu1 %v2622_v55 }
 0x79b   : > { %3685 = vmatpush3.bf16.msra.mxu0 %v4245_v23  ;;  %3707 = vmatpush3.bf16.msra.mxu1 %v4246_v24 }
 0x79c   : > { %3686 = vmatprep.subr.bf16.mxu0 %v4247_v56  ;;  %3708 = vmatprep.subr.bf16.mxu1 %v4248_v60 }
 0x79f   : > { %3687 = vmatpush3.bf16.msra.mxu0 %v4249_v62  ;;  %3709 = vmatpush3.bf16.msra.mxu1 %v4250_v26 }
 0x7a0   : > { %3688 = vmatprep.subr.bf16.mxu0 %v4251_v27  ;;  %3710 = vmatprep.subr.bf16.mxu1 %v4252_v28 }
 0x7a3   : > { %3689 = vmatpush3.bf16.msra.mxu0 %v4253_v29  ;;  %3711 = vmatpush3.bf16.msra.mxu1 %v4254_v30 }
 0x7a4   : > { %3690 = vmatprep.subr.bf16.mxu0 %v4255_v31  ;;  %3712 = vmatprep.subr.bf16.mxu1 %v4256_v32 }
 0x7a7   : > { %3691 = vmatpush3.bf16.msra.mxu0 %v4257_v33  ;;  %3713 = vmatpush3.bf16.msra.mxu1 %v4258_v34 }
 0x7a8   : > { %3692 = vmatprep.subr.bf16.mxu0 %v4259_v35  ;;  %3714 = vmatprep.subr.bf16.mxu1 %v4260_v36 }
 0x7ab   : > { %3693 = vmatpush3.bf16.msra.mxu0 %v4261_v37  ;;  %3715 = vmatpush3.bf16.msra.mxu1 %v4262_v38 }
 0x7ac   : > { %3694 = vmatprep.subr.bf16.mxu0 %v4263_v39  ;;  %3716 = vmatprep.subr.bf16.mxu1 %v4264_v40 }
 0x7af   : > { %3695 = vmatpush3.bf16.msra.mxu0 %v4265_v41  ;;  %3717 = vmatpush3.bf16.msra.mxu1 %v4266_v42 }
 0x7b0   : > { %3696 = vmatprep.subr.bf16.mxu0 %v4267_v43  ;;  %3718 = vmatprep.subr.bf16.mxu1 %v4268_v44 }
 0x7b3   : > { %3697 = vmatpush3.bf16.msra.mxu0 %v4269_v45  ;;  %3719 = vmatpush3.bf16.msra.mxu1 %v4270_v46 }
 0x7b4   : > { %3698 = vmatprep.subr.bf16.mxu0 %v4271_v48  ;;  %3720 = vmatprep.subr.bf16.mxu1 %v4272_v49 }
 0x7b7   : > { %3699 = vmatpush3.bf16.msra.mxu0 %v4273_v50  ;;  %3721 = vmatpush3.bf16.msra.mxu1 %v4274_v51 }
 0x86d   : > { %v2841_v5 = vpop.f32.mrb[48].mxu0  ;;  %v2884_v6 = vpop.f32.mrb[48].mxu1 }
 0x86e   : > { %v4945_v7 = vadd.f32 %v2841_v5, %v2630_v1  ;;  %v4947_v8 = vadd.f32 %v2884_v6, %v2638_v2  ;;  %v2843_v9 = vpop.f32.mrb[49].mxu0  ;;  %v2886_v10 = vpop.f32.mrb[49].mxu1 }
 0x86f   : > { %v4949_v11 = vadd.f32 %v2843_v9, %v2634_v3  ;;  %v4951_v12 = vadd.f32 %v2886_v10, %v2642_v4  ;;  %v2845_v13 = vpop.f32.mrb[50].mxu0  ;;  %v2888_v47 = vpop.f32.mrb[50].mxu1 }
 0x870   : > { %v2901_v14 = vmul.f32 0.044715, %v4945_v7  ;;  %v2903_v15 = vmul.f32 0.044715, %v4947_v8  ;;  %v2846_v16 = vadd.f32 %v2845_v13, %v2630_v1  ;;  %v2889_v17 = vadd.f32 %v2888_v47, %v2638_v2  ;;  %v2847_v18 = vpop.f32.mrb[51].mxu0  ;;  %v2890_v19 = vpop.f32.mrb[51].mxu1 }
 0x871   : > { %v2902_v20 = vmul.f32 0.044715, %v4949_v11  ;;  %v2904_v21 = vmul.f32 0.044715, %v4951_v12  ;;  %v4957_v55 = vadd.f32 %v2847_v18, %v2634_v3  ;;  %v4959_v59 = vadd.f32 %v2890_v19, %v2642_v4 }
 0x872   : > { %v2909_v61 = vmul.f32 %v2901_v14, %v4945_v7  ;;  %v2911_v23 = vmul.f32 %v2903_v15, %v4947_v8  ;;  %v2905_v24 = vmul.f32 0.044715, %v2846_v16  ;;  %v2907_v56 = vmul.f32 0.044715, %v2889_v17 }
 0x873   : > { %v2910_v60 = vmul.f32 %v2902_v20, %v4949_v11  ;;  %v2912_v62 = vmul.f32 %v2904_v21, %v4951_v12  ;;  %v2906_v26 = vmul.f32 0.044715, %v4957_v55  ;;  %v2908_v27 = vmul.f32 0.044715, %v4959_v59 }
 0x874   : > { %v2917_v28 = vmul.f32 %v2909_v61, %v4945_v7  ;;  %v2919_v29 = vmul.f32 %v2911_v23, %v4947_v8  ;;  %v2913_v30 = vmul.f32 %v2905_v24, %v2846_v16  ;;  %v2915_v31 = vmul.f32 %v2907_v56, %v2889_v17 }
 0x875   : > { %v2918_v32 = vmul.f32 %v2910_v60, %v4949_v11  ;;  %v2920_v33 = vmul.f32 %v2912_v62, %v4951_v12  ;;  %v2914_v34 = vmul.f32 %v2906_v26, %v4957_v55  ;;  %v2916_v35 = vmul.f32 %v2908_v27, %v4959_v59 }
 0x876   : > { %v2925_v36 = vadd.f32 %v2917_v28, %v4945_v7  ;;  %v2927_v37 = vadd.f32 %v2919_v29, %v4947_v8  ;;  %v2921_v38 = vmul.f32 %v2913_v30, %v2846_v16  ;;  %v2923_v39 = vmul.f32 %v2915_v31, %v2889_v17 }
 0x877   : > { %v2922_v40 = vmul.f32 %v2914_v34, %v4957_v55  ;;  %v2924_v41 = vmul.f32 %v2916_v35, %v4959_v59  ;;  %v2926_v46 = vadd.f32 %v2918_v32, %v4949_v11  ;;  %v2928_v51 = vadd.f32 %v2920_v33, %v4951_v12 }
 0x878   : > { %v2933_v42 = vmul.f32 0.7978846, %v2925_v36  ;;  %v2935_v43 = vmul.f32 0.7978846, %v2927_v37  ;;  %v2929_v44 = vadd.f32 %v2921_v38, %v2846_v16  ;;  %v2931_v45 = vadd.f32 %v2923_v39, %v2889_v17 }
 0x879   : > { %v2930_v48 = vadd.f32 %v2922_v40, %v4957_v55  ;;  %v2934_v52 = vmul.f32 0.7978846, %v2926_v46  ;;  %v2932_v54 = vadd.f32 %v2924_v41, %v4959_v59  ;;  %v2936_v57 = vmul.f32 0.7978846, %v2928_v51 }
 0x87a   : > { %4315 = vtanh.f32 %v2933_v42  ;;  %v2937_v49 = vmul.f32 0.7978846, %v2929_v44  ;;  %v2939_v50 = vmul.f32 0.7978846, %v2931_v45  ;;  %v2893_v5 = vmul.f32 0.5, %v4945_v7 }
 0x87b   : > { %4317 = vtanh.f32 %v2935_v43  ;;  %v2938_v53 = vmul.f32 0.7978846, %v2930_v48  ;;  %v2940_v58 = vmul.f32 0.7978846, %v2932_v54  ;;  %v2897_v6 = vmul.f32 0.5, %v2846_v16 }
 0x87c   : > { %4319 = vtanh.f32 %v2937_v49  ;;  %v2895_v13 = vmul.f32 0.5, %v4947_v8  ;;  %v2899_v47 = vmul.f32 0.5, %v2889_v17  ;;  %v2894_v18 = vmul.f32 0.5, %v4949_v11 }
 0x87d   : > { %4321 = vtanh.f32 %v2939_v50  ;;  %v2898_v23 = vmul.f32 0.5, %v4957_v55  ;;  %v2896_v16 = vmul.f32 0.5, %v4951_v12  ;;  %v2900_v8 = vmul.f32 0.5, %v4959_v59  ;;  %v3507_v59 = vld [vmem:[%s2969_s20] ss:$0 sm:$0xff] }
 0x87e   : > { %4323 = vtanh.f32 %v2934_v52 }
 0x87f   : > { %4325 = vtanh.f32 %v2938_v53 }
 0x880   : > { %4327 = vtanh.f32 %v2936_v57 }
 0x881   : > { %4329 = vtanh.f32 %v2940_v58 }
 0x884   : > { %v4316_v63 = vpop.eup %4315 }
 0x885   : > { %v4318_v0 = vpop.eup %4317  ;;  %v2949_v1 = vadd.f32 1.0, %v4316_v63 }
 0x886   : > { %v4320_v2 = vpop.eup %4319  ;;  %v2951_v3 = vadd.f32 1.0, %v4318_v0 }
 0x887   : > { %v4322_v4 = vpop.eup %4321  ;;  %v2953_v9 = vadd.f32 1.0, %v4320_v2  ;;  %v2957_v20 = vmul.f32 %v2949_v1, %v2893_v5 }
 0x888   : > { %v4324_v10 = vpop.eup %4323  ;;  %v2955_v14 = vadd.f32 1.0, %v4322_v4  ;;  %v2959_v56 = vmul.f32 %v2951_v3, %v2895_v13 }
 0x889   : > { %v4326_v15 = vpop.eup %4325  ;;  %v2950_v19 = vadd.f32 1.0, %v4324_v10  ;;  %v2961_v21 = vmul.f32 %v2953_v9, %v2897_v6 }
 0x88a   : > { %v4328_v61 = vpop.eup %4327  ;;  %v2954_v24 = vadd.f32 1.0, %v4326_v15  ;;  %v2963_v60 = vmul.f32 %v2955_v14, %v2899_v47 }
 0x88b   : > { %v4330_v7 = vpop.eup %4329  ;;  %v2952_v17 = vadd.f32 1.0, %v4328_v61  ;;  %v2965_v62 = vpack.c.bf16 %v2961_v21, %v2957_v20  ;;  %v2958_v26 = vmul.f32 %v2950_v19, %v2894_v18 }
 0x88c   : > { %v2962_v27 = vmul.f32 %v2954_v24, %v2898_v23  ;;  %v2956_v11 = vadd.f32 1.0, %v4330_v7  ;;  %v2967_v28 = vpack.c.bf16 %v2963_v60, %v2959_v56 }
 0x88d   : > { %v2960_v30 = vmul.f32 %v2952_v17, %v2896_v16 }
 0x88e   : > { %v2966_v29 = vpack.c.bf16 %v2962_v27, %v2958_v26  ;;  %v2964_v31 = vmul.f32 %v2956_v11, %v2900_v8 }
 0x890   : > { %3201 = vmatprep.mubr.bf16.mxu0 %v2966_v29  ;;  %v2968_v55 = vpack.c.bf16 %v2964_v31, %v2960_v30 }
 0x891   : > { %3202 = vmatmul.mubr.bf16.vlgmr.msra.gmra.mrb[52].mxu0 %v2965_v62 }
 0x892   : > { %3242 = vmatprep.mubr.bf16.mxu1 %v2968_v55 }
 0x893   : > { %3243 = vmatmul.mubr.bf16.vlgmr.msra.gmra.mrb[52].mxu1 %v2967_v28 }
 0x964   : > { %v3700_v12 = vpop.f32.mrb[52].mxu0 }
 0x965   : > { %v3701_v32 = vpop.f32.mrb[53].mxu0 }
 0x966   : > { %v3722_v33 = vpop.f32.mrb[52].mxu1  ;;  %v3702_v34 = vadd.f32 %v3701_v32, %v3700_v12  ;;  %v3703_v35 = vpop.f32.mrb[54].mxu0 }
 0x967   : > { %v3723_v36 = vpop.f32.mrb[53].mxu1  ;;  %v3704_v37 = vpop.f32.mrb[55].mxu0 }
 0x968   : > { %v3204_v38 = vadd.f32 %v3702_v34, %v3507_v59  ;;  %v3724_v39 = vadd.f32 %v3723_v36, %v3722_v33  ;;  %v3725_v40 = vpop.f32.mrb[54].mxu1  ;;  %v3705_v41 = vadd.f32 %v3704_v37, %v3703_v35 }
 0x969   : > { %v3726_v42 = vpop.f32.mrb[55].mxu1 }
 0x96a   : > { %v3245_v43 = vadd.f32 %v3724_v39, %v3204_v38  ;;  %v3207_v44 = vadd.f32 %v3705_v41, %v3507_v59  ;;  %v3727_v45 = vadd.f32 %v3726_v42, %v3725_v40 }
 0x96c   : > { %v3251_v46 = vadd.f32 %v3245_v43, %v4840_v22  ;;  %v3248_v48 = vadd.f32 %v3727_v45, %v3207_v44 }
 0x96e   : > { %3253 = vst [vmem:[%s4479_s16] sm:$0xff] %v3251_v46  ;;  %v3252_v49 = vadd.f32 %v3248_v48, %v4842_v25 }
 0x970   : > { %3254 = vst [vmem:[%s4479_s16 + $0x8] sm:$0xff] %v3252_v49 }
 0x971 PF: > { %s22_s25 = sadd.s32 1, %s4371_s25   ;;  %s5023_s21 = smov %s4363_s23 }
 0x972   : > { %p19_p7 = scmp.ge.s32.totalorder %s22_s25, 6   ;;  %s5024_s22 = smov %s4367_s24 }
 0x973   : > { %s5025_s23 = smov %s5028_s26  ;;  %s5026_s24 = smov %s5032_s27 }
 0x974   :  { %21 = sbr.rel (!%p19_p7) target bundleno = 3 (0x3), region = 113 }

</bundles_post_ra>
